<compile_context>
chip_gen: v7x
topology: tpu7x:2x2x1
jax: 0.10.0
libtpu: 0.0.40
codegen_flags: <defaults>
</compile_context>

<pallas_src>
import jax
import jax.numpy as jnp
from jax.experimental import pallas as pl
from jax.experimental.pallas import tpu as pltpu


# --------------------------------------------------------------------------
# Fused conv3x3+ReLU+maxpool2x2 (x2) kernel, one image per grid step.
# --------------------------------------------------------------------------
def _conv3x3_relu(pad_ref, im_ref, w_ref, b_ref):
    """3x3 'same' conv as a single MXU matmul via an im2col VMEM buffer.

    pad_ref: (H+2, W+2, Cin) f32 zero-padded activation (VMEM scratch)
    im_ref:  (H*W, 9*Cin)    bf16 im2col buffer (VMEM scratch)
    w_ref:   (9*Cin, Cout)   bf16 weights, K index = (kh*3+kw)*Cin + c
    b_ref:   (1, Cout)       f32 bias
    returns: (H*W, Cout)     f32 conv + bias + ReLU
    """
    Hp, Wp, Cin = pad_ref.shape
    H, W = Hp - 2, Wp - 2
    # Build the im2col matrix: 9 shifted windows packed along the K (lane) axis.
    for kh in range(3):
        for kw in range(3):
            piece = pad_ref[kh:kh + H, kw:kw + W, :]            # (H, W, Cin)
            c0 = (kh * 3 + kw) * Cin
            im_ref[:, c0:c0 + Cin] = piece.reshape(H * W, Cin).astype(im_ref.dtype)
    # One bf16 MXU matmul with K = 9*Cin, f32 accumulation.
    acc = jnp.dot(im_ref[...], w_ref[...], preferred_element_type=jnp.float32)
    return jnp.maximum(acc + b_ref[...], 0.0)                   # (H*W, Cout) f32


def _maxpool2x2(y, H, W):
    """2x2 / stride-2 max pool on live values (no VMEM store / strided reload).

    y: (H*W, C) f32 -> (H//2, W//2, C) f32
    """
    C = y.shape[-1]
    yh = jnp.max(y.reshape(H // 2, 2, W, C), axis=1)            # pool along H
    return jnp.max(yh.reshape(H // 2, W // 2, 2, C), axis=2)    # pool along W


def cnn_stack_kernel(x_ref, w1_ref, b1_ref, w2_ref, b2_ref, o_ref,
                     xpad_ref, im1_ref, y1pad_ref, im2_ref):
    # x_ref:  (1, H, W, Cin) f32   one image (NHWC)
    # o_ref:  (1, H//4, (W//4)*C2) bf16  lane-dense pooled layer-2 output
    _, H, W, _ = x_ref.shape
    Hh, Wh = H // 2, W // 2
    Hq, Wq = H // 4, W // 4
    C2 = w2_ref.shape[1]

    # ---- layer 1: conv3x3("same") + ReLU + maxpool2x2 ----------------------
    # Halo handled in VMEM scratch; no host-side jnp.pad HBM pass.
    xpad_ref[...] = jnp.zeros_like(xpad_ref)
    xpad_ref[1:H + 1, 1:W + 1, :] = x_ref[0]
    y1 = _conv3x3_relu(xpad_ref, im1_ref, w1_ref, b1_ref)       # (H*W, C1) f32
    p1 = _maxpool2x2(y1, H, W)                                  # (Hh, Wh, C1)

    # ---- layer 2: pooled activation never leaves VMEM ----------------------
    y1pad_ref[...] = jnp.zeros_like(y1pad_ref)
    y1pad_ref[1:Hh + 1, 1:Wh + 1, :] = p1
    y2 = _conv3x3_relu(y1pad_ref, im2_ref, w2_ref, b2_ref)      # (Hh*Wh, C2) f32
    p2 = _maxpool2x2(y2, Hh, Wh)                                # (Hq, Wq, C2)

    # Lane-dense store: last dim Wq*C2 is a multiple of 128 -> unmasked vst.
    o_ref[0] = p2.reshape(Hq, Wq * C2).astype(o_ref.dtype)


def conv_stack(x_nhwc, w1, b1, w2, b2):
    """x_nhwc: (N,H,W,Cin) f32; w1: (9*Cin,C1) bf16; w2: (9*C1,C2) bf16;
    b1/b2: (1,C) f32.  Returns (N, H//4, (W//4)*C2) bf16 (HWC-flatten layout).
    """
    N, H, W, Cin = x_nhwc.shape
    C1 = w1.shape[1]
    C2 = w2.shape[1]
    # Two 2x2 pools -> torch floors odd sizes; only multiples of 4 supported here.
    assert H % 4 == 0 and W % 4 == 0, "H and W must be multiples of 4"
    Hh, Wh, Hq, Wq = H // 2, W // 2, H // 4, W // 4
    # TODO(synk): at the intended 640x480 size, add spatial (H) tiling with a
    # 1-row halo and raise vmem_limit_bytes; per-image VMEM use here is tiny.
    return pl.pallas_call(
        cnn_stack_kernel,
        out_shape=jax.ShapeDtypeStruct((N, Hq, Wq * C2), jnp.bfloat16),
        grid=(N,),
        in_specs=[
            pl.BlockSpec((1, H, W, Cin), lambda n: (n, 0, 0, 0)),
            pl.BlockSpec((9 * Cin, C1), lambda n: (0, 0)),
            pl.BlockSpec((1, C1), lambda n: (0, 0)),
            pl.BlockSpec((9 * C1, C2), lambda n: (0, 0)),
            pl.BlockSpec((1, C2), lambda n: (0, 0)),
        ],
        out_specs=pl.BlockSpec((1, Hq, Wq * C2), lambda n: (n, 0, 0)),
        scratch_shapes=[
            pltpu.VMEM((H + 2, W + 2, Cin), jnp.float32),    # padded input
            pltpu.VMEM((H * W, 9 * Cin), jnp.bfloat16),      # im2col, layer 1
            pltpu.VMEM((Hh + 2, Wh + 2, C1), jnp.float32),   # padded pooled-1
            pltpu.VMEM((Hh * Wh, 9 * C1), jnp.bfloat16),     # im2col, layer 2
        ],
        compiler_params=pltpu.CompilerParams(dimension_semantics=("parallel",)),
    )(x_nhwc, w1, b1, w2, b2)


# --------------------------------------------------------------------------
# Final Linear layer: contraction-tiled matmul with f32 accumulator (P3).
# --------------------------------------------------------------------------
def fc_kernel(x_ref, w_ref, b_ref, o_ref, acc_ref):
    # x_ref: (N, TK) bf16, w_ref: (TK, C) bf16, b_ref: (1, C) f32, o_ref: (N, C) f32
    k = pl.program_id(0)

    @pl.when(k == 0)
    def _():
        acc_ref[...] = jnp.zeros_like(acc_ref)

    acc_ref[...] += jnp.dot(x_ref[...], w_ref[...],
                            preferred_element_type=jnp.float32)

    @pl.when(k == pl.num_programs(0) - 1)
    def _():
        o_ref[...] = acc_ref[...] + b_ref[...]


def fc(x, w, b):
    """x: (N, F) bf16, w: (F, C) bf16 (rows already in HWC flatten order), b: (C,) f32."""
    N, F = x.shape
    C = w.shape[1]
    b2 = b.reshape(1, C).astype(jnp.float32)
    tk = F
    for cand in (2048, 1024, 512, 256, 128):
        if F % cand == 0:
            tk = cand
            break
    return pl.pallas_call(
        fc_kernel,
        out_shape=jax.ShapeDtypeStruct((N, C), jnp.float32),
        grid=(F // tk,),
        in_specs=[
            pl.BlockSpec((N, tk), lambda k: (0, k)),
            pl.BlockSpec((tk, C), lambda k: (k, 0)),
            pl.BlockSpec((1, C), lambda k: (0, 0)),
        ],
        out_specs=pl.BlockSpec((N, C), lambda k: (0, 0)),
        scratch_shapes=[pltpu.VMEM((N, C), jnp.float32)],
        compiler_params=pltpu.CompilerParams(dimension_semantics=("arbitrary",)),
    )(x, w, b2)


# --------------------------------------------------------------------------
# Parameter init (synthetic, deterministic) and kernel-layout preparation.
# --------------------------------------------------------------------------
def init_params(key, H, W):
    # Shapes follow the torch module's __init__ (conv 3->32, 32->64, fc ->3).
    # TODO(synk): the original fc is sized for 640x480 inputs (160*120*64
    # features); here it is sized for the small test spatial extent.
    k1, k2, k3, k4, k5, k6 = jax.random.split(key, 6)
    fan1 = 3 * 3 * 3
    w1 = jax.random.uniform(k1, (3, 3, 3, 32), jnp.float32, -1.0, 1.0) / jnp.sqrt(fan1)
    b1 = jax.random.uniform(k2, (32,), jnp.float32, -1.0, 1.0) / jnp.sqrt(fan1)
    fan2 = 3 * 3 * 32
    w2 = jax.random.uniform(k3, (3, 3, 32, 64), jnp.float32, -1.0, 1.0) / jnp.sqrt(fan2)
    b2 = jax.random.uniform(k4, (64,), jnp.float32, -1.0, 1.0) / jnp.sqrt(fan2)
    feat = (H // 4) * (W // 4) * 64
    bound = jnp.sqrt(6.0 / (feat + 3))                           # xavier_uniform
    # fc_w rows are in torch's NCHW-flatten order (c, h, w).
    fc_w = jax.random.uniform(k5, (feat, 3), jnp.float32, -bound, bound)
    fc_b = jax.random.uniform(k6, (3,), jnp.float32, -1.0, 1.0) / jnp.sqrt(feat)
    return dict(w1=w1, b1=b1, w2=w2, b2=b2, fc_w=fc_w, fc_b=fc_b)


def prepare_params(params, H, W):
    """One-time reshapes/casts to the kernel layouts (done outside the kernels)."""
    Hq, Wq = H // 4, W // 4
    C1 = params["w1"].shape[-1]
    C2 = params["w2"].shape[-1]
    Cin = params["w1"].shape[2]
    w1 = params["w1"].reshape(9 * Cin, C1).astype(jnp.bfloat16)   # K = (kh*3+kw)*Cin+c
    w2 = params["w2"].reshape(9 * C1, C2).astype(jnp.bfloat16)
    # Permute fc rows from torch's NCHW-flatten order to the kernel's HWC order,
    # so no runtime transpose of the activation is needed.
    fc_w = (params["fc_w"].reshape(C2, Hq, Wq, 3)
            .transpose(1, 2, 0, 3).reshape(Hq * Wq * C2, 3).astype(jnp.bfloat16))
    return dict(
        w1=w1, b1=params["b1"].reshape(1, C1).astype(jnp.float32),
        w2=w2, b2=params["b2"].reshape(1, C2).astype(jnp.float32),
        fc_w=fc_w, fc_b=params["fc_b"].astype(jnp.float32))


def cnn_forward(x_nchw, prep):
    x = jnp.transpose(x_nchw, (0, 2, 3, 1))                      # NCHW -> NHWC
    feats = conv_stack(x, prep["w1"], prep["b1"], prep["w2"], prep["b2"])
    flat = feats.reshape(feats.shape[0], -1)                     # HWC flatten (fc_w matches)
    return fc(flat, prep["fc_w"], prep["fc_b"])                  # (N, 3) f32


if __name__ == "__main__":
    key = jax.random.PRNGKey(0)
    kx, kp = jax.random.split(key)
    N, C, H, W = 2, 3, 16, 16
    x = jax.random.normal(kx, (N, C, H, W), jnp.float32)
    params = init_params(kp, H, W)
    prep = prepare_params(params, H, W)
    out = cnn_forward(x, prep)
    jax.block_until_ready(out)
    assert out.shape == (N, 3) and out.dtype == jnp.float32
    print("KERNEL_OK")
</pallas_src>

<mosaic_0001>
module attributes {stable_mosaic.version = 11 : i64} {
  func.func @cnn_stack_kernel(%arg0: i32, %arg1: memref<1x16x16x3xf32, #tpu.memory_space<vmem>>, %arg2: memref<27x32xbf16, #tpu.memory_space<vmem>>, %arg3: memref<1x32xf32, #tpu.memory_space<vmem>>, %arg4: memref<288x64xbf16, #tpu.memory_space<vmem>>, %arg5: memref<1x64xf32, #tpu.memory_space<vmem>>, %arg6: memref<1x4x256xbf16, #tpu.memory_space<vmem>>, %arg7: memref<18x18x3xf32, #tpu.memory_space<vmem>>, %arg8: memref<256x27xbf16, #tpu.memory_space<vmem>>, %arg9: memref<10x10x32xf32, #tpu.memory_space<vmem>>, %arg10: memref<64x288xbf16, #tpu.memory_space<vmem>>) attributes {dimension_semantics = [#tpu.dimension_semantics<parallel>], iteration_bounds = array<i64: 2>, scalar_prefetch = 0 : i64, scratch_operands = 4 : i64, tpu.core_type = #tpu.core_type<tc>, window_params = [{transform_indices = @transform_0, window_bounds = array<i64: 1, 16, 16, 3>}, {pipeline_mode = #tpu.pipeline_mode<synchronous>, transform_indices = @transform_1, window_bounds = array<i64: 27, 32>}, {pipeline_mode = #tpu.pipeline_mode<synchronous>, transform_indices = @transform_2, window_bounds = array<i64: 1, 32>}, {pipeline_mode = #tpu.pipeline_mode<synchronous>, transform_indices = @transform_3, window_bounds = array<i64: 288, 64>}, {pipeline_mode = #tpu.pipeline_mode<synchronous>, transform_indices = @transform_4, window_bounds = array<i64: 1, 64>}, {transform_indices = @transform_5, window_bounds = array<i64: 1, 4, 256>}]} {
    %cst = arith.constant 0.000000e+00 : f32
    %0 = vector.broadcast %cst : f32 to vector<18x18x3xf32>
    %c0 = arith.constant 0 : index
    %c0_0 = arith.constant 0 : index
    %c0_1 = arith.constant 0 : index
    %1 = vector.load %arg7[%c0, %c0_0, %c0_1] : memref<18x18x3xf32, #tpu.memory_space<vmem>>, vector<18x18x3xf32>
    tpu.vector_store %arg7[%c0, %c0_0, %c0_1], %0 {strides = array<i32>} : memref<18x18x3xf32, #tpu.memory_space<vmem>>, vector<18x18x3xf32>,
    %c0_2 = arith.constant 0 : index
    %c0_3 = arith.constant 0 : index
    %c0_4 = arith.constant 0 : index
    %c0_5 = arith.constant 0 : index
    %2 = vector.load %arg1[%c0_2, %c0_3, %c0_4, %c0_5] : memref<1x16x16x3xf32, #tpu.memory_space<vmem>>, vector<1x16x16x3xf32>
    %3 = vector.shape_cast %2 : vector<1x16x16x3xf32> to vector<16x16x3xf32>
    %c1 = arith.constant 1 : index
    %c1_6 = arith.constant 1 : index
    %c0_7 = arith.constant 0 : index
    %4 = vector.load %arg7[%c1, %c1_6, %c0_7] : memref<18x18x3xf32, #tpu.memory_space<vmem>>, vector<16x16x3xf32>
    tpu.vector_store %arg7[%c1, %c1_6, %c0_7], %3 {strides = array<i32>} : memref<18x18x3xf32, #tpu.memory_space<vmem>>, vector<16x16x3xf32>,
    %c0_8 = arith.constant 0 : index
    %c0_9 = arith.constant 0 : index
    %c0_10 = arith.constant 0 : index
    %5 = vector.load %arg7[%c0_8, %c0_9, %c0_10] : memref<18x18x3xf32, #tpu.memory_space<vmem>>, vector<16x16x3xf32>
    %6 = vector.shape_cast %5 : vector<16x16x3xf32> to vector<256x3xf32>
    %7 = arith.truncf %6 : vector<256x3xf32> to vector<256x3xbf16>
    %c0_11 = arith.constant 0 : index
    %c0_12 = arith.constant 0 : index
    %8 = vector.load %arg8[%c0_11, %c0_12] : memref<256x27xbf16, #tpu.memory_space<vmem>>, vector<256x3xbf16>
    tpu.vector_store %arg8[%c0_11, %c0_12], %7 {strides = array<i32>} : memref<256x27xbf16, #tpu.memory_space<vmem>>, vector<256x3xbf16>,
    %c0_13 = arith.constant 0 : index
    %c1_14 = arith.constant 1 : index
    %c0_15 = arith.constant 0 : index
    %9 = vector.load %arg7[%c0_13, %c1_14, %c0_15] : memref<18x18x3xf32, #tpu.memory_space<vmem>>, vector<16x16x3xf32>
    %10 = vector.shape_cast %9 : vector<16x16x3xf32> to vector<256x3xf32>
    %11 = arith.truncf %10 : vector<256x3xf32> to vector<256x3xbf16>
    %c0_16 = arith.constant 0 : index
    %c3 = arith.constant 3 : index
    %12 = vector.load %arg8[%c0_16, %c3] : memref<256x27xbf16, #tpu.memory_space<vmem>>, vector<256x3xbf16>
    tpu.vector_store %arg8[%c0_16, %c3], %11 {strides = array<i32>} : memref<256x27xbf16, #tpu.memory_space<vmem>>, vector<256x3xbf16>,
    %c0_17 = arith.constant 0 : index
    %c2 = arith.constant 2 : index
    %c0_18 = arith.constant 0 : index
    %13 = vector.load %arg7[%c0_17, %c2, %c0_18] : memref<18x18x3xf32, #tpu.memory_space<vmem>>, vector<16x16x3xf32>
    %14 = vector.shape_cast %13 : vector<16x16x3xf32> to vector<256x3xf32>
    %15 = arith.truncf %14 : vector<256x3xf32> to vector<256x3xbf16>
    %c0_19 = arith.constant 0 : index
    %c6 = arith.constant 6 : index
    %16 = vector.load %arg8[%c0_19, %c6] : memref<256x27xbf16, #tpu.memory_space<vmem>>, vector<256x3xbf16>
    tpu.vector_store %arg8[%c0_19, %c6], %15 {strides = array<i32>} : memref<256x27xbf16, #tpu.memory_space<vmem>>, vector<256x3xbf16>,
    %c1_20 = arith.constant 1 : index
    %c0_21 = arith.constant 0 : index
    %c0_22 = arith.constant 0 : index
    %17 = vector.load %arg7[%c1_20, %c0_21, %c0_22] : memref<18x18x3xf32, #tpu.memory_space<vmem>>, vector<16x16x3xf32>
    %18 = vector.shape_cast %17 : vector<16x16x3xf32> to vector<256x3xf32>
    %19 = arith.truncf %18 : vector<256x3xf32> to vector<256x3xbf16>
    %c0_23 = arith.constant 0 : index
    %c9 = arith.constant 9 : index
    %20 = vector.load %arg8[%c0_23, %c9] : memref<256x27xbf16, #tpu.memory_space<vmem>>, vector<256x3xbf16>
    tpu.vector_store %arg8[%c0_23, %c9], %19 {strides = array<i32>} : memref<256x27xbf16, #tpu.memory_space<vmem>>, vector<256x3xbf16>,
    %c1_24 = arith.constant 1 : index
    %c1_25 = arith.constant 1 : index
    %c0_26 = arith.constant 0 : index
    %21 = vector.load %arg7[%c1_24, %c1_25, %c0_26] : memref<18x18x3xf32, #tpu.memory_space<vmem>>, vector<16x16x3xf32>
    %22 = vector.shape_cast %21 : vector<16x16x3xf32> to vector<256x3xf32>
    %23 = arith.truncf %22 : vector<256x3xf32> to vector<256x3xbf16>
    %c0_27 = arith.constant 0 : index
    %c12 = arith.constant 12 : index
    %24 = vector.load %arg8[%c0_27, %c12] : memref<256x27xbf16, #tpu.memory_space<vmem>>, vector<256x3xbf16>
    tpu.vector_store %arg8[%c0_27, %c12], %23 {strides = array<i32>} : memref<256x27xbf16, #tpu.memory_space<vmem>>, vector<256x3xbf16>,
    %c1_28 = arith.constant 1 : index
    %c2_29 = arith.constant 2 : index
    %c0_30 = arith.constant 0 : index
    %25 = vector.load %arg7[%c1_28, %c2_29, %c0_30] : memref<18x18x3xf32, #tpu.memory_space<vmem>>, vector<16x16x3xf32>
    %26 = vector.shape_cast %25 : vector<16x16x3xf32> to vector<256x3xf32>
    %27 = arith.truncf %26 : vector<256x3xf32> to vector<256x3xbf16>
    %c0_31 = arith.constant 0 : index
    %c15 = arith.constant 15 : index
    %28 = vector.load %arg8[%c0_31, %c15] : memref<256x27xbf16, #tpu.memory_space<vmem>>, vector<256x3xbf16>
    tpu.vector_store %arg8[%c0_31, %c15], %27 {strides = array<i32>} : memref<256x27xbf16, #tpu.memory_space<vmem>>, vector<256x3xbf16>,
    %c2_32 = arith.constant 2 : index
    %c0_33 = arith.constant 0 : index
    %c0_34 = arith.constant 0 : index
    %29 = vector.load %arg7[%c2_32, %c0_33, %c0_34] : memref<18x18x3xf32, #tpu.memory_space<vmem>>, vector<16x16x3xf32>
    %30 = vector.shape_cast %29 : vector<16x16x3xf32> to vector<256x3xf32>
    %31 = arith.truncf %30 : vector<256x3xf32> to vector<256x3xbf16>
    %c0_35 = arith.constant 0 : index
    %c18 = arith.constant 18 : index
    %32 = vector.load %arg8[%c0_35, %c18] : memref<256x27xbf16, #tpu.memory_space<vmem>>, vector<256x3xbf16>
    tpu.vector_store %arg8[%c0_35, %c18], %31 {strides = array<i32>} : memref<256x27xbf16, #tpu.memory_space<vmem>>, vector<256x3xbf16>,
    %c2_36 = arith.constant 2 : index
    %c1_37 = arith.constant 1 : index
    %c0_38 = arith.constant 0 : index
    %33 = vector.load %arg7[%c2_36, %c1_37, %c0_38] : memref<18x18x3xf32, #tpu.memory_space<vmem>>, vector<16x16x3xf32>
    %34 = vector.shape_cast %33 : vector<16x16x3xf32> to vector<256x3xf32>
    %35 = arith.truncf %34 : vector<256x3xf32> to vector<256x3xbf16>
    %c0_39 = arith.constant 0 : index
    %c21 = arith.constant 21 : index
    %36 = vector.load %arg8[%c0_39, %c21] : memref<256x27xbf16, #tpu.memory_space<vmem>>, vector<256x3xbf16>
    tpu.vector_store %arg8[%c0_39, %c21], %35 {strides = array<i32>} : memref<256x27xbf16, #tpu.memory_space<vmem>>, vector<256x3xbf16>,
    %c2_40 = arith.constant 2 : index
    %c2_41 = arith.constant 2 : index
    %c0_42 = arith.constant 0 : index
    %37 = vector.load %arg7[%c2_40, %c2_41, %c0_42] : memref<18x18x3xf32, #tpu.memory_space<vmem>>, vector<16x16x3xf32>
    %38 = vector.shape_cast %37 : vector<16x16x3xf32> to vector<256x3xf32>
    %39 = arith.truncf %38 : vector<256x3xf32> to vector<256x3xbf16>
    %c0_43 = arith.constant 0 : index
    %c24 = arith.constant 24 : index
    %40 = vector.load %arg8[%c0_43, %c24] : memref<256x27xbf16, #tpu.memory_space<vmem>>, vector<256x3xbf16>
    tpu.vector_store %arg8[%c0_43, %c24], %39 {strides = array<i32>} : memref<256x27xbf16, #tpu.memory_space<vmem>>, vector<256x3xbf16>,
    %c0_44 = arith.constant 0 : index
    %c0_45 = arith.constant 0 : index
    %41 = vector.load %arg8[%c0_44, %c0_45] : memref<256x27xbf16, #tpu.memory_space<vmem>>, vector<256x27xbf16>
    %c0_46 = arith.constant 0 : index
    %c0_47 = arith.constant 0 : index
    %42 = vector.load %arg2[%c0_46, %c0_47] : memref<27x32xbf16, #tpu.memory_space<vmem>>, vector<27x32xbf16>
    %cst_48 = arith.constant dense<0.000000e+00> : vector<256x32xf32>
    %43 = tpu.matmul %41, %42, %cst_48 {dimension_numbers = #tpu.dot_dimension_numbers<[1], [0], [0], [1], [0, 0, 1, 1], [], []>} : vector<256x27xbf16>, vector<27x32xbf16>, vector<256x32xf32> -> vector<256x32xf32>
    %c0_49 = arith.constant 0 : index
    %c0_50 = arith.constant 0 : index
    %44 = vector.load %arg3[%c0_49, %c0_50] : memref<1x32xf32, #tpu.memory_space<vmem>>, vector<1x32xf32>
    %45 = vector.broadcast %44 : vector<1x32xf32> to vector<256x32xf32>
    %46 = arith.addf %43, %45 : vector<256x32xf32>
    %cst_51 = arith.constant 0.000000e+00 : f32
    %47 = vector.broadcast %cst_51 : f32 to vector<256x32xf32>
    %48 = arith.maximumf %46, %47 : vector<256x32xf32>
    %49 = vector.shape_cast %48 : vector<256x32xf32> to vector<8x2x16x32xf32>
    %cst_52 = arith.constant dense<0xFF800000> : vector<8x16x32xf32>
    %50 = vector.multi_reduction <maximumf>, %49, %cst_52 [1] : vector<8x2x16x32xf32> to vector<8x16x32xf32>
    %51 = vector.shape_cast %50 : vector<8x16x32xf32> to vector<8x8x2x32xf32>
    %cst_53 = arith.constant dense<0xFF800000> : vector<8x8x32xf32>
    %52 = vector.multi_reduction <maximumf>, %51, %cst_53 [2] : vector<8x8x2x32xf32> to vector<8x8x32xf32>
    %cst_54 = arith.constant 0.000000e+00 : f32
    %53 = vector.broadcast %cst_54 : f32 to vector<10x10x32xf32>
    %c0_55 = arith.constant 0 : index
    %c0_56 = arith.constant 0 : index
    %c0_57 = arith.constant 0 : index
    %54 = vector.load %arg9[%c0_55, %c0_56, %c0_57] : memref<10x10x32xf32, #tpu.memory_space<vmem>>, vector<10x10x32xf32>
    tpu.vector_store %arg9[%c0_55, %c0_56, %c0_57], %53 {strides = array<i32>} : memref<10x10x32xf32, #tpu.memory_space<vmem>>, vector<10x10x32xf32>,
    %c1_58 = arith.constant 1 : index
    %c1_59 = arith.constant 1 : index
    %c0_60 = arith.constant 0 : index
    %55 = vector.load %arg9[%c1_58, %c1_59, %c0_60] : memref<10x10x32xf32, #tpu.memory_space<vmem>>, vector<8x8x32xf32>
    tpu.vector_store %arg9[%c1_58, %c1_59, %c0_60], %52 {strides = array<i32>} : memref<10x10x32xf32, #tpu.memory_space<vmem>>, vector<8x8x32xf32>,
    %c0_61 = arith.constant 0 : index
    %c0_62 = arith.constant 0 : index
    %c0_63 = arith.constant 0 : index
    %56 = vector.load %arg9[%c0_61, %c0_62, %c0_63] : memref<10x10x32xf32, #tpu.memory_space<vmem>>, vector<8x8x32xf32>
    %57 = vector.shape_cast %56 : vector<8x8x32xf32> to vector<64x32xf32>
    %58 = arith.truncf %57 : vector<64x32xf32> to vector<64x32xbf16>
    %c0_64 = arith.constant 0 : index
    %c0_65 = arith.constant 0 : index
    %59 = vector.load %arg10[%c0_64, %c0_65] : memref<64x288xbf16, #tpu.memory_space<vmem>>, vector<64x32xbf16>
    tpu.vector_store %arg10[%c0_64, %c0_65], %58 {strides = array<i32>} : memref<64x288xbf16, #tpu.memory_space<vmem>>, vector<64x32xbf16>,
    %c0_66 = arith.constant 0 : index
    %c1_67 = arith.constant 1 : index
    %c0_68 = arith.constant 0 : index
    %60 = vector.load %arg9[%c0_66, %c1_67, %c0_68] : memref<10x10x32xf32, #tpu.memory_space<vmem>>, vector<8x8x32xf32>
    %61 = vector.shape_cast %60 : vector<8x8x32xf32> to vector<64x32xf32>
    %62 = arith.truncf %61 : vector<64x32xf32> to vector<64x32xbf16>
    %c0_69 = arith.constant 0 : index
    %c32 = arith.constant 32 : index
    %63 = vector.load %arg10[%c0_69, %c32] : memref<64x288xbf16, #tpu.memory_space<vmem>>, vector<64x32xbf16>
    tpu.vector_store %arg10[%c0_69, %c32], %62 {strides = array<i32>} : memref<64x288xbf16, #tpu.memory_space<vmem>>, vector<64x32xbf16>,
    %c0_70 = arith.constant 0 : index
    %c2_71 = arith.constant 2 : index
    %c0_72 = arith.constant 0 : index
    %64 = vector.load %arg9[%c0_70, %c2_71, %c0_72] : memref<10x10x32xf32, #tpu.memory_space<vmem>>, vector<8x8x32xf32>
    %65 = vector.shape_cast %64 : vector<8x8x32xf32> to vector<64x32xf32>
    %66 = arith.truncf %65 : vector<64x32xf32> to vector<64x32xbf16>
    %c0_73 = arith.constant 0 : index
    %c64 = arith.constant 64 : index
    %67 = vector.load %arg10[%c0_73, %c64] : memref<64x288xbf16, #tpu.memory_space<vmem>>, vector<64x32xbf16>
    tpu.vector_store %arg10[%c0_73, %c64], %66 {strides = array<i32>} : memref<64x288xbf16, #tpu.memory_space<vmem>>, vector<64x32xbf16>,
    %c1_74 = arith.constant 1 : index
    %c0_75 = arith.constant 0 : index
    %c0_76 = arith.constant 0 : index
    %68 = vector.load %arg9[%c1_74, %c0_75, %c0_76] : memref<10x10x32xf32, #tpu.memory_space<vmem>>, vector<8x8x32xf32>
    %69 = vector.shape_cast %68 : vector<8x8x32xf32> to vector<64x32xf32>
    %70 = arith.truncf %69 : vector<64x32xf32> to vector<64x32xbf16>
    %c0_77 = arith.constant 0 : index
    %c96 = arith.constant 96 : index
    %71 = vector.load %arg10[%c0_77, %c96] : memref<64x288xbf16, #tpu.memory_space<vmem>>, vector<64x32xbf16>
    tpu.vector_store %arg10[%c0_77, %c96], %70 {strides = array<i32>} : memref<64x288xbf16, #tpu.memory_space<vmem>>, vector<64x32xbf16>,
    %c1_78 = arith.constant 1 : index
    %c1_79 = arith.constant 1 : index
    %c0_80 = arith.constant 0 : index
    %72 = vector.load %arg9[%c1_78, %c1_79, %c0_80] : memref<10x10x32xf32, #tpu.memory_space<vmem>>, vector<8x8x32xf32>
    %73 = vector.shape_cast %72 : vector<8x8x32xf32> to vector<64x32xf32>
    %74 = arith.truncf %73 : vector<64x32xf32> to vector<64x32xbf16>
    %c0_81 = arith.constant 0 : index
    %c128 = arith.constant 128 : index
    %75 = vector.load %arg10[%c0_81, %c128] : memref<64x288xbf16, #tpu.memory_space<vmem>>, vector<64x32xbf16>
    tpu.vector_store %arg10[%c0_81, %c128], %74 {strides = array<i32>} : memref<64x288xbf16, #tpu.memory_space<vmem>>, vector<64x32xbf16>,
    %c1_82 = arith.constant 1 : index
    %c2_83 = arith.constant 2 : index
    %c0_84 = arith.constant 0 : index
    %76 = vector.load %arg9[%c1_82, %c2_83, %c0_84] : memref<10x10x32xf32, #tpu.memory_space<vmem>>, vector<8x8x32xf32>
    %77 = vector.shape_cast %76 : vector<8x8x32xf32> to vector<64x32xf32>
    %78 = arith.truncf %77 : vector<64x32xf32> to vector<64x32xbf16>
    %c0_85 = arith.constant 0 : index
    %c160 = arith.constant 160 : index
    %79 = vector.load %arg10[%c0_85, %c160] : memref<64x288xbf16, #tpu.memory_space<vmem>>, vector<64x32xbf16>
    tpu.vector_store %arg10[%c0_85, %c160], %78 {strides = array<i32>} : memref<64x288xbf16, #tpu.memory_space<vmem>>, vector<64x32xbf16>,
    %c2_86 = arith.constant 2 : index
    %c0_87 = arith.constant 0 : index
    %c0_88 = arith.constant 0 : index
    %80 = vector.load %arg9[%c2_86, %c0_87, %c0_88] : memref<10x10x32xf32, #tpu.memory_space<vmem>>, vector<8x8x32xf32>
    %81 = vector.shape_cast %80 : vector<8x8x32xf32> to vector<64x32xf32>
    %82 = arith.truncf %81 : vector<64x32xf32> to vector<64x32xbf16>
    %c0_89 = arith.constant 0 : index
    %c192 = arith.constant 192 : index
    %83 = vector.load %arg10[%c0_89, %c192] : memref<64x288xbf16, #tpu.memory_space<vmem>>, vector<64x32xbf16>
    tpu.vector_store %arg10[%c0_89, %c192], %82 {strides = array<i32>} : memref<64x288xbf16, #tpu.memory_space<vmem>>, vector<64x32xbf16>,
    %c2_90 = arith.constant 2 : index
    %c1_91 = arith.constant 1 : index
    %c0_92 = arith.constant 0 : index
    %84 = vector.load %arg9[%c2_90, %c1_91, %c0_92] : memref<10x10x32xf32, #tpu.memory_space<vmem>>, vector<8x8x32xf32>
    %85 = vector.shape_cast %84 : vector<8x8x32xf32> to vector<64x32xf32>
    %86 = arith.truncf %85 : vector<64x32xf32> to vector<64x32xbf16>
    %c0_93 = arith.constant 0 : index
    %c224 = arith.constant 224 : index
    %87 = vector.load %arg10[%c0_93, %c224] : memref<64x288xbf16, #tpu.memory_space<vmem>>, vector<64x32xbf16>
    tpu.vector_store %arg10[%c0_93, %c224], %86 {strides = array<i32>} : memref<64x288xbf16, #tpu.memory_space<vmem>>, vector<64x32xbf16>,
    %c2_94 = arith.constant 2 : index
    %c2_95 = arith.constant 2 : index
    %c0_96 = arith.constant 0 : index
    %88 = vector.load %arg9[%c2_94, %c2_95, %c0_96] : memref<10x10x32xf32, #tpu.memory_space<vmem>>, vector<8x8x32xf32>
    %89 = vector.shape_cast %88 : vector<8x8x32xf32> to vector<64x32xf32>
    %90 = arith.truncf %89 : vector<64x32xf32> to vector<64x32xbf16>
    %c0_97 = arith.constant 0 : index
    %c256 = arith.constant 256 : index
    %91 = vector.load %arg10[%c0_97, %c256] : memref<64x288xbf16, #tpu.memory_space<vmem>>, vector<64x32xbf16>
    tpu.vector_store %arg10[%c0_97, %c256], %90 {strides = array<i32>} : memref<64x288xbf16, #tpu.memory_space<vmem>>, vector<64x32xbf16>,
    %c0_98 = arith.constant 0 : index
    %c0_99 = arith.constant 0 : index
    %92 = vector.load %arg10[%c0_98, %c0_99] : memref<64x288xbf16, #tpu.memory_space<vmem>>, vector<64x288xbf16>
    %c0_100 = arith.constant 0 : index
    %c0_101 = arith.constant 0 : index
    %93 = vector.load %arg4[%c0_100, %c0_101] : memref<288x64xbf16, #tpu.memory_space<vmem>>, vector<288x64xbf16>
    %cst_102 = arith.constant dense<0.000000e+00> : vector<64x64xf32>
    %94 = tpu.matmul %92, %93, %cst_102 {dimension_numbers = #tpu.dot_dimension_numbers<[1], [0], [0], [1], [0, 0, 1, 1], [], []>} : vector<64x288xbf16>, vector<288x64xbf16>, vector<64x64xf32> -> vector<64x64xf32>
    %c0_103 = arith.constant 0 : index
    %c0_104 = arith.constant 0 : index
    %95 = vector.load %arg5[%c0_103, %c0_104] : memref<1x64xf32, #tpu.memory_space<vmem>>, vector<1x64xf32>
    %96 = vector.broadcast %95 : vector<1x64xf32> to vector<64x64xf32>
    %97 = arith.addf %94, %96 : vector<64x64xf32>
    %cst_105 = arith.constant 0.000000e+00 : f32
    %98 = vector.broadcast %cst_105 : f32 to vector<64x64xf32>
    %99 = arith.maximumf %97, %98 : vector<64x64xf32>
    %100 = vector.shape_cast %99 : vector<64x64xf32> to vector<4x2x8x64xf32>
    %cst_106 = arith.constant dense<0xFF800000> : vector<4x8x64xf32>
    %101 = vector.multi_reduction <maximumf>, %100, %cst_106 [1] : vector<4x2x8x64xf32> to vector<4x8x64xf32>
    %102 = vector.shape_cast %101 : vector<4x8x64xf32> to vector<4x4x2x64xf32>
    %cst_107 = arith.constant dense<0xFF800000> : vector<4x4x64xf32>
    %103 = vector.multi_reduction <maximumf>, %102, %cst_107 [2] : vector<4x4x2x64xf32> to vector<4x4x64xf32>
    %104 = vector.shape_cast %103 : vector<4x4x64xf32> to vector<4x256xf32>
    %105 = arith.truncf %104 : vector<4x256xf32> to vector<4x256xbf16>
    %c0_108 = arith.constant 0 : index
    %c0_109 = arith.constant 0 : index
    %c0_110 = arith.constant 0 : index
    %106 = vector.load %arg6[%c0_108, %c0_109, %c0_110] : memref<1x4x256xbf16, #tpu.memory_space<vmem>>, vector<1x4x256xbf16>
    %107 = vector.shape_cast %106 : vector<1x4x256xbf16> to vector<4x256xbf16>
    %108 = vector.shape_cast %105 : vector<4x256xbf16> to vector<1x4x256xbf16>
    tpu.vector_store %arg6[%c0_108, %c0_109, %c0_110], %108 {strides = array<i32>} : memref<1x4x256xbf16, #tpu.memory_space<vmem>>, vector<1x4x256xbf16>,
    return
  }
  func.func @transform_0(%arg0: i32) -> (i32, i32, i32, i32) {
    %c0_i32 = arith.constant 0 : i32
    %c0_i32_0 = arith.constant 0 : i32
    %c0_i32_1 = arith.constant 0 : i32
    %c0_i32_2 = arith.constant 0 : i32
    return %arg0, %c0_i32, %c0_i32_0, %c0_i32_1 : i32, i32, i32, i32
  }
  func.func @transform_1(%arg0: i32) -> (i32, i32) {
    %c0_i32 = arith.constant 0 : i32
    %c0_i32_0 = arith.constant 0 : i32
    %c0_i32_1 = arith.constant 0 : i32
    return %c0_i32, %c0_i32_0 : i32, i32
  }
  func.func @transform_2(%arg0: i32) -> (i32, i32) {
    %c0_i32 = arith.constant 0 : i32
    %c0_i32_0 = arith.constant 0 : i32
    %c0_i32_1 = arith.constant 0 : i32
    return %c0_i32, %c0_i32_0 : i32, i32
  }
  func.func @transform_3(%arg0: i32) -> (i32, i32) {
    %c0_i32 = arith.constant 0 : i32
    %c0_i32_0 = arith.constant 0 : i32
    %c0_i32_1 = arith.constant 0 : i32
    return %c0_i32, %c0_i32_0 : i32, i32
  }
  func.func @transform_4(%arg0: i32) -> (i32, i32) {
    %c0_i32 = arith.constant 0 : i32
    %c0_i32_0 = arith.constant 0 : i32
    %c0_i32_1 = arith.constant 0 : i32
    return %c0_i32, %c0_i32_0 : i32, i32
  }
  func.func @transform_5(%arg0: i32) -> (i32, i32, i32) {
    %c0_i32 = arith.constant 0 : i32
    %c0_i32_0 = arith.constant 0 : i32
    %c0_i32_1 = arith.constant 0 : i32
    return %arg0, %c0_i32, %c0_i32_0 : i32, i32, i32
  }
}

</mosaic_0001>

<bundles_post_ra>
// kernel: tpu_custom_call.1
= control target key start
LH: loop header
LB: loop body
LE: loop exit
PB: predicated region body
PF: predicated region fallthrough
CT: control target
= control target key end

     0   :  { %10 = vsyncpa [#allocation7], 0  ;;  %s5246_s0 = inlined_call_operand.vmem [shape: f32[2,16,16,3], index: 0, kind: input, shape index: {}]   ;;  %s5247_s1 = inlined_call_operand.vmem [shape: bf16[27,32], index: 1, kind: input, shape index: {}]   ;;  %s5248_s2 = inlined_call_operand.vmem [shape: f32[1,32], index: 2, kind: input, shape index: {}]   ;;  %s5249_s3 = inlined_call_operand.vmem [shape: bf16[288,64], index: 3, kind: input, shape index: {}]   ;;  %s5250_s4 = inlined_call_operand.vmem [shape: f32[1,64], index: 4, kind: input, shape index: {}]   ;;  %s5251_s5 = inlined_call_operand.hbm [shape: bf16[2,4,256], index: 5, kind: output, shape index: {}]  }
   0x1   :  { %12 = vsyncpa [#allocation7 + $0x1], 0  ;;  %s4038_s18 = smov 0   ;;  %s4040_s19 = smov 0  }
   0x2   :  { %s4042_s20 = smov 0   ;;  %s4044_s21 = smov 0  }
   0x3 LB: > { %s4059_s22 = sadd.s32 4294967295, %s3990_s21   ;;  %s3678_s23 = sadd.s32 4294967294, %s3990_s21   ;;  %s3990_s21 = sphi %s4044_s21, %s5257_s21   ;;  %s3986_s20 = sphi %s4042_s20, %s5256_s20   ;;  %s3982_s19 = sphi %s4040_s19, %s5255_s19   ;;  %s3978_s18 = sphi %s4038_s18, %s5254_s18  }
   0x4   : > { %s4063_s24 = sadd.s32 1, %s3990_s21   ;;  %s135_s25 = sadd.s32 1, %s3986_s20 }
   0x5   : > { %s132_s26 = ssub.s32 %s3990_s21, %s4063_s24  ;;  %p145_p0 = scmp.ne.s32.totalorder %s3986_s20, %s3982_s19 }
   0x6   : > { %p133_p1 = scmp.eq.s32.totalorder %s132_s26, 0  ;;  %p146_p2 = scmp.eq.s32.totalorder %s4059_s22, 1 }
   0x7   : > { %p151_p3 = scmp.ne.s32.totalorder %s3982_s19, %s3978_s18  ;;  %p152_p4 = scmp.eq.s32.totalorder %s3678_s23, 1 }
   0x8   : > { %s4074_s27 = scalar_select %p133_p1, %s3986_s20, %s135_s25  }
   0x9   : > { %p4076_p5 = por %p146_p2, %p145_p0  ;;  %p4080_p6 = por %p152_p4, %p151_p3 }
   0xa   : > { %p3681_p7 = scmp.ge.s32.totalorder %s3990_s21, 1  ;;  %p190_p8 = scmp.lt.s32.totalorder %s3990_s21, 3 }
   0xc   : > { %p191_p9 = pnand %p3681_p7, %p190_p8 }
   0xd   : > { %vm224_vm0 = vcmask (!%p191_p9), 23552   ;;  %vm227_vm1 = vcmask (!%p191_p9), 17408   ;;  %v3992_v0 = vmov (!%p191_p9), 0.0   ;;  %p218_p10 = scmp.lt.s32.totalorder (!%p191_p9), %s4059_s22, 1  ;;  %s3993_s10 = smov (!%p191_p9), 3   ;;  %vm1529_vm2 = vcmask (!%p191_p9), 1044480  }
   0xe   : > { %194 = sbr.rel (%p191_p9) target bundleno = 1230 (0x4ce), region = 40  ;;  %225 = vst.msk [vmem:[#allocation2] sm:$0xff] (!%p191_p9), %vm224_vm0, %v3992_v0  ;;  %226 = vst.msk [vmem:[#allocation2 + $0x8] sm:$0xff] (!%p191_p9), %vm224_vm0, %v3992_v0  ;;  %s3994_s11 = smov (!%p191_p9), 6   ;;  %vm1530_vm3 = vcmask (!%p191_p9), 1045504   ;;  %vm521_vm4 = vcmask (!%p191_p9), 48152  }
   0xf   : > { %228 = vst.msk [vmem:[#allocation2 + $0x10] sm:$0x3] (!%p191_p9), %vm227_vm1, %v3992_v0  ;;  %231 = vst.msk [vmem:[#allocation2 + $0x28] sm:$0x3] (!%p191_p9), %vm227_vm1, %v3992_v0  ;;  %s3995_s12 = smov (!%p191_p9), 9   ;;  %s3996_s13 = smov (!%p191_p9), 12  }
  0x10   : > { %229 = vst.msk [vmem:[#allocation2 + $0x18] sm:$0xff] (!%p191_p9), %vm224_vm0, %v3992_v0  ;;  %230 = vst.msk [vmem:[#allocation2 + $0x20] sm:$0xff] (!%p191_p9), %vm224_vm0, %v3992_v0  ;;  %s3997_s14 = smov (!%p191_p9), 15   ;;  %s3999_s17 = smov (!%p191_p9), 18   ;;  %vm650_vm5 = vcmask (!%p191_p9), 72752   ;;  %vm779_vm6 = vcmask (!%p191_p9), 97352  }
  0x11   : > { %232 = vst.msk [vmem:[#allocation2 + $0x30] sm:$0xff] (!%p191_p9), %vm224_vm0, %v3992_v0  ;;  %233 = vst.msk [vmem:[#allocation2 + $0x38] sm:$0xff] (!%p191_p9), %vm224_vm0, %v3992_v0  ;;  %s4000_s26 = smov (!%p191_p9), 21   ;;  %vm908_vm7 = vcmask (!%p191_p9), 121952   ;;  %vm1037_vm8 = vcmask (!%p191_p9), 146552   ;;  %vm1167_vm9 = vcmask (!%p191_p9), 171152  }
  0x12   : > { %234 = vst.msk [vmem:[#allocation2 + $0x40] sm:$0x3] (!%p191_p9), %vm227_vm1, %v3992_v0  ;;  %237 = vst.msk [vmem:[#allocation2 + $0x58] sm:$0x3] (!%p191_p9), %vm227_vm1, %v3992_v0  ;;  %vm1296_vm10 = vcmask (!%p191_p9), 195752   ;;  %vm1425_vm11 = vcmask (!%p191_p9), 220352  }
  0x13   : > { %235 = vst.msk [vmem:[#allocation2 + $0x48] sm:$0xff] (!%p191_p9), %vm224_vm0, %v3992_v0  ;;  %236 = vst.msk [vmem:[#allocation2 + $0x50] sm:$0xff] (!%p191_p9), %vm224_vm0, %v3992_v0  ;;  %vm1480_vm12 = vcmask (!%p191_p9), 220160   ;;  %vm1729_vm13 = vcmask (!%p191_p9), 261120   ;;  %vm2130_vm14 = vcmask (!%p191_p9), 254976   ;;  %vm2663_vm15 = vcmask (!%p191_p9), 1041409  }
  0x14   : > { %238 = vst.msk [vmem:[#allocation2 + $0x60] sm:$0xff] (!%p191_p9), %vm224_vm0, %v3992_v0  ;;  %239 = vst.msk [vmem:[#allocation2 + $0x68] sm:$0xff] (!%p191_p9), %vm224_vm0, %v3992_v0  ;;  %s4003_s8 = smov (!%p191_p9), 32   ;;  %s215_s7 = sand.u32 (!%p191_p9), 1, %s3982_s19  }
  0x15   : > { %240 = vst.msk [vmem:[#allocation2 + $0x70] sm:$0x3] %vm227_vm1, %v3992_v0  ;;  %243 = vst.msk [vmem:[#allocation2 + $0x88] sm:$0x3] %vm227_vm1, %v3992_v0  ;;  %s219_s30 = scalar_select %p218_p10, %s4059_s22, 1  ;;  %v409_v4 = vld [vmem:[#allocation2 + $0x1] sm:$0xff] }
  0x16   : > { %241 = vst.msk [vmem:[#allocation2 + $0x78] sm:$0xff] %vm224_vm0, %v3992_v0  ;;  %242 = vst.msk [vmem:[#allocation2 + $0x80] sm:$0xff] %vm224_vm0, %v3992_v0  ;;  %v410_v5 = vld [vmem:[#allocation2 + $0x9] sm:$0xff]  ;;  %v345_v24 = vld [vmem:[#allocation2] sm:$0xff]  ;;  %s4007_s23 = smov [#allocation6]  }
  0x17   : > { %244 = vst.msk [vmem:[#allocation2 + $0x90] sm:$0xff] %vm224_vm0, %v3992_v0  ;;  %245 = vst.msk [vmem:[#allocation2 + $0x98] sm:$0xff] %vm224_vm0, %v3992_v0  ;;  %s3734_s6 = sshll.u32 %s219_s30, 8  ;;  %v538_v6 = vld [vmem:[#allocation2 + $0x2] sm:$0xff]  ;;  %v441_v7 = vpack.c.bf16 %v410_v5, %v409_v4  ;;  %v539_v8 = vld [vmem:[#allocation2 + $0xa] sm:$0xff]  ;;  %s4001_s30 = smov 24  }
  0x18   : > { %246 = vst.msk [vmem:[#allocation2 + $0xa0] sm:$0x3] %vm227_vm1, %v3992_v0  ;;  %249 = vst.msk [vmem:[#allocation2 + $0xb8] sm:$0x3] %vm227_vm1, %v3992_v0  ;;  %s4199_s9 = scalar_lea.vmem %s5246_s0, %s3734_s6  ;;  %v570_v11 = vpack.c.bf16 %v539_v8, %v538_v6  ;;  %v346_v23 = vld [vmem:[#allocation2 + $0x8] sm:$0xff]  ;;  %v3907_v8 = vld [vmem:[%s5247_s1] sm:$0xff]  }
  0x19   : > { %247 = vst.msk [vmem:[#allocation2 + $0xa8] sm:$0xff] %vm224_vm0, %v3992_v0  ;;  %248 = vst.msk [vmem:[#allocation2 + $0xb0] sm:$0xff] %vm224_vm0, %v3992_v0  ;;  %v280_v1 = vld [vmem:[%s4199_s9] sm:$0xff]  ;;  %v281_v2 = vld [vmem:[%s4199_s9 + $0x8] sm:$0xff]  ;;  %473 = vrot.lane.b32.xlu0 %v441_v7, %s3993_s10  ;;  %v377_v30 = vpack.c.bf16 %v346_v23, %v345_v24  ;;  %3800 = vmatprep.subr.bf16.mxu0 %v3907_v8  ;;  %s3932_s25 = sshll.u32 %s4007_s23, 4  ;;  %s3933_s25 = int_to_ptr.vmem [resolvable:$false] %s3932_s25 }
  0x1a   : > { %250 = vst.msk [vmem:[#allocation2 + $0xc0] sm:$0xff] %vm224_vm0, %v3992_v0  ;;  %251 = vst.msk [vmem:[#allocation2 + $0xc8] sm:$0xff] %vm224_vm0, %v3992_v0  ;;  %v282_v3 = vld [vmem:[%s4199_s9 + $0x10] sm:$0xff]  ;;  %v283_v9 = vld [vmem:[%s4199_s9 + $0x18] sm:$0xff]  ;;  %602 = vrot.lane.b32.xlu1 %v570_v11, %s3994_s11  ;;  %3801 = vmatpush3.bf16.msra.mxu0 %v3907_v8 }
  0x1b   : > { %252 = vst.msk [vmem:[#allocation2 + $0xd0] sm:$0x3] %vm227_vm1, %v3992_v0  ;;  %255 = vst.msk [vmem:[#allocation2 + $0xe8] sm:$0x3] %vm227_vm1, %v3992_v0  ;;  %v284_v10 = vld [vmem:[%s4199_s9 + $0x20] sm:$0xff]  ;;  %v285_v12 = vld [vmem:[%s4199_s9 + $0x28] sm:$0xff] }
  0x1c   : > { %253 = vst.msk [vmem:[#allocation2 + $0xd8] sm:$0xff] %vm224_vm0, %v3992_v0  ;;  %254 = vst.msk [vmem:[#allocation2 + $0xe0] sm:$0xff] %vm224_vm0, %v3992_v0  ;;  %v286_v13 = vld [vmem:[%s4199_s9 + $0x30] sm:$0xff]  ;;  %v287_v14 = vld [vmem:[%s4199_s9 + $0x38] sm:$0xff] }
  0x1d   : > { %256 = vst.msk [vmem:[#allocation2 + $0xf0] sm:$0xff] %vm224_vm0, %v3992_v0  ;;  %257 = vst.msk [vmem:[#allocation2 + $0xf8] sm:$0xff] %vm224_vm0, %v3992_v0  ;;  %v288_v15 = vld [vmem:[%s4199_s9 + $0x40] sm:$0xff]  ;;  %v289_v16 = vld [vmem:[%s4199_s9 + $0x48] sm:$0xff] }
  0x1e   : > { %258 = vst.msk [vmem:[#allocation2 + $0x100] sm:$0x3] %vm227_vm1, %v3992_v0  ;;  %261 = vst.msk [vmem:[#allocation2 + $0x118] sm:$0x3] %vm227_vm1, %v3992_v0  ;;  %v290_v17 = vld [vmem:[%s4199_s9 + $0x50] sm:$0xff]  ;;  %v291_v18 = vld [vmem:[%s4199_s9 + $0x58] sm:$0xff] }
  0x1f   : > { %259 = vst.msk [vmem:[#allocation2 + $0x108] sm:$0xff] %vm224_vm0, %v3992_v0  ;;  %260 = vst.msk [vmem:[#allocation2 + $0x110] sm:$0xff] %vm224_vm0, %v3992_v0  ;;  %v292_v19 = vld [vmem:[%s4199_s9 + $0x60] sm:$0xff]  ;;  %v293_v20 = vld [vmem:[%s4199_s9 + $0x68] sm:$0xff] }
  0x20   : > { %262 = vst.msk [vmem:[#allocation2 + $0x120] sm:$0xff] %vm224_vm0, %v3992_v0  ;;  %263 = vst.msk [vmem:[#allocation2 + $0x128] sm:$0xff] %vm224_vm0, %v3992_v0  ;;  %v294_v21 = vld [vmem:[%s4199_s9 + $0x70] sm:$0xff]  ;;  %v295_v22 = vld [vmem:[%s4199_s9 + $0x78] sm:$0xff] }
  0x21   : > { %264 = vst.msk [vmem:[#allocation2 + $0x130] sm:$0x3] %vm227_vm1, %v3992_v0  ;;  %267 = vst.msk [vmem:[#allocation2 + $0x148] sm:$0x3] %vm227_vm1, %v3992_v0  ;;  %v296_v25 = vld [vmem:[%s4199_s9 + $0x80] sm:$0xff]  ;;  %v297_v26 = vld [vmem:[%s4199_s9 + $0x88] sm:$0xff] }
  0x22   : > { %265 = vst.msk [vmem:[#allocation2 + $0x138] sm:$0xff] %vm224_vm0, %v3992_v0  ;;  %266 = vst.msk [vmem:[#allocation2 + $0x140] sm:$0xff] %vm224_vm0, %v3992_v0  ;;  %v298_v6 = vld [vmem:[%s4199_s9 + $0x90] sm:$0xff]  ;;  %v299_v7 = vld [vmem:[%s4199_s9 + $0x98] sm:$0xff] }
  0x23   : > { %268 = vst.msk [vmem:[#allocation2 + $0x150] sm:$0xff] %vm224_vm0, %v3992_v0  ;;  %269 = vst.msk [vmem:[#allocation2 + $0x158] sm:$0xff] %vm224_vm0, %v3992_v0  ;;  %v300_v11 = vld [vmem:[%s4199_s9 + $0xa0] sm:$0xff] }
  0x24   : > { %270 = vst.msk [vmem:[#allocation2 + $0x160] sm:$0x3] %vm227_vm1, %v3992_v0  ;;  %273 = vst.msk [vmem:[#allocation2 + $0x178] sm:$0x3] %vm227_vm1, %v3992_v0 }
  0x25   : > { %271 = vst.msk [vmem:[#allocation2 + $0x168] sm:$0xff] %vm224_vm0, %v3992_v0  ;;  %272 = vst.msk [vmem:[#allocation2 + $0x170] sm:$0xff] %vm224_vm0, %v3992_v0 }
  0x26   : > { %274 = vst.msk [vmem:[#allocation2 + $0x180] sm:$0xff] %vm224_vm0, %v3992_v0  ;;  %275 = vst.msk [vmem:[#allocation2 + $0x188] sm:$0xff] %vm224_vm0, %v3992_v0 }
  0x27   : > { %276 = vst.msk [vmem:[#allocation2 + $0x190] sm:$0x3] %vm227_vm1, %v3992_v0  ;;  %279 = vst.msk [vmem:[#allocation2 + $0x1a8] sm:$0x3] %vm227_vm1, %v3992_v0  ;;  %vm2667_vm1 = vcmask 1043459  }
  0x28   : > { %277 = vst.msk [vmem:[#allocation2 + $0x198] sm:$0xff] %vm224_vm0, %v3992_v0  ;;  %278 = vst.msk [vmem:[#allocation2 + $0x1a0] sm:$0xff] %vm224_vm0, %v3992_v0 }
  0x29   : > { %313 = vst.msk [vmem:[#allocation2 + $0x19] sm:$0xff] %vm224_vm0, %v280_v1  ;;  %314 = vst.msk [vmem:[#allocation2 + $0x21] sm:$0xff] %vm224_vm0, %v281_v2 }
  0x2a   : > { %315 = vst.msk [vmem:[#allocation2 + $0x31] sm:$0xff] %vm224_vm0, %v282_v3  ;;  %316 = vst.msk [vmem:[#allocation2 + $0x39] sm:$0xff] %vm224_vm0, %v283_v9  ;;  %v3998_v9 = vmov 65535  }
  0x2b   : > { %317 = vst.msk [vmem:[#allocation2 + $0x49] sm:$0xff] %vm224_vm0, %v284_v10  ;;  %318 = vst.msk [vmem:[#allocation2 + $0x51] sm:$0xff] %vm224_vm0, %v285_v12  ;;  %v1531_v10 = vsel %vm1529_vm2, 4294967295, %v3998_v9  ;;  %v301_v12 = vld [vmem:[%s4199_s9 + $0xa8] sm:$0xff]  ;;  %vm2669_vm2 = vcmask 1044484  }
  0x2c   : > { %319 = vst.msk [vmem:[#allocation2 + $0x61] sm:$0xff] %vm224_vm0, %v286_v13  ;;  %320 = vst.msk [vmem:[#allocation2 + $0x69] sm:$0xff] %vm224_vm0, %v287_v14  ;;  %v3908_v13 = vld [vmem:[%s5247_s1 + $0x8] sm:$0x3f]   ;;  %v1532_v14 = vsel %vm1530_vm3, %v1531_v10, 0  ;;  %vm2671_vm3 = vcmask 1045509  }
  0x2d   : > { %321 = vst.msk [vmem:[#allocation2 + $0x79] sm:$0xff] %vm224_vm0, %v288_v15  ;;  %322 = vst.msk [vmem:[#allocation2 + $0x81] sm:$0xff] %vm224_vm0, %v289_v16  ;;  %v1534_v16 = vand.u32 %v3908_v13, %v1532_v14 }
  0x2e   : > { %323 = vst.msk [vmem:[#allocation2 + $0x91] sm:$0xff] %vm224_vm0, %v290_v17  ;;  %324 = vst.msk [vmem:[#allocation2 + $0x99] sm:$0xff] %vm224_vm0, %v291_v18 }
  0x2f   : > { %325 = vst.msk [vmem:[#allocation2 + $0xa9] sm:$0xff] %vm224_vm0, %v292_v19  ;;  %326 = vst.msk [vmem:[#allocation2 + $0xb1] sm:$0xff] %vm224_vm0, %v293_v20  ;;  %3802 = vmatprep.subr.bf16.mxu0 %v1534_v16 }
  0x30   : > { %327 = vst.msk [vmem:[#allocation2 + $0xc1] sm:$0xff] %vm224_vm0, %v294_v21  ;;  %328 = vst.msk [vmem:[#allocation2 + $0xc9] sm:$0xff] %vm224_vm0, %v295_v22  ;;  %v411_v27 = vld [vmem:[#allocation2 + $0x19] sm:$0xff]  ;;  %v412_v28 = vld [vmem:[#allocation2 + $0x21] sm:$0xff]  ;;  %3803 = vmatpush3.bf16.msra.mxu0 %v1534_v16 }
  0x31   : > { %v540_v29 = vld [vmem:[#allocation2 + $0x1a] sm:$0xff]  ;;  %329 = vst.msk [vmem:[#allocation2 + $0xd9] sm:$0xff] %vm224_vm0, %v296_v25  ;;  %330 = vst.msk [vmem:[#allocation2 + $0xe1] sm:$0xff] %vm224_vm0, %v297_v26  ;;  %v442_v31 = vpack.c.bf16 %v412_v28, %v411_v27  ;;  %v541_v32 = vld [vmem:[#allocation2 + $0x22] sm:$0xff] }
  0x32   : > { %v667_v33 = vld [vmem:[#allocation2 + $0x18] sm:$0xff]  ;;  %v668_v34 = vld [vmem:[#allocation2 + $0x20] sm:$0xff]  ;;  %v571_v35 = vpack.c.bf16 %v541_v32, %v540_v29  ;;  %v669_v37 = vld [vmem:[#allocation2 + $0x30] sm:$0xff]  ;;  %393 = vst.msk [vmem:[#allocation3] sm:$0xff] %vm224_vm0, %v377_v30 }
  0x33   : > { %v699_v36 = vpack.c.bf16 %v668_v34, %v667_v33  ;;  %v670_v38 = vld [vmem:[#allocation2 + $0x38] sm:$0xff]  ;;  %475 = vrot.lane.b32.xlu0 %v442_v31, %s3993_s10  ;;  %v1057_v40 = vld [vmem:[#allocation2 + $0x48] sm:$0xff]  ;;  %v1058_v41 = vld [vmem:[#allocation2 + $0x50] sm:$0xff]  ;;  %331 = vst.msk [vmem:[#allocation2 + $0xf1] sm:$0xff] %vm224_vm0, %v298_v6 }
  0x34   : > { %v700_v39 = vpack.c.bf16 %v670_v38, %v669_v37  ;;  %604 = vrot.lane.b32.xlu1 %v571_v35, %s3994_s11  ;;  %v798_v42 = vld [vmem:[#allocation2 + $0x31] sm:$0xff]  ;;  %v799_v43 = vld [vmem:[#allocation2 + $0x39] sm:$0xff]  ;;  %v4243_v44 = vpack.c.bf16 %v1058_v41, %v1057_v40  ;;  %v674_v46 = vld [vmem:[#allocation2 + $0x68] sm:$0xff]  ;;  %332 = vst.msk [vmem:[#allocation2 + $0xf9] sm:$0xff] %vm224_vm0, %v299_v7 }
  0x35   : > { %394 = vst.msk [vmem:[#allocation3 + $0x8] sm:$0xff] %vm224_vm0, %v699_v36  ;;  %v673_v45 = vld [vmem:[#allocation2 + $0x60] sm:$0xff]  ;;  %v4252_v48 = vpack.c.bf16 %v799_v43, %v798_v42  ;;  %v1061_v49 = vld [vmem:[#allocation2 + $0x78] sm:$0xff]  ;;  %v677_v54 = vld [vmem:[#allocation2 + $0x90] sm:$0xff] }
  0x36   : > { %395 = vst.msk [vmem:[#allocation3 + $0x10] sm:$0xff] %vm224_vm0, %v700_v39  ;;  %v4247_v47 = vpack.c.bf16 %v674_v46, %v673_v45  ;;  %396 = vst.msk [vmem:[#allocation3 + $0x18] sm:$0xff] %vm224_vm0, %v4243_v44  ;;  %v1062_v50 = vld [vmem:[#allocation2 + $0x80] sm:$0xff]  ;;  %v927_v51 = vld [vmem:[#allocation2 + $0x32] sm:$0xff] }
  0x37   : > { %731 = vrot.lane.b32.xlu0 %v699_v36, %s3995_s12  ;;  %v928_v52 = vld [vmem:[#allocation2 + $0x3a] sm:$0xff]  ;;  %v4254_v53 = vpack.c.bf16 %v1062_v50, %v1061_v49  ;;  %v1065_v58 = vld [vmem:[#allocation2 + $0xa8] sm:$0xff]  ;;  %v1066_v59 = vld [vmem:[#allocation2 + $0xb0] sm:$0xff]  ;;  %333 = vst.msk [vmem:[#allocation2 + $0x109] sm:$0xff] %vm224_vm0, %v300_v11 }
  0x38   : > { %733 = vrot.lane.b32.xlu1 %v700_v39, %s3995_s12  ;;  %397 = vst.msk [vmem:[#allocation3 + $0x20] sm:$0xff] %vm224_vm0, %v4247_v47  ;;  %v678_v55 = vld [vmem:[#allocation2 + $0x98] sm:$0xff]  ;;  %v4265_v57 = vpack.c.bf16 %v928_v52, %v927_v51  ;;  %v4267_v60 = vpack.c.bf16 %v1066_v59, %v1065_v58  ;;  %v681_v61 = vld [vmem:[#allocation2 + $0xc0] sm:$0xff]  ;;  %v682_v62 = vld [vmem:[#allocation2 + $0xc8] sm:$0xff] }
  0x39   : > { %v4259_v56 = vpack.c.bf16 %v678_v55, %v677_v54  ;;  %398 = vst.msk [vmem:[#allocation3 + $0x28] sm:$0xff] %vm224_vm0, %v4254_v53  ;;  %v4272_v63 = vpack.c.bf16 %v682_v62, %v681_v61  ;;  %v1069_v1 = vld [vmem:[#allocation2 + $0xd8] sm:$0xff]  ;;  %v1070_v2 = vld [vmem:[#allocation2 + $0xe0] sm:$0xff]  ;;  %v1186_v3 = vld [vmem:[#allocation2 + $0x49] sm:$0xff] }
  0x3a   : > { %400 = vst.msk [vmem:[#allocation3 + $0x38] sm:$0xff] %vm224_vm0, %v4267_v60  ;;  %v1187_v4 = vld [vmem:[#allocation2 + $0x51] sm:$0xff]  ;;  %v4278_v5 = vpack.c.bf16 %v1070_v2, %v1069_v1  ;;  %334 = vst.msk [vmem:[#allocation2 + $0x111] sm:$0xff] %vm224_vm0, %v301_v12  ;;  %v802_v28 = vld [vmem:[#allocation2 + $0x61] sm:$0xff] }
  0x3b   : > { %860 = vrot.lane.b32.xlu0 %v442_v31, %s3996_s13  ;;  %399 = vst.msk [vmem:[#allocation3 + $0x30] sm:$0xff] %vm224_vm0, %v4259_v56  ;;  %401 = vst.msk [vmem:[#allocation3 + $0x40] sm:$0xff] %vm224_vm0, %v4272_v63  ;;  %v1217_v15 = vpack.c.bf16 %v1187_v4, %v1186_v3  ;;  %v1315_v17 = vld [vmem:[#allocation2 + $0x4a] sm:$0xff]  ;;  %v1316_v18 = vld [vmem:[#allocation2 + $0x52] sm:$0xff] }
  0x3c   : > { %862 = vrot.lane.b32.xlu1 %v4252_v48, %s3996_s13  ;;  %402 = vst.msk [vmem:[#allocation3 + $0x48] sm:$0xff] %vm224_vm0, %v4278_v5  ;;  %v685_v19 = vld [vmem:[#allocation2 + $0xf0] sm:$0xff]  ;;  %v686_v20 = vld [vmem:[#allocation2 + $0xf8] sm:$0xff]  ;;  %v1346_v21 = vpack.c.bf16 %v1316_v18, %v1315_v17  ;;  %v931_v34 = vld [vmem:[#allocation2 + $0x62] sm:$0xff] }
  0x3d   : > { %v4306_v22 = vpack.c.bf16 %v686_v20, %v685_v19  ;;  %v302_v26 = vld [vmem:[%s4199_s9 + $0xb0] sm:$0xff]  ;;  %v303_v27 = vld [vmem:[%s4199_s9 + $0xb8] sm:$0xff]  ;;  %v304_v36 = vld [vmem:[%s4199_s9 + $0xc0] sm:$0xff]  ;;  %2579 = vst.msk [vmem:[#allocation4] sm:$0xff] %vm1729_vm13, %v3992_v0 }
  0x3e   : > { %v1073_v23 = vld [vmem:[#allocation2 + $0x108] sm:$0xff]  ;;  %335 = vst.msk [vmem:[#allocation2 + $0x121] sm:$0xff] %vm224_vm0, %v302_v26  ;;  %336 = vst.msk [vmem:[#allocation2 + $0x129] sm:$0xff] %vm224_vm0, %v303_v27  ;;  %v1319_v45 = vld [vmem:[#allocation2 + $0x7a] sm:$0xff] }
  0x3f   : > { %989 = vrot.lane.b32.xlu0 %v571_v35, %s3997_s14  ;;  %403 = vst.msk [vmem:[#allocation3 + $0x50] sm:$0xff] %vm224_vm0, %v4306_v22  ;;  %v803_v29 = vld [vmem:[#allocation2 + $0x69] sm:$0xff]  ;;  %337 = vst.msk [vmem:[#allocation2 + $0x139] sm:$0xff] %vm224_vm0, %v304_v36  ;;  %v1191_v40 = vld [vmem:[#allocation2 + $0x81] sm:$0xff] }
  0x40   : > { %991 = vrot.lane.b32.xlu1 %v4265_v57, %s3997_s14  ;;  %v831_v33 = vpack.c.bf16 %v803_v29, %v802_v28  ;;  %v932_v35 = vld [vmem:[#allocation2 + $0x6a] sm:$0xff]  ;;  %v1320_v46 = vld [vmem:[#allocation2 + $0x82] sm:$0xff]  ;;  %v307_v49 = vld [vmem:[%s4199_s9 + $0xd8] sm:$0xff]  ;;  %2581 = vst.msk [vmem:[#allocation4 + $0x10] sm:$0xff] %vm1729_vm13, %v3992_v0 }
  0x41   : > { %v1074_v24 = vld [vmem:[#allocation2 + $0x110] sm:$0xff]  ;;  %v305_v37 = vld [vmem:[%s4199_s9 + $0xc8] sm:$0xff]  ;;  %v960_v38 = vpack.c.bf16 %v932_v35, %v931_v34  ;;  %340 = vst.msk [vmem:[#allocation2 + $0x159] sm:$0xff] %vm224_vm0, %v307_v49  ;;  %v807_v51 = vld [vmem:[#allocation2 + $0x99] sm:$0xff] }
  0x42   : > { %v4310_v25 = vpack.c.bf16 %v1074_v24, %v1073_v23  ;;  %338 = vst.msk [vmem:[#allocation2 + $0x141] sm:$0xff] %vm224_vm0, %v305_v37  ;;  %v806_v50 = vld [vmem:[#allocation2 + $0x91] sm:$0xff]  ;;  %v936_v59 = vld [vmem:[#allocation2 + $0x9a] sm:$0xff]  ;;  %v309_v62 = vld [vmem:[%s4199_s9 + $0xe8] sm:$0xff] }
  0x43   : > { %1119 = vrot.lane.b32.xlu0 %v700_v39, %s3999_s17  ;;  %v1190_v39 = vld [vmem:[#allocation2 + $0x79] sm:$0xff]  ;;  %342 = vst.msk [vmem:[#allocation2 + $0x171] sm:$0xff] %vm224_vm0, %v309_v62  ;;  %v1194_v1 = vld [vmem:[#allocation2 + $0xa9] sm:$0xff]  ;;  %v1195_v2 = vld [vmem:[#allocation2 + $0xb1] sm:$0xff] }
  0x44   : > { %1121 = vrot.lane.b32.xlu1 %v4243_v44, %s3999_s17  ;;  %404 = vst.msk [vmem:[#allocation3 + $0x58] sm:$0xff] %vm224_vm0, %v4310_v25  ;;  %v935_v58 = vld [vmem:[#allocation2 + $0x92] sm:$0xff]  ;;  %v308_v61 = vld [vmem:[%s4199_s9 + $0xe0] sm:$0xff]  ;;  %v1221_v7 = vpack.c.bf16 %v1195_v2, %v1194_v1  ;;  %v1323_v8 = vld [vmem:[#allocation2 + $0xaa] sm:$0xff] }
  0x45   : > { %v689_v30 = vld [vmem:[#allocation2 + $0x120] sm:$0xff]  ;;  %v690_v31 = vld [vmem:[#allocation2 + $0x128] sm:$0xff]  ;;  %341 = vst.msk [vmem:[#allocation2 + $0x169] sm:$0xff] %vm224_vm0, %v308_v61  ;;  %v1324_v9 = vld [vmem:[#allocation2 + $0xb2] sm:$0xff] }
  0x46   : > { %v4327_v32 = vpack.c.bf16 %v690_v31, %v689_v30  ;;  %v1077_v41 = vld [vmem:[#allocation2 + $0x138] sm:$0xff]  ;;  %v1350_v10 = vpack.c.bf16 %v1324_v9, %v1323_v8  ;;  %v810_v12 = vld [vmem:[#allocation2 + $0xc1] sm:$0xff]  ;;  %v811_v13 = vld [vmem:[#allocation2 + $0xc9] sm:$0xff]  ;;  %2583 = vst.msk [vmem:[#allocation4 + $0x20] sm:$0xff] %vm1729_vm13, %v3992_v0 }
  0x47   : > { %1248 = vrot.lane.b32.xlu0 %v4252_v48, %s4000_s26  ;;  %v311_v11 = vld [vmem:[%s4199_s9 + $0xf8] sm:$0xff]  ;;  %v835_v14 = vpack.c.bf16 %v811_v13, %v810_v12  ;;  %v940_v16 = vld [vmem:[#allocation2 + $0xca] sm:$0xff]  ;;  %v1199_v20 = vld [vmem:[#allocation2 + $0xe1] sm:$0xff]  ;;  %2585 = vst.msk [vmem:[#allocation4 + $0x30] sm:$0xff] %vm1729_vm13, %v3992_v0 }
  0x48   : > { %1250 = vrot.lane.b32.xlu1 %v1217_v15, %s4000_s26  ;;  %405 = vst.msk [vmem:[#allocation3 + $0x60] sm:$0xff] %vm224_vm0, %v4327_v32  ;;  %344 = vst.msk [vmem:[#allocation2 + $0x189] sm:$0xff] %vm224_vm0, %v311_v11  ;;  %v1327_v26 = vld [vmem:[#allocation2 + $0xda] sm:$0xff]  ;;  %v1328_v27 = vld [vmem:[#allocation2 + $0xe2] sm:$0xff] }
  0x49   : > { %v1078_v42 = vld [vmem:[#allocation2 + $0x140] sm:$0xff]  ;;  %v1352_v29 = vpack.c.bf16 %v1328_v27, %v1327_v26  ;;  %v814_v36 = vld [vmem:[#allocation2 + $0xf1] sm:$0xff]  ;;  %v819_v9 = vld [vmem:[#allocation2 + $0x129] sm:$0xff]  ;;  %2587 = vst.msk [vmem:[#allocation4 + $0x40] sm:$0xff] %vm1729_vm13, %v3992_v0 }
  0x4a   : > { %v4343_v43 = vpack.c.bf16 %v1078_v42, %v1077_v41  ;;  %v815_v37 = vld [vmem:[#allocation2 + $0xf9] sm:$0xff]  ;;  %v1203_v49 = vld [vmem:[#allocation2 + $0x111] sm:$0xff]  ;;  %v818_v8 = vld [vmem:[#allocation2 + $0x121] sm:$0xff]  ;;  %2589 = vst.msk [vmem:[#allocation4 + $0x50] sm:$0xff] %vm1729_vm13, %v3992_v0 }
  0x4b   : > { %1377 = vrot.lane.b32.xlu0 %v4265_v57, %s4001_s30  ;;  %v943_v41 = vld [vmem:[#allocation2 + $0xf2] sm:$0xff]  ;;  %v944_v42 = vld [vmem:[#allocation2 + $0xfa] sm:$0xff]  ;;  %v947_v12 = vld [vmem:[#allocation2 + $0x122] sm:$0xff]  ;;  %2591 = vst.msk [vmem:[#allocation4 + $0x60] sm:$0xff] %vm1729_vm13, %v3992_v0 }
  0x4c   : > { %477 = vrot.lane.b32.xlu1 %v4252_v48, %s3993_s10  ;;  %406 = vst.msk [vmem:[#allocation3 + $0x68] sm:$0xff] %vm224_vm0, %v4343_v43  ;;  %v1348_v48 = vpack.c.bf16 %v1320_v46, %v1319_v45  ;;  %v1081_v3 = vld [vmem:[#allocation2 + $0x168] sm:$0xff]  ;;  %v1082_v4 = vld [vmem:[#allocation2 + $0x170] sm:$0xff]  ;;  %v966_v45 = vpack.c.bf16 %v944_v42, %v943_v41  ;;  %v1335_v26 = vld [vmem:[#allocation2 + $0x13a] sm:$0xff] }
  0x4d   : > { %v4379_v6 = vpack.c.bf16 %v1082_v4, %v1081_v3  ;;  %v948_v13 = vld [vmem:[#allocation2 + $0x12a] sm:$0xff]  ;;  %v1336_v27 = vld [vmem:[#allocation2 + $0x142] sm:$0xff]  ;;  %v952_v42 = vld [vmem:[#allocation2 + $0x15a] sm:$0xff]  ;;  %2593 = vst.msk [vmem:[#allocation4 + $0x70] sm:$0xff] %vm1729_vm13, %v3992_v0 }
  0x4e   : > { %2595 = vst.msk [vmem:[#allocation4 + $0x80] sm:$0xff] %vm1729_vm13, %v3992_v0  ;;  %2597 = vst.msk [vmem:[#allocation4 + $0x90] sm:$0xff] %vm1729_vm13, %v3992_v0 }
  0x4f   : > { %1379 = vrot.lane.b32.xlu0 %v1346_v21, %s4001_s30  ;;  %408 = vst.msk [vmem:[#allocation3 + $0x78] sm:$0xff] %vm224_vm0, %v4379_v6 }
  0x50   : > { %479 = vrot.lane.b32.xlu1 %v1217_v15, %s3993_s10  ;;  %2580 = vst.msk [vmem:[#allocation4 + $0x8] sm:$0x3] %vm2130_vm14, %v3992_v0  ;;  %2582 = vst.msk [vmem:[#allocation4 + $0x18] sm:$0x3] %vm2130_vm14, %v3992_v0 }
  0x51   : > { %2584 = vst.msk [vmem:[#allocation4 + $0x28] sm:$0x3] %vm2130_vm14, %v3992_v0  ;;  %2586 = vst.msk [vmem:[#allocation4 + $0x38] sm:$0x3] %vm2130_vm14, %v3992_v0 }
  0x52   : > { %2588 = vst.msk [vmem:[#allocation4 + $0x48] sm:$0x3] %vm2130_vm14, %v3992_v0  ;;  %2590 = vst.msk [vmem:[#allocation4 + $0x58] sm:$0x3] %vm2130_vm14, %v3992_v0 }
  0x53   : > { %606 = vrot.lane.b32.xlu0 %v4265_v57, %s3994_s11  ;;  %v833_v57 = vpack.c.bf16 %v807_v51, %v806_v50  ;;  %2592 = vst.msk [vmem:[#allocation4 + $0x68] sm:$0x3] %vm2130_vm14, %v3992_v0  ;;  %2594 = vst.msk [vmem:[#allocation4 + $0x78] sm:$0x3] %vm2130_vm14, %v3992_v0 }
  0x54   : > { %608 = vrot.lane.b32.xlu1 %v1346_v21, %s3994_s11  ;;  %2596 = vst.msk [vmem:[#allocation4 + $0x88] sm:$0x3] %vm2130_vm14, %v3992_v0  ;;  %2598 = vst.msk [vmem:[#allocation4 + $0x98] sm:$0x3] %vm2130_vm14, %v3992_v0 }
  0x57   : > { %735 = vrot.lane.b32.xlu0 %v4243_v44, %s3995_s12  ;;  %v1219_v44 = vpack.c.bf16 %v1191_v40, %v1190_v39  ;;  %v837_v39 = vpack.c.bf16 %v815_v37, %v814_v36  ;;  %v823_v37 = vld [vmem:[#allocation2 + $0x159] sm:$0xff] }
  0x58   : > { %737 = vrot.lane.b32.xlu1 %v4247_v47, %s3995_s12 }
  0x5b   : > { %864 = vrot.lane.b32.xlu0 %v1217_v15, %s3996_s13  ;;  %v939_v15 = vld [vmem:[#allocation2 + $0xc2] sm:$0xff] }
  0x5c   : > { %866 = vrot.lane.b32.xlu1 %v831_v33, %s3996_s13  ;;  %v964_v17 = vpack.c.bf16 %v940_v16, %v939_v15  ;;  %v968_v15 = vpack.c.bf16 %v948_v13, %v947_v12 }
  0x5f   : > { %993 = vrot.lane.b32.xlu0 %v1346_v21, %s3997_s14 }
  0x60   : > { %995 = vrot.lane.b32.xlu1 %v960_v38, %s3997_s14 }
  0x63   : > { %1123 = vrot.lane.b32.xlu0 %v4247_v47, %s3999_s17  ;;  %v306_v47 = vld [vmem:[%s4199_s9 + $0xd0] sm:$0xff] }
  0x64   : > { %1125 = vrot.lane.b32.xlu1 %v4254_v53, %s3999_s17  ;;  %339 = vst.msk [vmem:[#allocation2 + $0x151] sm:$0xff] %vm224_vm0, %v306_v47  ;;  %v1202_v47 = vld [vmem:[#allocation2 + $0x109] sm:$0xff] }
  0x65   : > { %v1225_v51 = vpack.c.bf16 %v1203_v49, %v1202_v47  ;;  %v1211_v47 = vld [vmem:[#allocation2 + $0x171] sm:$0xff] }
  0x67   : > { %1252 = vrot.lane.b32.xlu0 %v831_v33, %s4000_s26 }
  0x68   : > { %1254 = vrot.lane.b32.xlu1 %v1219_v44, %s4000_s26 }
  0x6b   : > { %1381 = vrot.lane.b32.xlu0 %v960_v38, %s4001_s30  ;;  %v693_v52 = vld [vmem:[#allocation2 + $0x150] sm:$0xff]  ;;  %v694_v54 = vld [vmem:[#allocation2 + $0x158] sm:$0xff] }
  0x6c   : > { %481 = vrot.lane.b32.xlu1 %v831_v33, %s3993_s10  ;;  %v4361_v55 = vpack.c.bf16 %v694_v54, %v693_v52  ;;  %v822_v36 = vld [vmem:[#allocation2 + $0x151] sm:$0xff] }
  0x6d   : > { %v951_v41 = vld [vmem:[#allocation2 + $0x152] sm:$0xff] }
  0x6e   : > { %407 = vst.msk [vmem:[#allocation3 + $0x70] sm:$0xff] %vm224_vm0, %v4361_v55 }
  0x6f   : > { %1383 = vrot.lane.b32.xlu0 %v1348_v48, %s4001_s30 }
  0x70   : > { %483 = vrot.lane.b32.xlu1 %v1219_v44, %s3993_s10 }
  0x73   : > { %610 = vrot.lane.b32.xlu0 %v960_v38, %s3994_s11 }
  0x74   : > { %612 = vrot.lane.b32.xlu1 %v1348_v48, %s3994_s11 }
  0x77   : > { %739 = vrot.lane.b32.xlu0 %v4254_v53, %s3995_s12  ;;  %v962_v53 = vpack.c.bf16 %v936_v59, %v935_v58  ;;  %v1331_v58 = vld [vmem:[#allocation2 + $0x10a] sm:$0xff] }
  0x78   : > { %741 = vrot.lane.b32.xlu1 %v4259_v56, %s3995_s12 }
  0x7b   : > { %868 = vrot.lane.b32.xlu0 %v1219_v44, %s3996_s13 }
  0x7c   : > { %870 = vrot.lane.b32.xlu1 %v833_v57, %s3996_s13 }
  0x7f   : > { %997 = vrot.lane.b32.xlu0 %v1348_v48, %s3997_s14 }
  0x80   : > { %999 = vrot.lane.b32.xlu1 %v962_v53, %s3997_s14 }
  0x83   : > { %1127 = vrot.lane.b32.xlu0 %v4259_v56, %s3999_s17  ;;  %v310_v56 = vld [vmem:[%s4199_s9 + $0xf0] sm:$0xff]  ;;  %s4004_s9 = smov 64  }
  0x84   : > { %1129 = vrot.lane.b32.xlu1 %v4267_v60, %s3999_s17  ;;  %343 = vst.msk [vmem:[#allocation2 + $0x181] sm:$0xff] %vm224_vm0, %v310_v56  ;;  %v839_v56 = vpack.c.bf16 %v819_v9, %v818_v8  ;;  %vm2665_vm0 = vcmask 1042434  }
  0x87   : > { %1256 = vrot.lane.b32.xlu0 %v833_v57, %s4000_s26 }
  0x88   : > { %1258 = vrot.lane.b32.xlu1 %v1221_v7, %s4000_s26 }
  0x8b   : > { %1385 = vrot.lane.b32.xlu0 %v962_v53, %s4001_s30  ;;  %v474_v18 = vpop.permute.xlu0 %473  ;;  %v826_v9 = vld [vmem:[#allocation2 + $0x181] sm:$0xff] }
  0x8c   : > { %485 = vrot.lane.b32.xlu1 %v833_v57, %s3993_s10  ;;  %522 = vst.msk [vmem:[#allocation3] sm:$0xff] %vm521_vm4, %v474_v18  ;;  %v603_v19 = vpop.permute.xlu1 %602  ;;  %v1206_v18 = vld [vmem:[#allocation2 + $0x139] sm:$0xff]  ;;  %v955_v13 = vld [vmem:[#allocation2 + $0x182] sm:$0xff] }
  0x8d   : > { %651 = vst.msk [vmem:[#allocation3] sm:$0xff] %vm650_vm5, %v603_v19  ;;  %v1207_v19 = vld [vmem:[#allocation2 + $0x141] sm:$0xff] }
  0x8f   : > { %1387 = vrot.lane.b32.xlu0 %v1350_v10, %s4001_s30 }
  0x90   : > { %487 = vrot.lane.b32.xlu1 %v1221_v7, %s3993_s10 }
  0x93   : > { %614 = vrot.lane.b32.xlu0 %v962_v53, %s3994_s11 }
  0x94   : > { %616 = vrot.lane.b32.xlu1 %v1350_v10, %s3994_s11 }
  0x97   : > { %743 = vrot.lane.b32.xlu0 %v4267_v60, %s3995_s12  ;;  %v1198_v60 = vld [vmem:[#allocation2 + $0xd9] sm:$0xff] }
  0x98   : > { %745 = vrot.lane.b32.xlu1 %v4272_v63, %s3995_s12  ;;  %v1223_v21 = vpack.c.bf16 %v1199_v20, %v1198_v60  ;;  %v1227_v20 = vpack.c.bf16 %v1207_v19, %v1206_v18  ;;  %v1086_v18 = vld [vmem:[#allocation2 + $0x1a0] sm:$0xff] }
  0x9b   : > { %872 = vrot.lane.b32.xlu0 %v1221_v7, %s3996_s13 }
  0x9c   : > { %874 = vrot.lane.b32.xlu1 %v835_v14, %s3996_s13 }
  0x9f   : > { %1001 = vrot.lane.b32.xlu0 %v1350_v10, %s3997_s14 }
  0xa0   : > { %1003 = vrot.lane.b32.xlu1 %v964_v17, %s3997_s14 }
  0xa3   : > { %1131 = vrot.lane.b32.xlu0 %v4272_v63, %s3999_s17 }
  0xa4   : > { %1133 = vrot.lane.b32.xlu1 %v4278_v5, %s3999_s17 }
  0xa5   : > { %v476_v23 = vpop.permute.xlu0 %475 }
  0xa6   : > { %523 = vst.msk [vmem:[#allocation3 + $0x8] sm:$0xff] %vm521_vm4, %v476_v23  ;;  %v605_v24 = vpop.permute.xlu1 %604 }
  0xa7   : > { %652 = vst.msk [vmem:[#allocation3 + $0x8] sm:$0xff] %vm650_vm5, %v605_v24  ;;  %1260 = vrot.lane.b32.xlu0 %v835_v14, %s4000_s26 }
  0xa8   : > { %1262 = vrot.lane.b32.xlu1 %v1223_v21, %s4000_s26 }
  0xa9   : > { %v732_v28 = vpop.permute.xlu0 %731 }
  0xaa   : > { %780 = vst.msk [vmem:[#allocation3] sm:$0xff] %vm779_vm6, %v732_v28  ;;  %v734_v63 = vpop.permute.xlu1 %733 }
  0xab   : > { %781 = vst.msk [vmem:[#allocation3 + $0x8] sm:$0xff] %vm779_vm6, %v734_v63  ;;  %1389 = vrot.lane.b32.xlu0 %v964_v17, %s4001_s30 }
  0xac   : > { %489 = vrot.lane.b32.xlu1 %v835_v14, %s3993_s10 }
  0xad   : > { %v861_v30 = vpop.permute.xlu0 %860 }
  0xae   : > { %909 = vst.msk [vmem:[#allocation3] sm:$0xff] %vm908_vm7, %v861_v30  ;;  %v863_v31 = vpop.permute.xlu1 %862 }
  0xaf   : > { %910 = vst.msk [vmem:[#allocation3 + $0x8] sm:$0xff] %vm908_vm7, %v863_v31  ;;  %1391 = vrot.lane.b32.xlu0 %v1352_v29, %s4001_s30 }
  0xb0   : > { %491 = vrot.lane.b32.xlu1 %v1223_v21, %s3993_s10 }
  0xb1   : > { %v990_v33 = vpop.permute.xlu0 %989 }
  0xb2   : > { %1038 = vst.msk [vmem:[#allocation3] sm:$0xff] %vm1037_vm8, %v990_v33  ;;  %v992_v34 = vpop.permute.xlu1 %991 }
  0xb3   : > { %1039 = vst.msk [vmem:[#allocation3 + $0x8] sm:$0xff] %vm1037_vm8, %v992_v34  ;;  %618 = vrot.lane.b32.xlu0 %v964_v17, %s3994_s11 }
  0xb4   : > { %620 = vrot.lane.b32.xlu1 %v1352_v29, %s3994_s11 }
  0xb5   : > { %v1120_v35 = vpop.permute.xlu0 %1119 }
  0xb6   : > { %1168 = vst.msk [vmem:[#allocation3] sm:$0xff] %vm1167_vm9, %v1120_v35  ;;  %v1122_v38 = vpop.permute.xlu1 %1121 }
  0xb7   : > { %1169 = vst.msk [vmem:[#allocation3 + $0x8] sm:$0xff] %vm1167_vm9, %v1122_v38  ;;  %747 = vrot.lane.b32.xlu0 %v4278_v5, %s3995_s12 }
  0xb8   : > { %749 = vrot.lane.b32.xlu1 %v4306_v22, %s3995_s12 }
  0xb9   : > { %v1249_v40 = vpop.permute.xlu0 %1248 }
  0xba   : > { %1297 = vst.msk [vmem:[#allocation3] sm:$0xff] %vm1296_vm10, %v1249_v40  ;;  %v1251_v44 = vpop.permute.xlu1 %1250 }
  0xbb   : > { %1298 = vst.msk [vmem:[#allocation3 + $0x8] sm:$0xff] %vm1296_vm10, %v1251_v44  ;;  %876 = vrot.lane.b32.xlu0 %v1223_v21, %s3996_s13 }
  0xbc   : > { %878 = vrot.lane.b32.xlu1 %v837_v39, %s3996_s13 }
  0xbd   : > { %v1378_v5 = vpop.permute.xlu0 %1377 }
  0xbe   : > { %1426 = vst.msk [vmem:[#allocation3] sm:$0xff] %vm1425_vm11, %v1378_v5  ;;  %v478_v46 = vpop.permute.xlu1 %477 }
  0xbf   : > { %524 = vst.msk [vmem:[#allocation3 + $0x10] sm:$0xff] %vm521_vm4, %v478_v46  ;;  %1005 = vrot.lane.b32.xlu0 %v1352_v29, %s3997_s14  ;;  %v1356_v29 = vpack.c.bf16 %v1336_v27, %v1335_v26 }
  0xc0   : > { %1007 = vrot.lane.b32.xlu1 %v966_v45, %s3997_s14 }
  0xc1   : > { %v1380_v48 = vpop.permute.xlu0 %1379 }
  0xc2   : > { %1427 = vst.msk [vmem:[#allocation3 + $0x8] sm:$0xff] %vm1425_vm11, %v1380_v48  ;;  %v480_v50 = vpop.permute.xlu1 %479  ;;  %v1210_v48 = vld [vmem:[#allocation2 + $0x169] sm:$0xff] }
  0xc3   : > { %525 = vst.msk [vmem:[#allocation3 + $0x18] sm:$0xff] %vm521_vm4, %v480_v50  ;;  %1135 = vrot.lane.b32.xlu0 %v4306_v22, %s3999_s17  ;;  %v1332_v22 = vld [vmem:[#allocation2 + $0x112] sm:$0xff]  ;;  %v1229_v50 = vpack.c.bf16 %v1211_v47, %v1210_v48 }
  0xc4   : > { %1137 = vrot.lane.b32.xlu1 %v4310_v25, %s3999_s17  ;;  %v1354_v53 = vpack.c.bf16 %v1332_v22, %v1331_v58  ;;  %v1340_v58 = vld [vmem:[#allocation2 + $0x172] sm:$0xff] }
  0xc5   : > { %v607_v52 = vpop.permute.xlu0 %606  ;;  %v1442_v54 = vld [vmem:[#allocation3] sm:$0xff] }
  0xc6   : > { %653 = vst.msk [vmem:[#allocation3 + $0x10] sm:$0xff] %vm650_vm5, %v607_v52  ;;  %v609_v57 = vpop.permute.xlu1 %608  ;;  %3804 = vmatprep.mubr.msk.bf16.mxu0 %vm1480_vm12, %v1442_v54 }
  0xc7   : > { %654 = vst.msk [vmem:[#allocation3 + $0x18] sm:$0xff] %vm650_vm5, %v609_v57  ;;  %1264 = vrot.lane.b32.xlu0 %v837_v39, %s4000_s26  ;;  %v1339_v57 = vld [vmem:[#allocation2 + $0x16a] sm:$0xff] }
  0xc8   : > { %1266 = vrot.lane.b32.xlu1 %v1225_v51, %s4000_s26 }
  0xc9   : > { %v736_v59 = vpop.permute.xlu0 %735  ;;  %v1443_v61 = vld [vmem:[#allocation3 + $0x8] sm:$0xff] }
  0xca   : > { %782 = vst.msk [vmem:[#allocation3 + $0x10] sm:$0xff] %vm779_vm6, %v736_v59  ;;  %v738_v62 = vpop.permute.xlu1 %737  ;;  %3805 = vmatmul.mubr.msk.bf16.vlgmr.msra.gmra.mrb[0].mxu0 %vm1480_vm12, %v1443_v61  ;;  %v1358_v61 = vpack.c.bf16 %v1340_v58, %v1339_v57 }
  0xcb   : > { %783 = vst.msk [vmem:[#allocation3 + $0x18] sm:$0xff] %vm779_vm6, %v738_v62  ;;  %1393 = vrot.lane.b32.xlu0 %v966_v45, %s4001_s30 }
  0xcc   : > { %493 = vrot.lane.b32.xlu1 %v837_v39, %s3993_s10  ;;  %v841_v39 = vpack.c.bf16 %v823_v37, %v822_v36 }
  0xcd   : > { %v865_v1 = vpop.permute.xlu0 %864 }
  0xce   : > { %911 = vst.msk [vmem:[#allocation3 + $0x10] sm:$0xff] %vm908_vm7, %v865_v1  ;;  %v867_v2 = vpop.permute.xlu1 %866 }
  0xcf   : > { %912 = vst.msk [vmem:[#allocation3 + $0x18] sm:$0xff] %vm908_vm7, %v867_v2  ;;  %1395 = vrot.lane.b32.xlu0 %v1354_v53, %s4001_s30  ;;  %v697_v2 = vld [vmem:[#allocation2 + $0x180] sm:$0xff] }
  0xd0   : > { %495 = vrot.lane.b32.xlu1 %v1225_v51, %s3993_s10 }
  0xd1   : > { %v994_v3 = vpop.permute.xlu0 %993 }
  0xd2   : > { %1040 = vst.msk [vmem:[#allocation3 + $0x10] sm:$0xff] %vm1037_vm8, %v994_v3  ;;  %v996_v4 = vpop.permute.xlu1 %995  ;;  %v698_v3 = vld [vmem:[#allocation2 + $0x188] sm:$0xff] }
  0xd3   : > { %1041 = vst.msk [vmem:[#allocation3 + $0x18] sm:$0xff] %vm1037_vm8, %v996_v4  ;;  %622 = vrot.lane.b32.xlu0 %v966_v45, %s3994_s11  ;;  %v970_v45 = vpack.c.bf16 %v952_v42, %v951_v41 }
  0xd4   : > { %624 = vrot.lane.b32.xlu1 %v1354_v53, %s3994_s11 }
  0xd5   : > { %v1124_v7 = vpop.permute.xlu0 %1123 }
  0xd6   : > { %1170 = vst.msk [vmem:[#allocation3 + $0x10] sm:$0xff] %vm1167_vm9, %v1124_v7  ;;  %v1126_v10 = vpop.permute.xlu1 %1125  ;;  %v714_v7 = vpack.c.bf16 %v698_v3, %v697_v2 }
  0xd7   : > { %1171 = vst.msk [vmem:[#allocation3 + $0x18] sm:$0xff] %vm1167_vm9, %v1126_v10  ;;  %751 = vrot.lane.b32.xlu0 %v4310_v25, %s3995_s12  ;;  %v827_v10 = vld [vmem:[#allocation2 + $0x189] sm:$0xff] }
  0xd8   : > { %753 = vrot.lane.b32.xlu1 %v4327_v32, %s3995_s12 }
  0xd9   : > { %v1253_v11 = vpop.permute.xlu0 %1252 }
  0xda   : > { %1299 = vst.msk [vmem:[#allocation3 + $0x10] sm:$0xff] %vm1296_vm10, %v1253_v11  ;;  %v1255_v14 = vpop.permute.xlu1 %1254  ;;  %v843_v11 = vpack.c.bf16 %v827_v10, %v826_v9 }
  0xdb   : > { %1300 = vst.msk [vmem:[#allocation3 + $0x18] sm:$0xff] %vm1296_vm10, %v1255_v14  ;;  %880 = vrot.lane.b32.xlu0 %v1225_v51, %s3996_s13  ;;  %v956_v14 = vld [vmem:[#allocation2 + $0x18a] sm:$0xff] }
  0xdc   : > { %882 = vrot.lane.b32.xlu1 %v839_v56, %s3996_s13 }
  0xdd   : > { %v1382_v16 = vpop.permute.xlu0 %1381 }
  0xde   : > { %1428 = vst.msk [vmem:[#allocation3 + $0x10] sm:$0xff] %vm1425_vm11, %v1382_v16  ;;  %v482_v25 = vpop.permute.xlu1 %481  ;;  %v972_v16 = vpack.c.bf16 %v956_v14, %v955_v13 }
  0xdf   : > { %526 = vst.msk [vmem:[#allocation3 + $0x20] sm:$0xff] %vm521_vm4, %v482_v25  ;;  %1009 = vrot.lane.b32.xlu0 %v1354_v53, %s3997_s14 }
  0xe0   : > { %1011 = vrot.lane.b32.xlu1 %v968_v15, %s3997_s14 }
  0xe1   : > { %v1384_v17 = vpop.permute.xlu0 %1383 }
  0xe2   : > { %1429 = vst.msk [vmem:[#allocation3 + $0x18] sm:$0xff] %vm1425_vm11, %v1384_v17  ;;  %v484_v60 = vpop.permute.xlu1 %483  ;;  %v1085_v17 = vld [vmem:[#allocation2 + $0x198] sm:$0xff] }
  0xe3   : > { %527 = vst.msk [vmem:[#allocation3 + $0x28] sm:$0xff] %vm521_vm4, %v484_v60  ;;  %1139 = vrot.lane.b32.xlu0 %v4327_v32, %s3999_s17  ;;  %v1102_v19 = vpack.c.bf16 %v1086_v18, %v1085_v17 }
  0xe4   : > { %1141 = vrot.lane.b32.xlu1 %v4343_v43, %s3999_s17 }
  0xe5   : > { %v611_v21 = vpop.permute.xlu0 %610  ;;  %v1444_v23 = vld [vmem:[#allocation3 + $0x10] sm:$0xff] }
  0xe6   : > { %655 = vst.msk [vmem:[#allocation3 + $0x20] sm:$0xff] %vm650_vm5, %v611_v21  ;;  %v613_v24 = vpop.permute.xlu1 %612  ;;  %3808 = vmatprep.mubr.msk.bf16.mxu0 %vm1480_vm12, %v1444_v23  ;;  %v1215_v21 = vld [vmem:[#allocation2 + $0x1a1] sm:$0xff] }
  0xe7   : > { %656 = vst.msk [vmem:[#allocation3 + $0x28] sm:$0xff] %vm650_vm5, %v613_v24  ;;  %1268 = vrot.lane.b32.xlu0 %v839_v56, %s4000_s26 }
  0xe8   : > { %1270 = vrot.lane.b32.xlu1 %v1227_v20, %s4000_s26 }
  0xe9   : > { %v740_v32 = vpop.permute.xlu0 %739  ;;  %v1445_v28 = vld [vmem:[#allocation3 + $0x18] sm:$0xff] }
  0xea   : > { %784 = vst.msk [vmem:[#allocation3 + $0x20] sm:$0xff] %vm779_vm6, %v740_v32  ;;  %v742_v63 = vpop.permute.xlu1 %741  ;;  %3809 = vmatmul.mubr.msk.bf16.gmra.mrb[4].mxu0 %vm1480_vm12, %v1445_v28  ;;  %v1343_v32 = vld [vmem:[#allocation2 + $0x19a] sm:$0xff]  ;;  %v1344_v28 = vld [vmem:[#allocation2 + $0x1a2] sm:$0xff] }
  0xeb   : > { %785 = vst.msk [vmem:[#allocation3 + $0x28] sm:$0xff] %vm779_vm6, %v742_v63  ;;  %1397 = vrot.lane.b32.xlu0 %v968_v15, %s4001_s30 }
  0xec   : > { %497 = vrot.lane.b32.xlu1 %v839_v56, %s3993_s10 }
  0xed   : > { %v869_v30 = vpop.permute.xlu0 %868 }
  0xee   : > { %913 = vst.msk [vmem:[#allocation3 + $0x20] sm:$0xff] %vm908_vm7, %v869_v30  ;;  %v871_v31 = vpop.permute.xlu1 %870 }
  0xef   : > { %914 = vst.msk [vmem:[#allocation3 + $0x28] sm:$0xff] %vm908_vm7, %v871_v31  ;;  %1399 = vrot.lane.b32.xlu0 %v1356_v29, %s4001_s30 }
  0xf0   : > { %499 = vrot.lane.b32.xlu1 %v1227_v20, %s3993_s10 }
  0xf1   : > { %v998_v33 = vpop.permute.xlu0 %997 }
  0xf2   : > { %1042 = vst.msk [vmem:[#allocation3 + $0x20] sm:$0xff] %vm1037_vm8, %v998_v33  ;;  %v1000_v34 = vpop.permute.xlu1 %999 }
  0xf3   : > { %1043 = vst.msk [vmem:[#allocation3 + $0x28] sm:$0xff] %vm1037_vm8, %v1000_v34  ;;  %626 = vrot.lane.b32.xlu0 %v968_v15, %s3994_s11 }
  0xf4   : > { %628 = vrot.lane.b32.xlu1 %v1356_v29, %s3994_s11 }
  0xf5   : > { %v1128_v35 = vpop.permute.xlu0 %1127 }
  0xf6   : > { %1172 = vst.msk [vmem:[#allocation3 + $0x20] sm:$0xff] %vm1167_vm9, %v1128_v35  ;;  %v1130_v38 = vpop.permute.xlu1 %1129 }
  0xf7   : > { %1173 = vst.msk [vmem:[#allocation3 + $0x28] sm:$0xff] %vm1167_vm9, %v1130_v38  ;;  %755 = vrot.lane.b32.xlu0 %v4343_v43, %s3995_s12 }
  0xf8   : > { %757 = vrot.lane.b32.xlu1 %v4361_v55, %s3995_s12 }
  0xf9   : > { %v1257_v40 = vpop.permute.xlu0 %1256 }
  0xfa   : > { %1301 = vst.msk [vmem:[#allocation3 + $0x20] sm:$0xff] %vm1296_vm10, %v1257_v40  ;;  %v1259_v44 = vpop.permute.xlu1 %1258 }
  0xfb   : > { %1302 = vst.msk [vmem:[#allocation3 + $0x28] sm:$0xff] %vm1296_vm10, %v1259_v44  ;;  %884 = vrot.lane.b32.xlu0 %v1227_v20, %s3996_s13  ;;  %v1214_v20 = vld [vmem:[#allocation2 + $0x199] sm:$0xff] }
  0xfc   : > { %886 = vrot.lane.b32.xlu1 %v841_v39, %s3996_s13  ;;  %v1231_v24 = vpack.c.bf16 %v1215_v21, %v1214_v20 }
  0xfd   : > { %v1386_v5 = vpop.permute.xlu0 %1385 }
  0xfe   : > { %1430 = vst.msk [vmem:[#allocation3 + $0x20] sm:$0xff] %vm1425_vm11, %v1386_v5  ;;  %v486_v43 = vpop.permute.xlu1 %485 }
  0xff   : > { %528 = vst.msk [vmem:[#allocation3 + $0x30] sm:$0xff] %vm521_vm4, %v486_v43  ;;  %1013 = vrot.lane.b32.xlu0 %v1356_v29, %s3997_s14  ;;  %v1360_v29 = vpack.c.bf16 %v1344_v28, %v1343_v32 }
 0x100   : > { %1015 = vrot.lane.b32.xlu1 %v970_v45, %s3997_s14 }
 0x101   : > { %v1388_v46 = vpop.permute.xlu0 %1387 }
 0x102   : > { %1431 = vst.msk [vmem:[#allocation3 + $0x28] sm:$0xff] %vm1425_vm11, %v1388_v46  ;;  %v488_v49 = vpop.permute.xlu1 %487 }
 0x103   : > { %529 = vst.msk [vmem:[#allocation3 + $0x38] sm:$0xff] %vm521_vm4, %v488_v49  ;;  %1143 = vrot.lane.b32.xlu0 %v4361_v55, %s3999_s17 }
 0x104   : > { %1145 = vrot.lane.b32.xlu1 %v4379_v6, %s3999_s17 }
 0x105   : > { %v615_v51 = vpop.permute.xlu0 %614  ;;  %v1446_v52 = vld [vmem:[#allocation3 + $0x20] sm:$0xff] }
 0x106   : > { %657 = vst.msk [vmem:[#allocation3 + $0x30] sm:$0xff] %vm650_vm5, %v615_v51  ;;  %v617_v54 = vpop.permute.xlu1 %616  ;;  %3812 = vmatprep.mubr.msk.bf16.mxu0 %vm1480_vm12, %v1446_v52 }
 0x107   : > { %658 = vst.msk [vmem:[#allocation3 + $0x38] sm:$0xff] %vm650_vm5, %v617_v54  ;;  %1272 = vrot.lane.b32.xlu0 %v841_v39, %s4000_s26 }
 0x108   : > { %1274 = vrot.lane.b32.xlu1 %v1229_v50, %s4000_s26 }
 0x109   : > { %v744_v55 = vpop.permute.xlu0 %743  ;;  %v1447_v22 = vld [vmem:[#allocation3 + $0x28] sm:$0xff] }
 0x10a   : > { %786 = vst.msk [vmem:[#allocation3 + $0x30] sm:$0xff] %vm779_vm6, %v744_v55  ;;  %v746_v59 = vpop.permute.xlu1 %745  ;;  %3813 = vmatmul.mubr.msk.bf16.gmra.mrb[8].mxu0 %vm1480_vm12, %v1447_v22 }
 0x10b   : > { %787 = vst.msk [vmem:[#allocation3 + $0x38] sm:$0xff] %vm779_vm6, %v746_v59  ;;  %1401 = vrot.lane.b32.xlu0 %v970_v45, %s4001_s30 }
 0x10c   : > { %501 = vrot.lane.b32.xlu1 %v841_v39, %s3993_s10 }
 0x10d   : > { %v873_v62 = vpop.permute.xlu0 %872 }
 0x10e   : > { %915 = vst.msk [vmem:[#allocation3 + $0x30] sm:$0xff] %vm908_vm7, %v873_v62  ;;  %v875_v53 = vpop.permute.xlu1 %874 }
 0x10f   : > { %916 = vst.msk [vmem:[#allocation3 + $0x38] sm:$0xff] %vm908_vm7, %v875_v53  ;;  %1403 = vrot.lane.b32.xlu0 %v1358_v61, %s4001_s30 }
 0x110   : > { %503 = vrot.lane.b32.xlu1 %v1229_v50, %s3993_s10  ;;  %s4005_s10 = smov 96  }
 0x111   : > { %v1002_v1 = vpop.permute.xlu0 %1001 }
 0x112   : > { %1044 = vst.msk [vmem:[#allocation3 + $0x30] sm:$0xff] %vm1037_vm8, %v1002_v1  ;;  %v1004_v4 = vpop.permute.xlu1 %1003 }
 0x113   : > { %1045 = vst.msk [vmem:[#allocation3 + $0x38] sm:$0xff] %vm1037_vm8, %v1004_v4  ;;  %630 = vrot.lane.b32.xlu0 %v970_v45, %s3994_s11 }
 0x114   : > { %632 = vrot.lane.b32.xlu1 %v1358_v61, %s3994_s11  ;;  %s3682_s11 = sshll.u32 %s215_s7, 2 }
 0x115   : > { %v1132_v8 = vpop.permute.xlu0 %1131 }
 0x116   : > { %1174 = vst.msk [vmem:[#allocation3 + $0x30] sm:$0xff] %vm1167_vm9, %v1132_v8  ;;  %v1134_v56 = vpop.permute.xlu1 %1133 }
 0x117   : > { %1175 = vst.msk [vmem:[#allocation3 + $0x38] sm:$0xff] %vm1167_vm9, %v1134_v56  ;;  %759 = vrot.lane.b32.xlu0 %v4379_v6, %s3995_s12 }
 0x118   : > { %761 = vrot.lane.b32.xlu1 %v714_v7, %s3995_s12  ;;  %s3735_s12 = sshll.u32 %s4059_s22, 6 }
 0x119   : > { %v1261_v12 = vpop.permute.xlu0 %1260 }
 0x11a   : > { %1303 = vst.msk [vmem:[#allocation3 + $0x30] sm:$0xff] %vm1296_vm10, %v1261_v12  ;;  %v1263_v15 = vpop.permute.xlu1 %1262 }
 0x11b   : > { %1304 = vst.msk [vmem:[#allocation3 + $0x38] sm:$0xff] %vm1296_vm10, %v1263_v15  ;;  %888 = vrot.lane.b32.xlu0 %v1229_v50, %s3996_s13 }
 0x11c   : > { %890 = vrot.lane.b32.xlu1 %v843_v11, %s3996_s13  ;;  %s217_s13 = scalar_lea.vmem [#allocation6], %s3682_s11 }
 0x11d   : > { %v1390_v25 = vpop.permute.xlu0 %1389 }
 0x11e   : > { %1432 = vst.msk [vmem:[#allocation3 + $0x30] sm:$0xff] %vm1425_vm11, %v1390_v25  ;;  %v490_v6 = vpop.permute.xlu1 %489 }
 0x11f   : > { %530 = vst.msk [vmem:[#allocation3 + $0x40] sm:$0xff] %vm521_vm4, %v490_v6  ;;  %1017 = vrot.lane.b32.xlu0 %v1358_v61, %s3997_s14 }
 0x120   : > { %1019 = vrot.lane.b32.xlu1 %v972_v16, %s3997_s14  ;;  %s3619_s14 = sshll.u32 %s217_s13, 4  ;;  %s5206_s14 = int_to_ptr.vmem [resolvable:$true] %s3619_s14 }
 0x121   : > { %v1392_v60 = vpop.permute.xlu0 %1391  ;;  %s3928_s22 = scalar_lea.vmem %s5206_s14, 64  ;;  %p3935_p0 = scmp.lt.s32.totalorder %s5206_s14, %s3933_s25 }
 0x122   : > { %1433 = vst.msk [vmem:[#allocation3 + $0x38] sm:$0xff] %vm1425_vm11, %v1392_v60  ;;  %v492_v23 = vpop.permute.xlu1 %491  ;;  %p3929_p11 = scmp.ne.s32.totalorder %s5206_s14, %s3928_s22 }
 0x123   : > { %531 = vst.msk [vmem:[#allocation3 + $0x48] sm:$0xff] %vm521_vm4, %v492_v23  ;;  %1147 = vrot.lane.b32.xlu0 %v714_v7, %s3999_s17 }
 0x124   : > { %1149 = vrot.lane.b32.xlu1 %v1102_v19, %s3999_s17  ;;  %s5204_s17 = scalar_lea.hbm %s5251_s5, %s3735_s12  ;;  %p3930_p12 = pnand %p3929_p11, %p4076_p5 }
 0x125   : > { %v619_v26 = vpop.permute.xlu0 %618  ;;  %v1448_v27 = vld [vmem:[#allocation3 + $0x30] sm:$0xff] }
 0x126   : > { %659 = vst.msk [vmem:[#allocation3 + $0x40] sm:$0xff] %vm650_vm5, %v619_v26  ;;  %v621_v63 = vpop.permute.xlu1 %620  ;;  %3816 = vmatprep.mubr.msk.bf16.mxu0 %vm1480_vm12, %v1448_v27  ;;  %p3931_p13 = pneg %p3930_p12 }
 0x127   : > { %660 = vst.msk [vmem:[#allocation3 + $0x48] sm:$0xff] %vm650_vm5, %v621_v63  ;;  %1276 = vrot.lane.b32.xlu0 %v843_v11, %s4000_s26 }
 0x128   : > { %1278 = vrot.lane.b32.xlu1 %v1231_v24, %s4000_s26  ;;  %s3934_s26 = scalar_lea.vmem %s3933_s25, 128 }
 0x129   : > { %v748_v30 = vpop.permute.xlu0 %747  ;;  %v1449_v31 = vld [vmem:[#allocation3 + $0x38] sm:$0xff]  ;;  %p3936_p1 = scmp.lt.s32.totalorder %s3934_s26, %s3928_s22 }
 0x12a   : > { %788 = vst.msk [vmem:[#allocation3 + $0x40] sm:$0xff] %vm779_vm6, %v748_v30  ;;  %v750_v33 = vpop.permute.xlu1 %749  ;;  %3817 = vmatmul.mubr.msk.bf16.gmra.mrb[12].mxu0 %vm1480_vm12, %v1449_v31 }
 0x12b   : > { %789 = vst.msk [vmem:[#allocation3 + $0x48] sm:$0xff] %vm779_vm6, %v750_v33  ;;  %1405 = vrot.lane.b32.xlu0 %v972_v16, %s4001_s30  ;;  %v4002_v33 = vmov 1983009808   ;;  %p3937_p2 = por %p3936_p1, %p3935_p0 }
 0x12c   : > { %1407 = vrot.lane.b32.xlu1 %v1360_v29, %s4001_s30 }
 0x12d   : > { %v877_v34 = vpop.permute.xlu0 %876  ;;  %p3938_p3 = pnand %p3937_p2, %p3931_p13 }
 0x12e   : > { %917 = vst.msk [vmem:[#allocation3 + $0x40] sm:$0xff] %vm908_vm7, %v877_v34  ;;  %v879_v35 = vpop.permute.xlu1 %878  ;;  %v1796_v34 = vunpack.c.l.s4 %v4002_v33 }
 0x12f   : > { %918 = vst.msk [vmem:[#allocation3 + $0x48] sm:$0xff] %vm908_vm7, %v879_v35  ;;  %v1798_v35 = vlaneseq }
 0x131   : > { %v1006_v36 = vpop.permute.xlu0 %1005 }
 0x132   : > { %1046 = vst.msk [vmem:[#allocation3 + $0x40] sm:$0xff] %vm1037_vm8, %v1006_v36  ;;  %v1008_v37 = vpop.permute.xlu1 %1007  ;;  %v4673_v36 = vld [vmem:[%s5248_s2] ss:$0 sm:$0xff] }
 0x133   : > { %1047 = vst.msk [vmem:[#allocation3 + $0x48] sm:$0xff] %vm1037_vm8, %v1008_v37 }
 0x135   : > { %v1136_v38 = vpop.permute.xlu0 %1135 }
 0x136   : > { %1176 = vst.msk [vmem:[#allocation3 + $0x40] sm:$0xff] %vm1167_vm9, %v1136_v38  ;;  %v1138_v39 = vpop.permute.xlu1 %1137 }
 0x137   : > { %1177 = vst.msk [vmem:[#allocation3 + $0x48] sm:$0xff] %vm1167_vm9, %v1138_v39 }
 0x139   : > { %v1265_v40 = vpop.permute.xlu0 %1264 }
 0x13a   : > { %1305 = vst.msk [vmem:[#allocation3 + $0x40] sm:$0xff] %vm1296_vm10, %v1265_v40  ;;  %v1267_v41 = vpop.permute.xlu1 %1266 }
 0x13b   : > { %1306 = vst.msk [vmem:[#allocation3 + $0x48] sm:$0xff] %vm1296_vm10, %v1267_v41 }
 0x13d   : > { %v1394_v42 = vpop.permute.xlu0 %1393 }
 0x13e   : > { %1434 = vst.msk [vmem:[#allocation3 + $0x40] sm:$0xff] %vm1425_vm11, %v1394_v42  ;;  %v494_v44 = vpop.permute.xlu1 %493  ;;  %v1797_v42 = vunpack.c.0.s8 %v1796_v34 }
 0x13f   : > { %532 = vst.msk [vmem:[#allocation3 + $0x50] sm:$0xff] %vm521_vm4, %v494_v44  ;;  %v4677_v44 = vshrl.u32 %v1798_v35, 7 }
 0x141   : > { %v1396_v45 = vpop.permute.xlu0 %1395 }
 0x142   : > { %1435 = vst.msk [vmem:[#allocation3 + $0x48] sm:$0xff] %vm1425_vm11, %v1396_v45  ;;  %v496_v5 = vpop.permute.xlu1 %495 }
 0x143   : > { %533 = vst.msk [vmem:[#allocation3 + $0x58] sm:$0xff] %vm521_vm4, %v496_v5 }
 0x145   : > { %v623_v43 = vpop.permute.xlu0 %622  ;;  %v1450_v46 = vld [vmem:[#allocation3 + $0x40] sm:$0xff] }
 0x146   : > { %661 = vst.msk [vmem:[#allocation3 + $0x50] sm:$0xff] %vm650_vm5, %v623_v43  ;;  %v625_v48 = vpop.permute.xlu1 %624  ;;  %3820 = vmatprep.mubr.msk.bf16.mxu0 %vm1480_vm12, %v1450_v46 }
 0x147   : > { %662 = vst.msk [vmem:[#allocation3 + $0x58] sm:$0xff] %vm650_vm5, %v625_v48 }
 0x149   : > { %v752_v47 = vpop.permute.xlu0 %751  ;;  %v1451_v49 = vld [vmem:[#allocation3 + $0x48] sm:$0xff] }
 0x14a   : > { %790 = vst.msk [vmem:[#allocation3 + $0x50] sm:$0xff] %vm779_vm6, %v752_v47  ;;  %v754_v50 = vpop.permute.xlu1 %753  ;;  %3821 = vmatmul.mubr.msk.bf16.gmra.mrb[16].mxu0 %vm1480_vm12, %v1451_v49 }
 0x14b   : > { %791 = vst.msk [vmem:[#allocation3 + $0x58] sm:$0xff] %vm779_vm6, %v754_v50 }
 0x14d   : > { %v881_v51 = vpop.permute.xlu0 %880 }
 0x14e   : > { %919 = vst.msk [vmem:[#allocation3 + $0x50] sm:$0xff] %vm908_vm7, %v881_v51  ;;  %v883_v52 = vpop.permute.xlu1 %882  ;;  %v4685_v51 = vsub.s32 %v1797_v42, %v4677_v44 }
 0x14f   : > { %920 = vst.msk [vmem:[#allocation3 + $0x58] sm:$0xff] %vm908_vm7, %v883_v52 }
 0x151   : > { %v1010_v54 = vpop.permute.xlu0 %1009 }
 0x152   : > { %1048 = vst.msk [vmem:[#allocation3 + $0x50] sm:$0xff] %vm1037_vm8, %v1010_v54  ;;  %v1012_v57 = vpop.permute.xlu1 %1011 }
 0x153   : > { %1049 = vst.msk [vmem:[#allocation3 + $0x58] sm:$0xff] %vm1037_vm8, %v1012_v57 }
 0x155   : > { %v1140_v58 = vpop.permute.xlu0 %1139 }
 0x156   : > { %1178 = vst.msk [vmem:[#allocation3 + $0x50] sm:$0xff] %vm1167_vm9, %v1140_v58  ;;  %v1142_v55 = vpop.permute.xlu1 %1141 }
 0x157   : > { %1179 = vst.msk [vmem:[#allocation3 + $0x58] sm:$0xff] %vm1167_vm9, %v1142_v55 }
 0x159   : > { %v1269_v22 = vpop.permute.xlu0 %1268 }
 0x15a   : > { %1307 = vst.msk [vmem:[#allocation3 + $0x50] sm:$0xff] %vm1296_vm10, %v1269_v22  ;;  %v1271_v59 = vpop.permute.xlu1 %1270 }
 0x15b   : > { %1308 = vst.msk [vmem:[#allocation3 + $0x58] sm:$0xff] %vm1296_vm10, %v1271_v59 }
 0x15d   : > { %v1398_v61 = vpop.permute.xlu0 %1397 }
 0x15e   : > { %1436 = vst.msk [vmem:[#allocation3 + $0x50] sm:$0xff] %vm1425_vm11, %v1398_v61  ;;  %v498_v62 = vpop.permute.xlu1 %497 }
 0x15f   : > { %534 = vst.msk [vmem:[#allocation3 + $0x60] sm:$0xff] %vm521_vm4, %v498_v62 }
 0x161   : > { %v1400_v53 = vpop.permute.xlu0 %1399 }
 0x162   : > { %1437 = vst.msk [vmem:[#allocation3 + $0x58] sm:$0xff] %vm1425_vm11, %v1400_v53  ;;  %v500_v1 = vpop.permute.xlu1 %499 }
 0x163   : > { %535 = vst.msk [vmem:[#allocation3 + $0x68] sm:$0xff] %vm521_vm4, %v500_v1 }
 0x165   : > { %v627_v2 = vpop.permute.xlu0 %626  ;;  %v1452_v3 = vld [vmem:[#allocation3 + $0x50] sm:$0xff] }
 0x166   : > { %663 = vst.msk [vmem:[#allocation3 + $0x60] sm:$0xff] %vm650_vm5, %v627_v2  ;;  %v629_v4 = vpop.permute.xlu1 %628  ;;  %3824 = vmatprep.mubr.msk.bf16.mxu0 %vm1480_vm12, %v1452_v3 }
 0x167   : > { %664 = vst.msk [vmem:[#allocation3 + $0x68] sm:$0xff] %vm650_vm5, %v629_v4 }
 0x169   : > { %v756_v7 = vpop.permute.xlu0 %755  ;;  %v1453_v8 = vld [vmem:[#allocation3 + $0x58] sm:$0xff] }
 0x16a   : > { %792 = vst.msk [vmem:[#allocation3 + $0x60] sm:$0xff] %vm779_vm6, %v756_v7  ;;  %v758_v9 = vpop.permute.xlu1 %757  ;;  %3825 = vmatmul.mubr.msk.bf16.gmra.mrb[20].mxu0 %vm1480_vm12, %v1453_v8 }
 0x16b   : > { %793 = vst.msk [vmem:[#allocation3 + $0x68] sm:$0xff] %vm779_vm6, %v758_v9 }
 0x16d   : > { %v885_v10 = vpop.permute.xlu0 %884 }
 0x16e   : > { %921 = vst.msk [vmem:[#allocation3 + $0x60] sm:$0xff] %vm908_vm7, %v885_v10  ;;  %v887_v56 = vpop.permute.xlu1 %886 }
 0x16f   : > { %922 = vst.msk [vmem:[#allocation3 + $0x68] sm:$0xff] %vm908_vm7, %v887_v56 }
 0x171   : > { %v1014_v11 = vpop.permute.xlu0 %1013 }
 0x172   : > { %1050 = vst.msk [vmem:[#allocation3 + $0x60] sm:$0xff] %vm1037_vm8, %v1014_v11  ;;  %v1016_v12 = vpop.permute.xlu1 %1015 }
 0x173   : > { %1051 = vst.msk [vmem:[#allocation3 + $0x68] sm:$0xff] %vm1037_vm8, %v1016_v12 }
 0x175   : > { %v1144_v13 = vpop.permute.xlu0 %1143 }
 0x176   : > { %1180 = vst.msk [vmem:[#allocation3 + $0x60] sm:$0xff] %vm1167_vm9, %v1144_v13  ;;  %v1146_v14 = vpop.permute.xlu1 %1145 }
 0x177   : > { %1181 = vst.msk [vmem:[#allocation3 + $0x68] sm:$0xff] %vm1167_vm9, %v1146_v14 }
 0x179   : > { %v1273_v15 = vpop.permute.xlu0 %1272 }
 0x17a   : > { %1309 = vst.msk [vmem:[#allocation3 + $0x60] sm:$0xff] %vm1296_vm10, %v1273_v15  ;;  %v1275_v16 = vpop.permute.xlu1 %1274 }
 0x17b   : > { %1310 = vst.msk [vmem:[#allocation3 + $0x68] sm:$0xff] %vm1296_vm10, %v1275_v16 }
 0x17d   : > { %v1402_v25 = vpop.permute.xlu0 %1401 }
 0x17e   : > { %1438 = vst.msk [vmem:[#allocation3 + $0x60] sm:$0xff] %vm1425_vm11, %v1402_v25  ;;  %v502_v17 = vpop.permute.xlu1 %501 }
 0x17f   : > { %536 = vst.msk [vmem:[#allocation3 + $0x70] sm:$0xff] %vm521_vm4, %v502_v17 }
 0x181   : > { %v1404_v18 = vpop.permute.xlu0 %1403 }
 0x182   : > { %1439 = vst.msk [vmem:[#allocation3 + $0x68] sm:$0xff] %vm1425_vm11, %v1404_v18  ;;  %v504_v6 = vpop.permute.xlu1 %503 }
 0x183   : > { %537 = vst.msk [vmem:[#allocation3 + $0x78] sm:$0xff] %vm521_vm4, %v504_v6  ;;  %vm2673_vm4 = vcmask 1046534  }
 0x185   : > { %v631_v19 = vpop.permute.xlu0 %630  ;;  %v1454_v60 = vld [vmem:[#allocation3 + $0x60] sm:$0xff] }
 0x186   : > { %665 = vst.msk [vmem:[#allocation3 + $0x70] sm:$0xff] %vm650_vm5, %v631_v19  ;;  %v633_v20 = vpop.permute.xlu1 %632  ;;  %3828 = vmatprep.mubr.msk.bf16.mxu0 %vm1480_vm12, %v1454_v60 }
 0x187   : > { %666 = vst.msk [vmem:[#allocation3 + $0x78] sm:$0xff] %vm650_vm5, %v633_v20  ;;  %vm2675_vm5 = vcmask 1047559  }
 0x189   : > { %v760_v21 = vpop.permute.xlu0 %759  ;;  %v1455_v23 = vld [vmem:[#allocation3 + $0x68] sm:$0xff] }
 0x18a   : > { %794 = vst.msk [vmem:[#allocation3 + $0x70] sm:$0xff] %vm779_vm6, %v760_v21  ;;  %v762_v24 = vpop.permute.xlu1 %761  ;;  %3829 = vmatmul.mubr.msk.bf16.gmra.mrb[24].mxu0 %vm1480_vm12, %v1455_v23 }
 0x18b   : > { %795 = vst.msk [vmem:[#allocation3 + $0x78] sm:$0xff] %vm779_vm6, %v762_v24  ;;  %vm2787_vm6 = vcmask 523520  }
 0x18d   : > { %v889_v26 = vpop.permute.xlu0 %888 }
 0x18e   : > { %923 = vst.msk [vmem:[#allocation3 + $0x70] sm:$0xff] %vm908_vm7, %v889_v26  ;;  %v891_v27 = vpop.permute.xlu1 %890 }
 0x18f   : > { %924 = vst.msk [vmem:[#allocation3 + $0x78] sm:$0xff] %vm908_vm7, %v891_v27  ;;  %vm2820_vm7 = vcmask 785920  }
 0x191   : > { %v1018_v32 = vpop.permute.xlu0 %1017 }
 0x192   : > { %1052 = vst.msk [vmem:[#allocation3 + $0x70] sm:$0xff] %vm1037_vm8, %v1018_v32  ;;  %v1020_v28 = vpop.permute.xlu1 %1019 }
 0x193   : > { %1053 = vst.msk [vmem:[#allocation3 + $0x78] sm:$0xff] %vm1037_vm8, %v1020_v28  ;;  %vm2853_vm8 = vcmask 1048320  }
 0x195   : > { %v1148_v63 = vpop.permute.xlu0 %1147 }
 0x196   : > { %1182 = vst.msk [vmem:[#allocation3 + $0x70] sm:$0xff] %vm1167_vm9, %v1148_v63  ;;  %v1150_v29 = vpop.permute.xlu1 %1149 }
 0x197   : > { %1183 = vst.msk [vmem:[#allocation3 + $0x78] sm:$0xff] %vm1167_vm9, %v1150_v29  ;;  %vm3300_vm9 = vcmask 523264  }
 0x199   : > { %v1277_v30 = vpop.permute.xlu0 %1276 }
 0x19a   : > { %1311 = vst.msk [vmem:[#allocation3 + $0x70] sm:$0xff] %vm1296_vm10, %v1277_v30  ;;  %v1279_v31 = vpop.permute.xlu1 %1278 }
 0x19b   : > { %1312 = vst.msk [vmem:[#allocation3 + $0x78] sm:$0xff] %vm1296_vm10, %v1279_v31  ;;  %vm3401_vm10 = vcmask 517120  }
 0x19d   : > { %v1406_v37 = vpop.permute.xlu0 %1405  ;;  %v3806_v38 = vpop.f32.mrb[0].mxu0 }
 0x19e   : > { %1440 = vst.msk [vmem:[#allocation3 + $0x70] sm:$0xff] %vm1425_vm11, %v1406_v37  ;;  %v1579_v39 = vadd.f32 %v3806_v38, %v4673_v36  ;;  %v1408_v40 = vpop.permute.xlu1 %1407  ;;  %v1570_v41 = vpop.f32.mrb[1].mxu0 }
 0x19f   : > { %1441 = vst.msk [vmem:[#allocation3 + $0x78] sm:$0xff] %vm1425_vm11, %v1408_v40  ;;  %v1571_v45 = vadd.f32 %v4673_v36, %v1570_v41  ;;  %v3807_v5 = vpop.f32.mrb[2].mxu0 }
 0x1a0   : > { %v1699_v43 = vmax.f32 %v1579_v39, 0.0  ;;  %v1582_v46 = vadd.f32 %v3807_v5, %v4673_v36  ;;  %v1573_v48 = vpop.f32.mrb[3].mxu0 }
 0x1a1   : > { %v1697_v47 = vmax.f32 %v1571_v45, 0.0  ;;  %v1574_v49 = vadd.f32 %v4673_v36, %v1573_v48 }
 0x1a2   : > { %v1731_v50 = vsel %vm1729_vm13, %v1699_v43, -inf  ;;  %v1700_v52 = vmax.f32 %v1582_v46, 0.0 }
 0x1a3   : > { %v1730_v54 = vsel %vm1729_vm13, %v1697_v47, -inf  ;;  %v1698_v57 = vmax.f32 %v1574_v49, 0.0 }
 0x1a4   : > { %v1732_v58 = vmax.f32 %v1730_v54, %v1731_v50  ;;  %v1734_v55 = vsel %vm1729_vm13, %v1700_v52, -inf }
 0x1a5   : > { %v1733_v22 = vsel %vm1729_vm13, %v1698_v57, -inf  ;;  %v1456_v59 = vld [vmem:[#allocation3 + $0x70] sm:$0xff] }
 0x1a6   : > { %v1794_v61 = vcombine.high %v1732_v58, %v1732_v58  ;;  %v1801_v62 = vrot.slane %v1732_v58, %v4685_v51  ;;  %v1735_v53 = vmax.f32 %v1733_v22, %v1734_v55  ;;  %3832 = vmatprep.mubr.msk.bf16.mxu0 %vm1480_vm12, %v1456_v59  ;;  %v1457_v1 = vld [vmem:[#allocation3 + $0x78] sm:$0xff] }
 0x1a7   : > { %3833 = vmatmul.mubr.msk.bf16.gmra.mrb[28].mxu0 %vm1480_vm12, %v1457_v1 }
 0x1a8   : > { %v1808_v2 = vrot.slane %v1794_v61, %v4685_v51  ;;  %v1809_v3 = vcombine.high %v1801_v62, %v1801_v62  ;;  %v2131_v4 = vsel %vm2130_vm14, %v1801_v62, -inf  ;;  %v1811_v7 = vcombine.high %v1735_v53, %v1735_v53 }
 0x1a9   : > { %v2132_v8 = vrot.slane %v2131_v4, 4  ;;  %v1818_v9 = vrot.slane %v1735_v53, %v4685_v51 }
 0x1aa   : > { %v1810_v10 = vcombine.high %v1808_v2, %v1808_v2  ;;  %v2138_v56 = vsel %vm2130_vm14, %v1809_v3, -inf  ;;  %v2145_v11 = vsel %vm2130_vm14, %v1808_v2, -inf  ;;  %v1825_v12 = vrot.slane %v1811_v7, %v4685_v51 }
 0x1ab   : > { %v2133_v13 = vmax.f32 %v2131_v4, %v2132_v8  ;;  %v2139_v14 = vrot.slane %v2138_v56, 4  ;;  %v2146_v15 = vrot.slane %v2145_v11, 4  ;;  %v1826_v16 = vcombine.high %v1818_v9, %v1818_v9 }
 0x1ac   : > { %v2152_v25 = vsel %vm2130_vm14, %v1810_v10, -inf  ;;  %v1827_v17 = vcombine.high %v1825_v12, %v1825_v12  ;;  %v2159_v18 = vsel %vm2130_vm14, %v1818_v9, -inf  ;;  %v2173_v6 = vsel %vm2130_vm14, %v1825_v12, -inf }
 0x1ad   : > { %v2134_v19 = vrot.slane %v2133_v13, 2  ;;  %v2140_v60 = vmax.f32 %v2138_v56, %v2139_v14  ;;  %v2147_v20 = vmax.f32 %v2145_v11, %v2146_v15  ;;  %v2153_v21 = vrot.slane %v2152_v25, 4 }
 0x1ae   : > { %v2160_v23 = vrot.slane %v2159_v18, 4  ;;  %v2166_v24 = vsel %vm2130_vm14, %v1826_v16, -inf  ;;  %v2174_v26 = vrot.slane %v2173_v6, 4  ;;  %v2180_v27 = vsel %vm2130_vm14, %v1827_v17, -inf }
 0x1af   : > { %v2135_v32 = vmax.f32 %v2133_v13, %v2134_v19  ;;  %v2141_v28 = vrot.slane %v2140_v60, 2  ;;  %v2148_v63 = vrot.slane %v2147_v20, 2  ;;  %v2154_v29 = vmax.f32 %v2152_v25, %v2153_v21 }
 0x1b0   : > { %v2161_v30 = vmax.f32 %v2159_v18, %v2160_v23  ;;  %v2167_v31 = vrot.slane %v2166_v24, 4  ;;  %v2175_v33 = vmax.f32 %v2173_v6, %v2174_v26  ;;  %v2181_v34 = vrot.slane %v2180_v27, 4 }
 0x1b1   : > { %v2136_v35 = vrot.slane %v2135_v32, 1  ;;  %v2142_v37 = vmax.f32 %v2140_v60, %v2141_v28  ;;  %v2149_v38 = vmax.f32 %v2147_v20, %v2148_v63  ;;  %v2155_v39 = vrot.slane %v2154_v29, 2  ;;  %v2759_v28 = vld [vmem:[#allocation4 + $0x1] sm:$0xff] }
 0x1b2   : > { %v2162_v40 = vrot.slane %v2161_v30, 2  ;;  %v2168_v41 = vmax.f32 %v2166_v24, %v2167_v31  ;;  %v2176_v42 = vrot.slane %v2175_v33, 2  ;;  %v2182_v45 = vmax.f32 %v2180_v27, %v2181_v34  ;;  %v2743_v63 = vld [vmem:[#allocation4] sm:$0xff] }
 0x1b3   : > { %v2143_v5 = vrot.slane %v2142_v37, 1  ;;  %v2150_v43 = vrot.slane %v2149_v38, 1  ;;  %v2156_v46 = vmax.f32 %v2154_v29, %v2155_v39  ;;  %v2137_v52 = vmax.f32 %v2135_v32, %v2136_v35 }
 0x1b4   : > { %v2163_v48 = vmax.f32 %v2161_v30, %v2162_v40  ;;  %v2169_v47 = vrot.slane %v2168_v41, 2  ;;  %v2177_v49 = vmax.f32 %v2175_v33, %v2176_v42  ;;  %v2183_v50 = vrot.slane %v2182_v45, 2  ;;  %v2792_v30 = vld [vmem:[#allocation4 + $0x2] sm:$0xff] }
 0x1b5   : > { %v2144_v54 = vmax.f32 %v2142_v37, %v2143_v5  ;;  %v2151_v57 = vmax.f32 %v2149_v38, %v2150_v43  ;;  %v2157_v58 = vrot.slane %v2156_v46, 1 }
 0x1b6   : > { %v2164_v55 = vrot.slane %v2163_v48, 1  ;;  %v2170_v22 = vmax.f32 %v2168_v41, %v2169_v47  ;;  %v2184_v59 = vmax.f32 %v2182_v45, %v2183_v50  ;;  %v2178_v53 = vrot.slane %v2177_v49, 1 }
 0x1b7   : > { %v2158_v61 = vmax.f32 %v2156_v46, %v2157_v58  ;;  %v2664_v62 = vsel %vm2663_vm15, %v2144_v54, %v2137_v52 }
 0x1b8   : > { %v2666_v1 = vsel %vm2665_vm0, %v2151_v57, %v2664_v62  ;;  %v2165_v2 = vmax.f32 %v2163_v48, %v2164_v55  ;;  %v2171_v3 = vrot.slane %v2170_v22, 1  ;;  %v2185_v4 = vrot.slane %v2184_v59, 1 }
 0x1b9   : > { %v2668_v7 = vsel %vm2667_vm1, %v2158_v61, %v2666_v1  ;;  %v2179_v10 = vmax.f32 %v2177_v49, %v2178_v53 }
 0x1ba   : > { %v2172_v8 = vmax.f32 %v2170_v22, %v2171_v3  ;;  %v2670_v9 = vsel %vm2669_vm2, %v2165_v2, %v2668_v7  ;;  %v2186_v56 = vmax.f32 %v2184_v59, %v2185_v4 }
 0x1bc   : > { %v2672_v11 = vsel %vm2671_vm3, %v2172_v8, %v2670_v9 }
 0x1bd   : > { %v2674_v12 = vsel %vm2673_vm4, %v2179_v10, %v2672_v11  ;;  %v3810_v13 = vpop.f32.mrb[4].mxu0 }
 0x1be   : > { %v2676_v14 = vsel %vm2675_vm5, %v2186_v56, %v2674_v12  ;;  %v1595_v15 = vadd.f32 %v3810_v13, %v4673_v36  ;;  %v1586_v16 = vpop.f32.mrb[5].mxu0 }
 0x1bf   : > { %2735 = vst.msk [vmem:[#allocation4 + $0x11] sm:$0xff] %vm1729_vm13, %v2676_v14  ;;  %v1587_v25 = vadd.f32 %v4673_v36, %v1586_v16  ;;  %v3811_v17 = vpop.f32.mrb[6].mxu0 }
 0x1c0   : > { %v1703_v18 = vmax.f32 %v1595_v15, 0.0  ;;  %v1598_v6 = vadd.f32 %v3811_v17, %v4673_v36  ;;  %v1589_v19 = vpop.f32.mrb[7].mxu0 }
 0x1c1   : > { %v1701_v60 = vmax.f32 %v1587_v25, 0.0  ;;  %v1590_v20 = vadd.f32 %v4673_v36, %v1589_v19 }
 0x1c2   : > { %v1737_v21 = vsel %vm1729_vm13, %v1703_v18, -inf  ;;  %v1704_v23 = vmax.f32 %v1598_v6, 0.0 }
 0x1c3   : > { %v1736_v24 = vsel %vm1729_vm13, %v1701_v60, -inf  ;;  %v1702_v26 = vmax.f32 %v1590_v20, 0.0 }
 0x1c4   : > { %v1738_v27 = vmax.f32 %v1736_v24, %v1737_v21  ;;  %v1740_v32 = vsel %vm1729_vm13, %v1704_v23, -inf }
 0x1c5   : > { %v1739_v29 = vsel %vm1729_vm13, %v1702_v26, -inf }
 0x1c6   : > { %v1828_v31 = vcombine.high %v1738_v27, %v1738_v27  ;;  %v1835_v33 = vrot.slane %v1738_v27, %v4685_v51  ;;  %v1741_v34 = vmax.f32 %v1739_v29, %v1740_v32  ;;  %v4721_v35 = vld [vmem:[#allocation4 + $0x11] sm:$0xff] }
 0x1c7   : > { %v4723_v37 = vld [vmem:[#allocation4 + $0x12] sm:$0xff]  ;;  %v2767_v39 = vpack.c.bf16 %v4721_v35, %v2759_v28 }
 0x1c8   : > { %v4725_v38 = vld [vmem:[#allocation4 + $0x10] sm:$0xff]  ;;  %v1842_v41 = vrot.slane %v1828_v31, %v4685_v51  ;;  %v1843_v42 = vcombine.high %v1835_v33, %v1835_v33  ;;  %v2187_v45 = vsel %vm2130_vm14, %v1835_v33, -inf  ;;  %v1845_v5 = vcombine.high %v1741_v34, %v1741_v34 }
 0x1c9   : > { %v2751_v40 = vpack.c.bf16 %v4725_v38, %v2743_v63  ;;  %v2188_v43 = vrot.slane %v2187_v45, 4  ;;  %v1852_v46 = vrot.slane %v1741_v34, %v4685_v51  ;;  %2775 = vrot.lane.b32.xlu1 %v2767_v39, %s4003_s8  ;;  %v2800_v48 = vpack.c.bf16 %v4723_v37, %v2792_v30 }
 0x1ca   : > { %v1844_v47 = vcombine.high %v1842_v41, %v1842_v41  ;;  %v2194_v49 = vsel %vm2130_vm14, %v1843_v42, -inf  ;;  %v2201_v50 = vsel %vm2130_vm14, %v1842_v41, -inf  ;;  %v1859_v52 = vrot.slane %v1845_v5, %v4685_v51 }
 0x1cb   : > { %2755 = vst.msk [vmem:[#allocation5] sm:$0xff] %vm1729_vm13, %v2751_v40  ;;  %v2189_v54 = vmax.f32 %v2187_v45, %v2188_v43  ;;  %v2195_v57 = vrot.slane %v2194_v49, 4  ;;  %v2202_v58 = vrot.slane %v2201_v50, 4  ;;  %v1860_v55 = vcombine.high %v1852_v46, %v1852_v46 }
 0x1cc   : > { %v2208_v22 = vsel %vm2130_vm14, %v1844_v47, -inf  ;;  %v1861_v59 = vcombine.high %v1859_v52, %v1859_v52  ;;  %v2215_v61 = vsel %vm2130_vm14, %v1852_v46, -inf  ;;  %v2229_v62 = vsel %vm2130_vm14, %v1859_v52, -inf }
 0x1cd   : > { %v2190_v53 = vrot.slane %v2189_v54, 2  ;;  %v2196_v1 = vmax.f32 %v2194_v49, %v2195_v57  ;;  %v2203_v2 = vmax.f32 %v2201_v50, %v2202_v58  ;;  %v2209_v3 = vrot.slane %v2208_v22, 4  ;;  %2808 = vrot.lane.b32.xlu1 %v2800_v48, %s4004_s9 }
 0x1ce   : > { %v2216_v4 = vrot.slane %v2215_v61, 4  ;;  %v2222_v7 = vsel %vm2130_vm14, %v1860_v55, -inf  ;;  %v2230_v8 = vrot.slane %v2229_v62, 4  ;;  %v2236_v9 = vsel %vm2130_vm14, %v1861_v59, -inf }
 0x1cf   : > { %v2191_v10 = vmax.f32 %v2189_v54, %v2190_v53  ;;  %v2197_v56 = vrot.slane %v2196_v1, 2  ;;  %v2204_v11 = vrot.slane %v2203_v2, 2  ;;  %v2210_v12 = vmax.f32 %v2208_v22, %v2209_v3 }
 0x1d0   : > { %v2217_v13 = vmax.f32 %v2215_v61, %v2216_v4  ;;  %v2223_v14 = vrot.slane %v2222_v7, 4  ;;  %v2231_v15 = vmax.f32 %v2229_v62, %v2230_v8  ;;  %v2237_v16 = vrot.slane %v2236_v9, 4 }
 0x1d1   : > { %v2192_v25 = vrot.slane %v2191_v10, 1  ;;  %v2198_v17 = vmax.f32 %v2196_v1, %v2197_v56  ;;  %v2205_v18 = vmax.f32 %v2203_v2, %v2204_v11  ;;  %v2211_v6 = vrot.slane %v2210_v12, 2 }
 0x1d2   : > { %v2218_v19 = vrot.slane %v2217_v13, 2  ;;  %v2224_v60 = vmax.f32 %v2222_v7, %v2223_v14  ;;  %v2232_v20 = vrot.slane %v2231_v15, 2  ;;  %v2238_v21 = vmax.f32 %v2236_v9, %v2237_v16 }
 0x1d3   : > { %v2199_v23 = vrot.slane %v2198_v17, 1  ;;  %v2206_v24 = vrot.slane %v2205_v18, 1  ;;  %v2212_v26 = vmax.f32 %v2210_v12, %v2211_v6  ;;  %v2193_v29 = vmax.f32 %v2191_v10, %v2192_v25 }
 0x1d4   : > { %v2219_v27 = vmax.f32 %v2217_v13, %v2218_v19  ;;  %v2225_v32 = vrot.slane %v2224_v60, 2  ;;  %v2233_v28 = vmax.f32 %v2231_v15, %v2232_v20  ;;  %v2239_v63 = vrot.slane %v2238_v21, 2 }
 0x1d5   : > { %v2200_v30 = vmax.f32 %v2198_v17, %v2199_v23  ;;  %v2207_v31 = vmax.f32 %v2205_v18, %v2206_v24  ;;  %v2213_v33 = vrot.slane %v2212_v26, 1 }
 0x1d6   : > { %v2220_v34 = vrot.slane %v2219_v27, 1  ;;  %v2226_v39 = vmax.f32 %v2224_v60, %v2225_v32  ;;  %v2240_v40 = vmax.f32 %v2238_v21, %v2239_v63  ;;  %v2234_v45 = vrot.slane %v2233_v28, 1  ;;  %v3910_v63 = vld [vmem:[%s5249_s3] sm:$0xff]  }
 0x1d7   : > { %v2214_v41 = vmax.f32 %v2212_v26, %v2213_v33  ;;  %v2677_v42 = vsel %vm2663_vm15, %v2200_v30, %v2193_v29 }
 0x1d8   : > { %v2678_v5 = vsel %vm2665_vm0, %v2207_v31, %v2677_v42  ;;  %v2221_v43 = vmax.f32 %v2219_v27, %v2220_v34  ;;  %v2227_v46 = vrot.slane %v2226_v39, 1  ;;  %v2241_v48 = vrot.slane %v2240_v40, 1 }
 0x1d9   : > { %v2679_v47 = vsel %vm2667_vm1, %v2214_v41, %v2678_v5  ;;  %v2235_v52 = vmax.f32 %v2233_v28, %v2234_v45 }
 0x1da   : > { %v2228_v49 = vmax.f32 %v2226_v39, %v2227_v46  ;;  %v2680_v50 = vsel %vm2669_vm2, %v2221_v43, %v2679_v47  ;;  %v2242_v54 = vmax.f32 %v2240_v40, %v2241_v48  ;;  %v3911_v46 = vld [vmem:[%s5249_s3 + $0x48] sm:$0xff]  }
 0x1dc   : > { %v2681_v57 = vsel %vm2671_vm3, %v2228_v49, %v2680_v50 }
 0x1dd   : > { %v2682_v58 = vsel %vm2673_vm4, %v2235_v52, %v2681_v57  ;;  %v3814_v55 = vpop.f32.mrb[8].mxu0  ;;  %v3912_v52 = vld [vmem:[%s5249_s3 + $0x8] sm:$0xff]  }
 0x1de   : > { %v2683_v22 = vsel %vm2675_vm5, %v2242_v54, %v2682_v58  ;;  %v1611_v59 = vadd.f32 %v3814_v55, %v4673_v36  ;;  %v1602_v61 = vpop.f32.mrb[9].mxu0 }
 0x1df   : > { %2736 = vst.msk [vmem:[#allocation4 + $0x21] sm:$0xff] %vm1729_vm13, %v2683_v22  ;;  %v1603_v62 = vadd.f32 %v4673_v36, %v1602_v61  ;;  %v3815_v53 = vpop.f32.mrb[10].mxu0 }
 0x1e0   : > { %v1707_v1 = vmax.f32 %v1611_v59, 0.0  ;;  %v1614_v2 = vadd.f32 %v3815_v53, %v4673_v36  ;;  %v1605_v3 = vpop.f32.mrb[11].mxu0 }
 0x1e1   : > { %v1705_v4 = vmax.f32 %v1603_v62, 0.0  ;;  %v1606_v7 = vadd.f32 %v4673_v36, %v1605_v3 }
 0x1e2   : > { %v1743_v8 = vsel %vm1729_vm13, %v1707_v1, -inf  ;;  %v1708_v9 = vmax.f32 %v1614_v2, 0.0 }
 0x1e3   : > { %v1742_v10 = vsel %vm1729_vm13, %v1705_v4, -inf  ;;  %v1706_v56 = vmax.f32 %v1606_v7, 0.0  ;;  %v3913_v4 = vld [vmem:[%s5249_s3 + $0x50] sm:$0xff]  }
 0x1e4   : > { %v1744_v11 = vmax.f32 %v1742_v10, %v1743_v8  ;;  %v1746_v12 = vsel %vm1729_vm13, %v1708_v9, -inf }
 0x1e5   : > { %v1745_v13 = vsel %vm1729_vm13, %v1706_v56, -inf  ;;  %v3914_v56 = vld [vmem:[%s5249_s3 + $0x10] sm:$0xff]  }
 0x1e6   : > { %v1862_v14 = vcombine.high %v1744_v11, %v1744_v11  ;;  %v1869_v15 = vrot.slane %v1744_v11, %v4685_v51  ;;  %v1747_v16 = vmax.f32 %v1745_v13, %v1746_v12  ;;  %v4761_v25 = vld [vmem:[#allocation4 + $0x22] sm:$0xff] }
 0x1e7   : > { %v4763_v17 = vld [vmem:[#allocation4 + $0x20] sm:$0xff]  ;;  %v2882_v6 = vpack.c.bf16 %v4761_v25, %v4723_v37 }
 0x1e8   : > { %v4765_v18 = vld [vmem:[#allocation4 + $0x21] sm:$0xff]  ;;  %v2833_v19 = vpack.c.bf16 %v4763_v17, %v4725_v38  ;;  %v1876_v20 = vrot.slane %v1862_v14, %v4685_v51  ;;  %v1877_v21 = vcombine.high %v1869_v15, %v1869_v15  ;;  %v2243_v23 = vsel %vm2130_vm14, %v1869_v15, -inf }
 0x1e9   : > { %v2866_v60 = vpack.c.bf16 %v4765_v18, %v4721_v35  ;;  %v1879_v24 = vcombine.high %v1747_v16, %v1747_v16  ;;  %v2244_v26 = vrot.slane %v2243_v23, 4  ;;  %v1886_v27 = vrot.slane %v1747_v16, %v4685_v51  ;;  %2890 = vrot.lane.b32.xlu0 %v2882_v6, %s4003_s8  ;;  %v3909_v35 = vld [vmem:[%s5249_s3 + $0x40] sm:$0xff]  }
 0x1ea   : > { %2841 = vrot.lane.b32.xlu1 %v2833_v19, %s4005_s10  ;;  %v1878_v37 = vcombine.high %v1876_v20, %v1876_v20  ;;  %v2250_v38 = vsel %vm2130_vm14, %v1877_v21, -inf  ;;  %v2257_v32 = vsel %vm2130_vm14, %v1876_v20, -inf  ;;  %3754 = vmatprep.subr.bf16.mxu1 %v3909_v35  ;;  %v3916_v35 = vld [vmem:[%s5249_s3 + $0x18] sm:$0xff]  }
 0x1eb   : > { %2870 = vst.msk [vmem:[#allocation5 + $0x8] sm:$0xff] %vm1729_vm13, %v2866_v60  ;;  %v1893_v28 = vrot.slane %v1879_v24, %v4685_v51  ;;  %v2245_v29 = vmax.f32 %v2243_v23, %v2244_v26  ;;  %v2251_v30 = vrot.slane %v2250_v38, 4  ;;  %v2258_v31 = vrot.slane %v2257_v32, 4  ;;  %3755 = vmatpush3.bf16.msra.mxu1 %v3910_v63  ;;  %v3915_v23 = vld [vmem:[%s5249_s3 + $0x58] sm:$0xff]  }
 0x1ec   : > { %v1894_v33 = vcombine.high %v1886_v27, %v1886_v27  ;;  %v2264_v34 = vsel %vm2130_vm14, %v1878_v37, -inf  ;;  %v2271_v40 = vsel %vm2130_vm14, %v1886_v27, -inf  ;;  %3756 = vmatprep.subr.bf16.mxu1 %v3911_v46  ;;  %v3919_v46 = vld [vmem:[%s5249_s3 + $0x68] sm:$0xff]  }
 0x1ed   : > { %v1895_v39 = vcombine.high %v1893_v28, %v1893_v28  ;;  %v2285_v41 = vsel %vm2130_vm14, %v1893_v28, -inf  ;;  %v2246_v42 = vrot.slane %v2245_v29, 2  ;;  %v2252_v45 = vmax.f32 %v2250_v38, %v2251_v30 }
 0x1ee   : > { %v2259_v5 = vmax.f32 %v2257_v32, %v2258_v31  ;;  %v2265_v43 = vrot.slane %v2264_v34, 4  ;;  %v2272_v48 = vrot.slane %v2271_v40, 4  ;;  %v2278_v47 = vsel %vm2130_vm14, %v1894_v33, -inf  ;;  %v3917_v33 = vld [vmem:[%s5249_s3 + $0x60] sm:$0xff]  }
 0x1ef   : > { %v2286_v49 = vrot.slane %v2285_v41, 4  ;;  %v2292_v50 = vsel %vm2130_vm14, %v1895_v39, -inf  ;;  %v2247_v54 = vmax.f32 %v2245_v29, %v2246_v42  ;;  %v2253_v57 = vrot.slane %v2252_v45, 2  ;;  %3757 = vmatpush3.bf16.msra.mxu1 %v3912_v52 }
 0x1f0   : > { %v2260_v58 = vrot.slane %v2259_v5, 2  ;;  %v2266_v55 = vmax.f32 %v2264_v34, %v2265_v43  ;;  %v2273_v22 = vmax.f32 %v2271_v40, %v2272_v48  ;;  %v2279_v59 = vrot.slane %v2278_v47, 4  ;;  %3758 = vmatprep.subr.bf16.mxu1 %v3913_v4  ;;  %v3918_v40 = vld [vmem:[%s5249_s3 + $0x20] sm:$0xff]  }
 0x1f1   : > { %v2287_v61 = vmax.f32 %v2285_v41, %v2286_v49  ;;  %v2293_v62 = vrot.slane %v2292_v50, 4  ;;  %v2248_v53 = vrot.slane %v2247_v54, 1  ;;  %v2254_v1 = vmax.f32 %v2252_v45, %v2253_v57 }
 0x1f2   : > { %v2261_v2 = vmax.f32 %v2259_v5, %v2260_v58  ;;  %v2267_v3 = vrot.slane %v2266_v55, 2  ;;  %v2274_v7 = vrot.slane %v2273_v22, 2  ;;  %v2280_v8 = vmax.f32 %v2278_v47, %v2279_v59 }
 0x1f3   : > { %v2288_v9 = vrot.slane %v2287_v61, 2  ;;  %v2294_v10 = vmax.f32 %v2292_v50, %v2293_v62  ;;  %v2255_v11 = vrot.slane %v2254_v1, 1  ;;  %3759 = vmatpush3.bf16.msra.mxu1 %v3914_v56  ;;  %v2249_v19 = vmax.f32 %v2247_v54, %v2248_v53  ;;  %v3920_v54 = vld [vmem:[%s5249_s3 + $0x28] sm:$0xff]   ;;  %v3921_v53 = vld [vmem:[%s5249_s3 + $0x70] sm:$0xff]  }
 0x1f4   : > { %v2262_v12 = vrot.slane %v2261_v2, 1  ;;  %v2268_v13 = vmax.f32 %v2266_v55, %v2267_v3  ;;  %v2275_v14 = vmax.f32 %v2273_v22, %v2274_v7  ;;  %v2281_v15 = vrot.slane %v2280_v8, 2  ;;  %3760 = vmatprep.subr.bf16.mxu1 %v3915_v23  ;;  %v3922_v3 = vld [vmem:[%s5249_s3 + $0x30] sm:$0xff]  }
 0x1f5   : > { %v2289_v16 = vmax.f32 %v2287_v61, %v2288_v9  ;;  %v2295_v6 = vrot.slane %v2294_v10, 2  ;;  %v2256_v60 = vmax.f32 %v2254_v1, %v2255_v11  ;;  %v2971_v23 = vld [vmem:[#allocation4 + $0x22] sm:$0xff] }
 0x1f6   : > { %v2263_v20 = vmax.f32 %v2261_v2, %v2262_v12  ;;  %v2269_v21 = vrot.slane %v2268_v13, 1  ;;  %v2276_v24 = vrot.slane %v2275_v14, 1  ;;  %v2282_v26 = vmax.f32 %v2280_v8, %v2281_v15 }
 0x1f7   : > { %v2296_v27 = vmax.f32 %v2294_v10, %v2295_v6  ;;  %v2684_v38 = vsel %vm2663_vm15, %v2256_v60, %v2249_v19  ;;  %v2290_v32 = vrot.slane %v2289_v16, 1  ;;  %3761 = vmatpush3.bf16.msra.mxu1 %v3916_v35  ;;  %v3924_v6 = vld [vmem:[%s5249_s3 + $0x38] sm:$0xff]  }
 0x1f8   : > { %v2270_v37 = vmax.f32 %v2268_v13, %v2269_v21  ;;  %v2685_v28 = vsel %vm2665_vm0, %v2263_v20, %v2684_v38  ;;  %v2277_v63 = vmax.f32 %v2275_v14, %v2276_v24  ;;  %v2283_v29 = vrot.slane %v2282_v26, 1  ;;  %3762 = vmatprep.subr.bf16.mxu1 %v3917_v33 }
 0x1f9   : > { %v2297_v30 = vrot.slane %v2296_v27, 1  ;;  %v2291_v41 = vmax.f32 %v2289_v16, %v2290_v32  ;;  %v3923_v16 = vld [vmem:[%s5249_s3 + $0x78] sm:$0xff]  }
 0x1fa   : > { %v2686_v31 = vsel %vm2667_vm1, %v2270_v37, %v2685_v28  ;;  %v2284_v34 = vmax.f32 %v2282_v26, %v2283_v29 }
 0x1fb   : > { %v2687_v39 = vsel %vm2669_vm2, %v2277_v63, %v2686_v31  ;;  %v2298_v42 = vmax.f32 %v2296_v27, %v2297_v30  ;;  %3763 = vmatpush3.bf16.msra.mxu1 %v3918_v40 }
 0x1fc   : > { %v2688_v45 = vsel %vm2671_vm3, %v2284_v34, %v2687_v39  ;;  %3764 = vmatprep.subr.bf16.mxu1 %v3919_v46 }
 0x1fd   : > { %v2689_v5 = vsel %vm2673_vm4, %v2291_v41, %v2688_v45  ;;  %v3818_v43 = vpop.f32.mrb[12].mxu0 }
 0x1fe   : > { %v2690_v48 = vsel %vm2675_vm5, %v2298_v42, %v2689_v5  ;;  %v1627_v47 = vadd.f32 %v3818_v43, %v4673_v36  ;;  %v1618_v49 = vpop.f32.mrb[13].mxu0 }
 0x1ff   : > { %2737 = vst.msk [vmem:[#allocation4 + $0x31] sm:$0xff] %vm1729_vm13, %v2690_v48  ;;  %v1619_v50 = vadd.f32 %v4673_v36, %v1618_v49  ;;  %v3819_v52 = vpop.f32.mrb[14].mxu0  ;;  %3765 = vmatpush3.bf16.msra.mxu1 %v3920_v54 }
 0x200   : > { %v1711_v57 = vmax.f32 %v1627_v47, 0.0  ;;  %v1630_v58 = vadd.f32 %v3819_v52, %v4673_v36  ;;  %v1621_v55 = vpop.f32.mrb[15].mxu0  ;;  %3766 = vmatprep.subr.bf16.mxu1 %v3921_v53 }
 0x201   : > { %v1709_v22 = vmax.f32 %v1619_v50, 0.0  ;;  %v1622_v59 = vadd.f32 %v4673_v36, %v1621_v55 }
 0x202   : > { %v1749_v61 = vsel %vm1729_vm13, %v1711_v57, -inf  ;;  %v1712_v62 = vmax.f32 %v1630_v58, 0.0 }
 0x203   : > { %v1748_v1 = vsel %vm1729_vm13, %v1709_v22, -inf  ;;  %v1710_v2 = vmax.f32 %v1622_v59, 0.0  ;;  %3767 = vmatpush3.bf16.msra.mxu1 %v3922_v3 }
 0x204   : > { %v1750_v4 = vmax.f32 %v1748_v1, %v1749_v61  ;;  %v1752_v7 = vsel %vm1729_vm13, %v1712_v62, -inf  ;;  %3768 = vmatprep.subr.bf16.mxu1 %v3923_v16 }
 0x205   : > { %v1751_v8 = vsel %vm1729_vm13, %v1710_v2, -inf }
 0x206   : > { %v1896_v9 = vcombine.high %v1750_v4, %v1750_v4  ;;  %v1903_v10 = vrot.slane %v1750_v4, %v4685_v51  ;;  %v1753_v56 = vmax.f32 %v1751_v8, %v1752_v7  ;;  %v4846_v11 = vld [vmem:[#allocation4 + $0x30] sm:$0xff] }
 0x207   : > { %v2762_v12 = vld [vmem:[#allocation4 + $0x31] sm:$0xff]  ;;  %v2915_v14 = vpack.c.bf16 %v4846_v11, %v4763_v17  ;;  %3769 = vmatpush3.bf16.msra.mxu1 %v3924_v6 }
 0x208   : > { %v4848_v13 = vld [vmem:[#allocation4 + $0x32] sm:$0xff]  ;;  %v2768_v15 = vpack.c.bf16 %v2762_v12, %v4765_v18  ;;  %v1910_v19 = vrot.slane %v1896_v9, %v4685_v51  ;;  %v1911_v60 = vcombine.high %v1903_v10, %v1903_v10  ;;  %v2299_v20 = vsel %vm2130_vm14, %v1903_v10, -inf }
 0x209   : > { %v1913_v21 = vcombine.high %v1753_v56, %v1753_v56  ;;  %v2972_v24 = vld [vmem:[#allocation4 + $0x32] sm:$0xff]  ;;  %v2300_v26 = vrot.slane %v2299_v20, 4  ;;  %v1920_v17 = vrot.slane %v1753_v56, %v4685_v51  ;;  %2923 = vrot.lane.b32.xlu0 %v2915_v14, %s4004_s9  ;;  %v2801_v18 = vpack.c.bf16 %v4848_v13, %v4761_v25  ;;  %2756 = vst.msk [vmem:[#allocation5 + $0x18] sm:$0xff] %vm1729_vm13, %v2915_v14 }
 0x20a   : > { %2777 = vrot.lane.b32.xlu1 %v2768_v15, %s4003_s8  ;;  %v2979_v27 = vpack.c.bf16 %v2972_v24, %v2971_v23  ;;  %v1912_v35 = vcombine.high %v1910_v19, %v1910_v19  ;;  %v2306_v37 = vsel %vm2130_vm14, %v1911_v60, -inf  ;;  %v2313_v38 = vsel %vm2130_vm14, %v1910_v19, -inf }
 0x20b   : > { %v1927_v32 = vrot.slane %v1913_v21, %v4685_v51  ;;  %v2301_v28 = vmax.f32 %v2299_v20, %v2300_v26  ;;  %v2307_v63 = vrot.slane %v2306_v37, 4  ;;  %v2314_v29 = vrot.slane %v2313_v38, 4 }
 0x20c   : > { %v1928_v30 = vcombine.high %v1920_v17, %v1920_v17  ;;  %2983 = vst.msk [vmem:[#allocation5 + $0x10] sm:$0xff] %vm1729_vm13, %v2979_v27  ;;  %v2320_v25 = vsel %vm2130_vm14, %v1912_v35, -inf  ;;  %v2327_v33 = vsel %vm2130_vm14, %v1920_v17, -inf }
 0x20d   : > { %v1929_v31 = vcombine.high %v1927_v32, %v1927_v32  ;;  %v2341_v34 = vsel %vm2130_vm14, %v1927_v32, -inf  ;;  %v2302_v39 = vrot.slane %v2301_v28, 2  ;;  %v2308_v40 = vmax.f32 %v2306_v37, %v2307_v63  ;;  %2955 = vrot.lane.b32.xlu0 %v2768_v15, %s4005_s10 }
 0x20e   : > { %v2315_v41 = vmax.f32 %v2313_v38, %v2314_v29  ;;  %v2321_v42 = vrot.slane %v2320_v25, 4  ;;  %2810 = vrot.lane.b32.xlu1 %v2801_v18, %s4004_s9  ;;  %v2328_v45 = vrot.slane %v2327_v33, 4  ;;  %v2334_v5 = vsel %vm2130_vm14, %v1928_v30, -inf }
 0x20f   : > { %v2342_v43 = vrot.slane %v2341_v34, 4  ;;  %v2348_v46 = vsel %vm2130_vm14, %v1929_v31, -inf  ;;  %v2303_v48 = vmax.f32 %v2301_v28, %v2302_v39  ;;  %v2309_v47 = vrot.slane %v2308_v40, 2 }
 0x210   : > { %v2316_v49 = vrot.slane %v2315_v41, 2  ;;  %v2322_v50 = vmax.f32 %v2320_v25, %v2321_v42  ;;  %v2329_v52 = vmax.f32 %v2327_v33, %v2328_v45  ;;  %v2335_v54 = vrot.slane %v2334_v5, 4 }
 0x211   : > { %v2343_v57 = vmax.f32 %v2341_v34, %v2342_v43  ;;  %v2349_v58 = vrot.slane %v2348_v46, 4  ;;  %v2304_v55 = vrot.slane %v2303_v48, 1  ;;  %v2310_v22 = vmax.f32 %v2308_v40, %v2309_v47 }
 0x212   : > { %v2317_v59 = vmax.f32 %v2315_v41, %v2316_v49  ;;  %v2323_v61 = vrot.slane %v2322_v50, 2  ;;  %v2330_v62 = vrot.slane %v2329_v52, 2  ;;  %v2336_v53 = vmax.f32 %v2334_v5, %v2335_v54 }
 0x213   : > { %v2344_v1 = vrot.slane %v2343_v57, 2  ;;  %v2350_v2 = vmax.f32 %v2348_v46, %v2349_v58  ;;  %v2311_v3 = vrot.slane %v2310_v22, 1  ;;  %v2305_v12 = vmax.f32 %v2303_v48, %v2304_v55 }
 0x214   : > { %v2318_v4 = vrot.slane %v2317_v59, 1  ;;  %v2324_v7 = vmax.f32 %v2322_v50, %v2323_v61  ;;  %v2331_v8 = vmax.f32 %v2329_v52, %v2330_v62  ;;  %v2337_v9 = vrot.slane %v2336_v53, 2  ;;  %v2860_v52 = vld [vmem:[#allocation4 + $0x31] sm:$0xff] }
 0x215   : > { %v2345_v10 = vmax.f32 %v2343_v57, %v2344_v1  ;;  %v2351_v56 = vrot.slane %v2350_v2, 2  ;;  %v2312_v14 = vmax.f32 %v2310_v22, %v2311_v3 }
 0x216   : > { %v2319_v15 = vmax.f32 %v2317_v59, %v2318_v4  ;;  %v2325_v16 = vrot.slane %v2324_v7, 1  ;;  %v2332_v6 = vrot.slane %v2331_v8, 1  ;;  %v2338_v19 = vmax.f32 %v2336_v53, %v2337_v9 }
 0x217   : > { %v2352_v60 = vmax.f32 %v2350_v2, %v2351_v56  ;;  %v2691_v21 = vsel %vm2663_vm15, %v2312_v14, %v2305_v12  ;;  %v2346_v23 = vrot.slane %v2345_v10, 1 }
 0x218   : > { %v2326_v20 = vmax.f32 %v2324_v7, %v2325_v16  ;;  %v2692_v24 = vsel %vm2665_vm0, %v2319_v15, %v2691_v21  ;;  %v2333_v26 = vmax.f32 %v2331_v8, %v2332_v6  ;;  %v2339_v17 = vrot.slane %v2338_v19, 1 }
 0x219   : > { %v2353_v18 = vrot.slane %v2352_v60, 1  ;;  %v2347_v38 = vmax.f32 %v2345_v10, %v2346_v23 }
 0x21a   : > { %v2693_v27 = vsel %vm2667_vm1, %v2326_v20, %v2692_v24  ;;  %v2340_v35 = vmax.f32 %v2338_v19, %v2339_v17 }
 0x21b   : > { %v2694_v37 = vsel %vm2669_vm2, %v2333_v26, %v2693_v27  ;;  %v2354_v32 = vmax.f32 %v2352_v60, %v2353_v18 }
 0x21c   : > { %v2695_v28 = vsel %vm2671_vm3, %v2340_v35, %v2694_v37 }
 0x21d   : > { %v2696_v63 = vsel %vm2673_vm4, %v2347_v38, %v2695_v28  ;;  %v3822_v29 = vpop.f32.mrb[16].mxu0 }
 0x21e   : > { %v2697_v30 = vsel %vm2675_vm5, %v2354_v32, %v2696_v63  ;;  %v1643_v25 = vadd.f32 %v3822_v29, %v4673_v36  ;;  %v1634_v31 = vpop.f32.mrb[17].mxu0 }
 0x21f   : > { %2738 = vst.msk [vmem:[#allocation4 + $0x41] sm:$0xff] %vm1729_vm13, %v2697_v30  ;;  %v1635_v33 = vadd.f32 %v4673_v36, %v1634_v31  ;;  %v3823_v34 = vpop.f32.mrb[18].mxu0 }
 0x220   : > { %v1715_v39 = vmax.f32 %v1643_v25, 0.0  ;;  %v1646_v40 = vadd.f32 %v3823_v34, %v4673_v36  ;;  %v1637_v41 = vpop.f32.mrb[19].mxu0 }
 0x221   : > { %v1713_v42 = vmax.f32 %v1635_v33, 0.0  ;;  %v1638_v45 = vadd.f32 %v4673_v36, %v1637_v41 }
 0x222   : > { %v1755_v5 = vsel %vm1729_vm13, %v1715_v39, -inf  ;;  %v1716_v43 = vmax.f32 %v1646_v40, 0.0 }
 0x223   : > { %v1754_v46 = vsel %vm1729_vm13, %v1713_v42, -inf  ;;  %v1714_v48 = vmax.f32 %v1638_v45, 0.0 }
 0x224   : > { %v1756_v47 = vmax.f32 %v1754_v46, %v1755_v5  ;;  %v1758_v49 = vsel %vm1729_vm13, %v1716_v43, -inf }
 0x225   : > { %v1757_v50 = vsel %vm1729_vm13, %v1714_v48, -inf }
 0x226   : > { %v1930_v54 = vcombine.high %v1756_v47, %v1756_v47  ;;  %v1937_v57 = vrot.slane %v1756_v47, %v4685_v51  ;;  %v1759_v58 = vmax.f32 %v1757_v50, %v1758_v49  ;;  %v4895_v55 = vld [vmem:[#allocation4 + $0x42] sm:$0xff] }
 0x227   : > { %v4897_v22 = vld [vmem:[#allocation4 + $0x40] sm:$0xff]  ;;  %v2883_v59 = vpack.c.bf16 %v4895_v55, %v4848_v13 }
 0x228   : > { %v4899_v36 = vld [vmem:[#allocation4 + $0x41] sm:$0xff]  ;;  %v2834_v61 = vpack.c.bf16 %v4897_v22, %v4846_v11  ;;  %v1944_v53 = vrot.slane %v1930_v54, %v4685_v51  ;;  %v1945_v1 = vcombine.high %v1937_v57, %v1937_v57  ;;  %v2355_v2 = vsel %vm2130_vm14, %v1937_v57, -inf }
 0x229   : > { %v2867_v62 = vpack.c.bf16 %v4899_v36, %v2860_v52  ;;  %v1947_v3 = vcombine.high %v1759_v58, %v1759_v58  ;;  %v2356_v4 = vrot.slane %v2355_v2, 4  ;;  %v1954_v7 = vrot.slane %v1759_v58, %v4685_v51  ;;  %2892 = vrot.lane.b32.xlu0 %v2883_v59, %s4003_s8 }
 0x22a   : > { %2843 = vrot.lane.b32.xlu1 %v2834_v61, %s4005_s10  ;;  %v1946_v13 = vcombine.high %v1944_v53, %v1944_v53  ;;  %v2362_v11 = vsel %vm2130_vm14, %v1945_v1, -inf  ;;  %v2369_v8 = vsel %vm2130_vm14, %v1944_v53, -inf }
 0x22b   : > { %2871 = vst.msk [vmem:[#allocation5 + $0x20] sm:$0xff] %vm1729_vm13, %v2867_v62  ;;  %v1961_v9 = vrot.slane %v1947_v3, %v4685_v51  ;;  %v2357_v10 = vmax.f32 %v2355_v2, %v2356_v4  ;;  %v2363_v56 = vrot.slane %v2362_v11, 4  ;;  %v2370_v12 = vrot.slane %v2369_v8, 4 }
 0x22c   : > { %v1962_v14 = vcombine.high %v1954_v7, %v1954_v7  ;;  %v2376_v15 = vsel %vm2130_vm14, %v1946_v13, -inf  ;;  %v2383_v6 = vsel %vm2130_vm14, %v1954_v7, -inf }
 0x22d   : > { %v1963_v16 = vcombine.high %v1961_v9, %v1961_v9  ;;  %v2397_v19 = vsel %vm2130_vm14, %v1961_v9, -inf  ;;  %v2358_v60 = vrot.slane %v2357_v10, 2  ;;  %v2364_v20 = vmax.f32 %v2362_v11, %v2363_v56 }
 0x22e   : > { %v2371_v21 = vmax.f32 %v2369_v8, %v2370_v12  ;;  %v2377_v23 = vrot.slane %v2376_v15, 4  ;;  %v2384_v24 = vrot.slane %v2383_v6, 4  ;;  %v2390_v26 = vsel %vm2130_vm14, %v1962_v14, -inf }
 0x22f   : > { %v2398_v17 = vrot.slane %v2397_v19, 4  ;;  %v2404_v18 = vsel %vm2130_vm14, %v1963_v16, -inf  ;;  %v2359_v27 = vmax.f32 %v2357_v10, %v2358_v60  ;;  %v2365_v35 = vrot.slane %v2364_v20, 2  ;;  %v4931_v16 = vld [vmem:[%s5248_s2] ss:$0 sm:$0xff] }
 0x230   : > { %v2372_v37 = vrot.slane %v2371_v21, 2  ;;  %v2378_v38 = vmax.f32 %v2376_v15, %v2377_v23  ;;  %v2385_v32 = vmax.f32 %v2383_v6, %v2384_v24  ;;  %v2391_v28 = vrot.slane %v2390_v26, 4 }
 0x231   : > { %v2399_v63 = vmax.f32 %v2397_v19, %v2398_v17  ;;  %v2405_v29 = vrot.slane %v2404_v18, 4  ;;  %v2360_v30 = vrot.slane %v2359_v27, 1  ;;  %v2366_v25 = vmax.f32 %v2364_v20, %v2365_v35 }
 0x232   : > { %v2373_v31 = vmax.f32 %v2371_v21, %v2372_v37  ;;  %v2379_v33 = vrot.slane %v2378_v38, 2  ;;  %v2386_v34 = vrot.slane %v2385_v32, 2  ;;  %v2392_v39 = vmax.f32 %v2390_v26, %v2391_v28 }
 0x233   : > { %v2400_v40 = vrot.slane %v2399_v63, 2  ;;  %v2406_v41 = vmax.f32 %v2404_v18, %v2405_v29  ;;  %v2367_v42 = vrot.slane %v2366_v25, 1  ;;  %v2361_v49 = vmax.f32 %v2359_v27, %v2360_v30  ;;  %v2973_v29 = vld [vmem:[#allocation4 + $0x42] sm:$0xff] }
 0x234   : > { %v2374_v45 = vrot.slane %v2373_v31, 1  ;;  %v2380_v5 = vmax.f32 %v2378_v38, %v2379_v33  ;;  %v2387_v43 = vmax.f32 %v2385_v32, %v2386_v34  ;;  %v2393_v46 = vrot.slane %v2392_v39, 2 }
 0x235   : > { %v2401_v48 = vmax.f32 %v2399_v63, %v2400_v40  ;;  %v2407_v47 = vrot.slane %v2406_v41, 2  ;;  %v2368_v50 = vmax.f32 %v2366_v25, %v2367_v42 }
 0x236   : > { %v2375_v52 = vmax.f32 %v2373_v31, %v2374_v45  ;;  %v2381_v54 = vrot.slane %v2380_v5, 1  ;;  %v2388_v57 = vrot.slane %v2387_v43, 1  ;;  %v2394_v58 = vmax.f32 %v2392_v39, %v2393_v46 }
 0x237   : > { %v2408_v59 = vmax.f32 %v2406_v41, %v2407_v47  ;;  %v2698_v62 = vsel %vm2663_vm15, %v2368_v50, %v2361_v49  ;;  %v2402_v53 = vrot.slane %v2401_v48, 1 }
 0x238   : > { %v2382_v61 = vmax.f32 %v2380_v5, %v2381_v54  ;;  %v2699_v1 = vsel %vm2665_vm0, %v2375_v52, %v2698_v62  ;;  %v2389_v2 = vmax.f32 %v2387_v43, %v2388_v57  ;;  %v2395_v3 = vrot.slane %v2394_v58, 1 }
 0x239   : > { %v2409_v4 = vrot.slane %v2408_v59, 1  ;;  %v2403_v8 = vmax.f32 %v2401_v48, %v2402_v53 }
 0x23a   : > { %v2700_v7 = vsel %vm2667_vm1, %v2382_v61, %v2699_v1  ;;  %v2396_v13 = vmax.f32 %v2394_v58, %v2395_v3 }
 0x23b   : > { %v2701_v11 = vsel %vm2669_vm2, %v2389_v2, %v2700_v7  ;;  %v2776_v9 = vpop.permute.xlu1 %2775  ;;  %v2410_v10 = vmax.f32 %v2408_v59, %v2409_v4 }
 0x23c   : > { %v2702_v56 = vsel %vm2671_vm3, %v2396_v13, %v2701_v11  ;;  %2788 = vst.msk [vmem:[#allocation5] sm:$0xff] %vm2787_vm6, %v2776_v9 }
 0x23d   : > { %v2703_v12 = vsel %vm2673_vm4, %v2403_v8, %v2702_v56  ;;  %v3826_v14 = vpop.f32.mrb[20].mxu0 }
 0x23e   : > { %v2704_v15 = vsel %vm2675_vm5, %v2410_v10, %v2703_v12  ;;  %v1659_v6 = vadd.f32 %v4931_v16, %v3826_v14  ;;  %v1650_v19 = vpop.f32.mrb[21].mxu0 }
 0x23f   : > { %2739 = vst.msk [vmem:[#allocation4 + $0x51] sm:$0xff] %vm1729_vm13, %v2704_v15  ;;  %v1651_v60 = vadd.f32 %v4931_v16, %v1650_v19  ;;  %v2809_v20 = vpop.permute.xlu1 %2808  ;;  %v3827_v21 = vpop.f32.mrb[22].mxu0 }
 0x240   : > { %v1719_v23 = vmax.f32 %v1659_v6, 0.0  ;;  %2821 = vst.msk [vmem:[#allocation5] sm:$0xff] %vm2820_vm7, %v2809_v20  ;;  %v1662_v24 = vadd.f32 %v4931_v16, %v3827_v21  ;;  %v1653_v26 = vpop.f32.mrb[23].mxu0 }
 0x241   : > { %v1717_v17 = vmax.f32 %v1651_v60, 0.0  ;;  %v1654_v18 = vadd.f32 %v4931_v16, %v1653_v26 }
 0x242   : > { %v1761_v27 = vsel %vm1729_vm13, %v1719_v23, -inf  ;;  %v1720_v35 = vmax.f32 %v1662_v24, 0.0 }
 0x243   : > { %v1760_v37 = vsel %vm1729_vm13, %v1717_v17, -inf  ;;  %v1718_v38 = vmax.f32 %v1654_v18, 0.0 }
 0x244   : > { %v1762_v32 = vmax.f32 %v1760_v37, %v1761_v27  ;;  %v1764_v28 = vsel %vm1729_vm13, %v1720_v35, -inf }
 0x245   : > { %v1763_v63 = vsel %vm1729_vm13, %v1718_v38, -inf }
 0x246   : > { %v1964_v30 = vcombine.high %v1762_v32, %v1762_v32  ;;  %v1971_v25 = vrot.slane %v1762_v32, %v4685_v51  ;;  %v1765_v31 = vmax.f32 %v1763_v63, %v1764_v28  ;;  %v4944_v33 = vld [vmem:[#allocation4 + $0x50] sm:$0xff] }
 0x247   : > { %v4946_v34 = vld [vmem:[#allocation4 + $0x51] sm:$0xff]  ;;  %v2916_v40 = vpack.c.bf16 %v4944_v33, %v4897_v22 }
 0x248   : > { %v4948_v39 = vld [vmem:[#allocation4 + $0x52] sm:$0xff]  ;;  %v2769_v41 = vpack.c.bf16 %v4946_v34, %v4899_v36  ;;  %v1978_v45 = vrot.slane %v1964_v30, %v4685_v51  ;;  %v1979_v5 = vcombine.high %v1971_v25, %v1971_v25  ;;  %v2411_v43 = vsel %vm2130_vm14, %v1971_v25, -inf }
 0x249   : > { %v2980_v42 = vpack.c.bf16 %v4948_v39, %v2973_v29  ;;  %v1981_v46 = vcombine.high %v1765_v31, %v1765_v31  ;;  %v2412_v48 = vrot.slane %v2411_v43, 4  ;;  %v1988_v47 = vrot.slane %v1765_v31, %v4685_v51  ;;  %2925 = vrot.lane.b32.xlu0 %v2916_v40, %s4004_s9  ;;  %2757 = vst.msk [vmem:[#allocation5 + $0x30] sm:$0xff] %vm1729_vm13, %v2916_v40 }
 0x24a   : > { %2779 = vrot.lane.b32.xlu1 %v2769_v41, %s4003_s8  ;;  %v2802_v22 = vpack.c.bf16 %v4948_v39, %v4895_v55  ;;  %v1980_v36 = vcombine.high %v1978_v45, %v1978_v45  ;;  %v2418_v49 = vsel %vm2130_vm14, %v1979_v5, -inf  ;;  %v2425_v50 = vsel %vm2130_vm14, %v1978_v45, -inf }
 0x24b   : > { %2984 = vst.msk [vmem:[#allocation5 + $0x28] sm:$0xff] %vm1729_vm13, %v2980_v42  ;;  %v1995_v52 = vrot.slane %v1981_v46, %v4685_v51  ;;  %v2413_v54 = vmax.f32 %v2411_v43, %v2412_v48  ;;  %v2419_v57 = vrot.slane %v2418_v49, 4  ;;  %v2426_v58 = vrot.slane %v2425_v50, 4 }
 0x24c   : > { %v1996_v59 = vcombine.high %v1988_v47, %v1988_v47  ;;  %v2432_v61 = vsel %vm2130_vm14, %v1980_v36, -inf  ;;  %v2439_v55 = vsel %vm2130_vm14, %v1988_v47, -inf }
 0x24d   : > { %v1997_v62 = vcombine.high %v1995_v52, %v1995_v52  ;;  %v2453_v53 = vsel %vm2130_vm14, %v1995_v52, -inf  ;;  %v2414_v1 = vrot.slane %v2413_v54, 2  ;;  %v2420_v2 = vmax.f32 %v2418_v49, %v2419_v57  ;;  %2957 = vrot.lane.b32.xlu0 %v2769_v41, %s4005_s10 }
 0x24e   : > { %v2427_v3 = vmax.f32 %v2425_v50, %v2426_v58  ;;  %v2433_v4 = vrot.slane %v2432_v61, 4  ;;  %2812 = vrot.lane.b32.xlu1 %v2802_v22, %s4004_s9  ;;  %v2440_v7 = vrot.slane %v2439_v55, 4  ;;  %v2446_v13 = vsel %vm2130_vm14, %v1996_v59, -inf }
 0x24f   : > { %v2454_v11 = vrot.slane %v2453_v53, 4  ;;  %v2460_v8 = vsel %vm2130_vm14, %v1997_v62, -inf  ;;  %v2415_v9 = vmax.f32 %v2413_v54, %v2414_v1  ;;  %v2421_v10 = vrot.slane %v2420_v2, 2 }
 0x250   : > { %v2428_v56 = vrot.slane %v2427_v3, 2  ;;  %v2434_v12 = vmax.f32 %v2432_v61, %v2433_v4  ;;  %v2441_v14 = vmax.f32 %v2439_v55, %v2440_v7  ;;  %v2447_v15 = vrot.slane %v2446_v13, 4 }
 0x251   : > { %v2455_v6 = vmax.f32 %v2453_v53, %v2454_v11  ;;  %v2461_v19 = vrot.slane %v2460_v8, 4  ;;  %v2416_v60 = vrot.slane %v2415_v9, 1  ;;  %v2422_v20 = vmax.f32 %v2420_v2, %v2421_v10 }
 0x252   : > { %v2429_v21 = vmax.f32 %v2427_v3, %v2428_v56  ;;  %v2435_v23 = vrot.slane %v2434_v12, 2  ;;  %v2442_v24 = vrot.slane %v2441_v14, 2  ;;  %v2448_v26 = vmax.f32 %v2446_v13, %v2447_v15 }
 0x253   : > { %v2456_v17 = vrot.slane %v2455_v6, 2  ;;  %v2462_v18 = vmax.f32 %v2460_v8, %v2461_v19  ;;  %v2423_v27 = vrot.slane %v2422_v20, 1  ;;  %v2417_v29 = vmax.f32 %v2415_v9, %v2416_v60 }
 0x254   : > { %v2430_v35 = vrot.slane %v2429_v21, 1  ;;  %v2436_v37 = vmax.f32 %v2434_v12, %v2435_v23  ;;  %v2443_v38 = vmax.f32 %v2441_v14, %v2442_v24  ;;  %v2449_v32 = vrot.slane %v2448_v26, 2 }
 0x255   : > { %v2457_v28 = vmax.f32 %v2455_v6, %v2456_v17  ;;  %v2463_v63 = vrot.slane %v2462_v18, 2  ;;  %v2424_v30 = vmax.f32 %v2422_v20, %v2423_v27 }
 0x256   : > { %v2431_v25 = vmax.f32 %v2429_v21, %v2430_v35  ;;  %v2437_v31 = vrot.slane %v2436_v37, 1  ;;  %v2444_v40 = vrot.slane %v2443_v38, 1  ;;  %v2450_v41 = vmax.f32 %v2448_v26, %v2449_v32 }
 0x257   : > { %v2464_v42 = vmax.f32 %v2462_v18, %v2463_v63  ;;  %v2705_v5 = vsel %vm2663_vm15, %v2424_v30, %v2417_v29  ;;  %v2458_v43 = vrot.slane %v2457_v28, 1 }
 0x258   : > { %v2438_v45 = vmax.f32 %v2436_v37, %v2437_v31  ;;  %v2706_v46 = vsel %vm2665_vm0, %v2431_v25, %v2705_v5  ;;  %v2445_v48 = vmax.f32 %v2443_v38, %v2444_v40  ;;  %v2451_v47 = vrot.slane %v2450_v41, 1 }
 0x259   : > { %v2465_v22 = vrot.slane %v2464_v42, 1  ;;  %v2459_v52 = vmax.f32 %v2457_v28, %v2458_v43 }
 0x25a   : > { %v2707_v36 = vsel %vm2667_vm1, %v2438_v45, %v2706_v46  ;;  %v2452_v49 = vmax.f32 %v2450_v41, %v2451_v47 }
 0x25b   : > { %v2708_v50 = vsel %vm2669_vm2, %v2445_v48, %v2707_v36  ;;  %v2891_v54 = vpop.permute.xlu0 %2890  ;;  %v2466_v58 = vmax.f32 %v2464_v42, %v2465_v22 }
 0x25c   : > { %v2842_v57 = vpop.permute.xlu1 %2841  ;;  %v2709_v59 = vsel %vm2671_vm3, %v2452_v49, %v2708_v50  ;;  %2902 = vst.msk [vmem:[#allocation5 + $0x8] sm:$0xff] %vm2787_vm6, %v2891_v54 }
 0x25d   : > { %2854 = vst.msk [vmem:[#allocation5] sm:$0xff] %vm2853_vm8, %v2842_v57  ;;  %v2710_v61 = vsel %vm2673_vm4, %v2459_v52, %v2709_v59  ;;  %v3830_v62 = vpop.f32.mrb[24].mxu0 }
 0x25e   : > { %v2711_v55 = vsel %vm2675_vm5, %v2466_v58, %v2710_v61  ;;  %v1675_v53 = vadd.f32 %v4931_v16, %v3830_v62  ;;  %v1666_v1 = vpop.f32.mrb[25].mxu0 }
 0x25f   : > { %2740 = vst.msk [vmem:[#allocation4 + $0x61] sm:$0xff] %vm1729_vm13, %v2711_v55  ;;  %v1667_v2 = vadd.f32 %v4931_v16, %v1666_v1  ;;  %v3831_v3 = vpop.f32.mrb[26].mxu0 }
 0x260   : > { %v1723_v4 = vmax.f32 %v1675_v53, 0.0  ;;  %v1678_v7 = vadd.f32 %v4931_v16, %v3831_v3  ;;  %v1669_v13 = vpop.f32.mrb[27].mxu0 }
 0x261   : > { %v1721_v11 = vmax.f32 %v1667_v2, 0.0  ;;  %v1670_v8 = vadd.f32 %v4931_v16, %v1669_v13 }
 0x262   : > { %v1767_v9 = vsel %vm1729_vm13, %v1723_v4, -inf  ;;  %v1724_v10 = vmax.f32 %v1678_v7, 0.0 }
 0x263   : > { %v1766_v56 = vsel %vm1729_vm13, %v1721_v11, -inf  ;;  %v1722_v12 = vmax.f32 %v1670_v8, 0.0 }
 0x264   : > { %v1768_v14 = vmax.f32 %v1766_v56, %v1767_v9  ;;  %v1770_v15 = vsel %vm1729_vm13, %v1724_v10, -inf }
 0x265   : > { %v1769_v6 = vsel %vm1729_vm13, %v1722_v12, -inf }
 0x266   : > { %v1998_v19 = vcombine.high %v1768_v14, %v1768_v14  ;;  %v2005_v60 = vrot.slane %v1768_v14, %v4685_v51  ;;  %v1771_v20 = vmax.f32 %v1769_v6, %v1770_v15  ;;  %v4993_v21 = vld [vmem:[#allocation4 + $0x62] sm:$0xff] }
 0x267   : > { %v4995_v23 = vld [vmem:[#allocation4 + $0x60] sm:$0xff]  ;;  %v2884_v26 = vpack.c.bf16 %v4993_v21, %v4948_v39 }
 0x268   : > { %v4997_v24 = vld [vmem:[#allocation4 + $0x61] sm:$0xff]  ;;  %v2835_v17 = vpack.c.bf16 %v4995_v23, %v4944_v33  ;;  %v2012_v27 = vrot.slane %v1998_v19, %v4685_v51  ;;  %v2013_v35 = vcombine.high %v2005_v60, %v2005_v60  ;;  %v2467_v37 = vsel %vm2130_vm14, %v2005_v60, -inf }
 0x269   : > { %v2868_v18 = vpack.c.bf16 %v4997_v24, %v4946_v34  ;;  %v2015_v38 = vcombine.high %v1771_v20, %v1771_v20  ;;  %v2468_v32 = vrot.slane %v2467_v37, 4  ;;  %v2022_v28 = vrot.slane %v1771_v20, %v4685_v51  ;;  %2894 = vrot.lane.b32.xlu0 %v2884_v26, %s4003_s8 }
 0x26a   : > { %2845 = vrot.lane.b32.xlu1 %v2835_v17, %s4005_s10  ;;  %v2014_v39 = vcombine.high %v2012_v27, %v2012_v27  ;;  %v2474_v33 = vsel %vm2130_vm14, %v2013_v35, -inf  ;;  %v2481_v34 = vsel %vm2130_vm14, %v2012_v27, -inf }
 0x26b   : > { %2872 = vst.msk [vmem:[#allocation5 + $0x38] sm:$0xff] %vm1729_vm13, %v2868_v18  ;;  %v2029_v63 = vrot.slane %v2015_v38, %v4685_v51  ;;  %v2469_v29 = vmax.f32 %v2467_v37, %v2468_v32  ;;  %v2475_v30 = vrot.slane %v2474_v33, 4  ;;  %v2482_v25 = vrot.slane %v2481_v34, 4 }
 0x26c   : > { %v2030_v31 = vcombine.high %v2022_v28, %v2022_v28  ;;  %v2488_v40 = vsel %vm2130_vm14, %v2014_v39, -inf  ;;  %v2495_v42 = vsel %vm2130_vm14, %v2022_v28, -inf }
 0x26d   : > { %v2031_v41 = vcombine.high %v2029_v63, %v2029_v63  ;;  %v2509_v45 = vsel %vm2130_vm14, %v2029_v63, -inf  ;;  %v2470_v5 = vrot.slane %v2469_v29, 2  ;;  %v2476_v43 = vmax.f32 %v2474_v33, %v2475_v30 }
 0x26e   : > { %v2483_v46 = vmax.f32 %v2481_v34, %v2482_v25  ;;  %v2489_v48 = vrot.slane %v2488_v40, 4  ;;  %v2496_v47 = vrot.slane %v2495_v42, 4  ;;  %v2502_v22 = vsel %vm2130_vm14, %v2030_v31, -inf }
 0x26f   : > { %v2510_v36 = vrot.slane %v2509_v45, 4  ;;  %v2516_v49 = vsel %vm2130_vm14, %v2031_v41, -inf  ;;  %v2471_v50 = vmax.f32 %v2469_v29, %v2470_v5  ;;  %v2477_v52 = vrot.slane %v2476_v43, 2 }
 0x270   : > { %v2484_v54 = vrot.slane %v2483_v46, 2  ;;  %v2490_v57 = vmax.f32 %v2488_v40, %v2489_v48  ;;  %v2497_v58 = vmax.f32 %v2495_v42, %v2496_v47  ;;  %v2503_v59 = vrot.slane %v2502_v22, 4 }
 0x271   : > { %v2511_v61 = vmax.f32 %v2509_v45, %v2510_v36  ;;  %v2517_v62 = vrot.slane %v2516_v49, 4  ;;  %v2472_v55 = vrot.slane %v2471_v50, 1  ;;  %v2478_v53 = vmax.f32 %v2476_v43, %v2477_v52 }
 0x272   : > { %v2485_v1 = vmax.f32 %v2483_v46, %v2484_v54  ;;  %v2491_v2 = vrot.slane %v2490_v57, 2  ;;  %v2498_v3 = vrot.slane %v2497_v58, 2  ;;  %v2504_v4 = vmax.f32 %v2502_v22, %v2503_v59 }
 0x273   : > { %v2512_v7 = vrot.slane %v2511_v61, 2  ;;  %v2518_v13 = vmax.f32 %v2516_v49, %v2517_v62  ;;  %v2479_v11 = vrot.slane %v2478_v53, 1  ;;  %v2473_v15 = vmax.f32 %v2471_v50, %v2472_v55 }
 0x274   : > { %v2486_v8 = vrot.slane %v2485_v1, 1  ;;  %v2492_v9 = vmax.f32 %v2490_v57, %v2491_v2  ;;  %v2499_v10 = vmax.f32 %v2497_v58, %v2498_v3  ;;  %v2505_v56 = vrot.slane %v2504_v4, 2 }
 0x275   : > { %v2513_v12 = vmax.f32 %v2511_v61, %v2512_v7  ;;  %v2519_v14 = vrot.slane %v2518_v13, 2  ;;  %v2480_v6 = vmax.f32 %v2478_v53, %v2479_v11 }
 0x276   : > { %v2487_v19 = vmax.f32 %v2485_v1, %v2486_v8  ;;  %v2493_v60 = vrot.slane %v2492_v9, 1  ;;  %v2500_v20 = vrot.slane %v2499_v10, 1  ;;  %v2506_v26 = vmax.f32 %v2504_v4, %v2505_v56 }
 0x277   : > { %v2520_v17 = vmax.f32 %v2518_v13, %v2519_v14  ;;  %v2712_v27 = vsel %vm2663_vm15, %v2480_v6, %v2473_v15  ;;  %v2514_v35 = vrot.slane %v2513_v12, 1 }
 0x278   : > { %v2494_v18 = vmax.f32 %v2492_v9, %v2493_v60  ;;  %v2713_v37 = vsel %vm2665_vm0, %v2487_v19, %v2712_v27  ;;  %v2501_v38 = vmax.f32 %v2499_v10, %v2500_v20  ;;  %v2507_v32 = vrot.slane %v2506_v26, 1 }
 0x279   : > { %v2521_v28 = vrot.slane %v2520_v17, 1  ;;  %v2515_v29 = vmax.f32 %v2513_v12, %v2514_v35 }
 0x27a   : > { %v2714_v39 = vsel %vm2667_vm1, %v2494_v18, %v2713_v37  ;;  %v2508_v33 = vmax.f32 %v2506_v26, %v2507_v32  ;;  %v3834_v63 = vpop.f32.mrb[28].mxu0 }
 0x27b   : > { %v2715_v34 = vsel %vm2669_vm2, %v2501_v38, %v2714_v39  ;;  %v1691_v30 = vadd.f32 %v4931_v16, %v3834_v63  ;;  %v2924_v25 = vpop.permute.xlu0 %2923  ;;  %v2522_v40 = vmax.f32 %v2520_v17, %v2521_v28  ;;  %v1682_v42 = vpop.f32.mrb[29].mxu0 }
 0x27c   : > { %v2778_v31 = vpop.permute.xlu1 %2777  ;;  %v2716_v41 = vsel %vm2671_vm3, %v2508_v33, %v2715_v34  ;;  %2935 = vst.msk [vmem:[#allocation5 + $0x8] sm:$0xff] %vm2820_vm7, %v2924_v25  ;;  %v1683_v43 = vadd.f32 %v4931_v16, %v1682_v42  ;;  %v3835_v46 = vpop.f32.mrb[30].mxu0 }
 0x27d   : > { %2789 = vst.msk [vmem:[#allocation5 + $0x18] sm:$0xff] %vm2787_vm6, %v2778_v31  ;;  %v2717_v45 = vsel %vm2673_vm4, %v2515_v29, %v2716_v41  ;;  %v1727_v5 = vmax.f32 %v1691_v30, 0.0  ;;  %v1694_v47 = vadd.f32 %v4931_v16, %v3835_v46  ;;  %v1685_v22 = vpop.f32.mrb[31].mxu0 }
 0x27e   : > { %v2718_v48 = vsel %vm2675_vm5, %v2522_v40, %v2717_v45  ;;  %v1725_v49 = vmax.f32 %v1683_v43, 0.0  ;;  %v1686_v50 = vadd.f32 %v4931_v16, %v1685_v22 }
 0x27f   : > { %2741 = vst.msk [vmem:[#allocation4 + $0x71] sm:$0xff] %vm1729_vm13, %v2718_v48  ;;  %v1773_v36 = vsel %vm1729_vm13, %v1727_v5, -inf  ;;  %v2956_v52 = vpop.permute.xlu0 %2955  ;;  %v1728_v57 = vmax.f32 %v1694_v47, 0.0 }
 0x280   : > { %v2811_v54 = vpop.permute.xlu1 %2810  ;;  %2967 = vst.msk [vmem:[#allocation5 + $0x8] sm:$0xff] %vm2853_vm8, %v2956_v52  ;;  %v1772_v58 = vsel %vm1729_vm13, %v1725_v49, -inf  ;;  %v1726_v59 = vmax.f32 %v1686_v50, 0.0 }
 0x281   : > { %2822 = vst.msk [vmem:[#allocation5 + $0x18] sm:$0xff] %vm2820_vm7, %v2811_v54  ;;  %v1774_v61 = vmax.f32 %v1772_v58, %v1773_v36  ;;  %v1776_v62 = vsel %vm1729_vm13, %v1728_v57, -inf }
 0x282   : > { %v1775_v55 = vsel %vm1729_vm13, %v1726_v59, -inf }
 0x283   : > { %v2032_v53 = vcombine.high %v1774_v61, %v1774_v61  ;;  %v2039_v1 = vrot.slane %v1774_v61, %v4685_v51  ;;  %v1777_v2 = vmax.f32 %v1775_v55, %v1776_v62 }
 0x285   : > { %v2046_v16 = vrot.slane %v2032_v53, %v4685_v51  ;;  %v2047_v3 = vcombine.high %v2039_v1, %v2039_v1  ;;  %v2523_v4 = vsel %vm2130_vm14, %v2039_v1, -inf  ;;  %v2049_v7 = vcombine.high %v1777_v2, %v1777_v2 }
 0x286   : > { %v5042_v13 = vld [vmem:[#allocation4 + $0x70] sm:$0xff]  ;;  %v2524_v8 = vrot.slane %v2523_v4, 4  ;;  %v2056_v9 = vrot.slane %v1777_v2, %v4685_v51 }
 0x287   : > { %v5044_v11 = vld [vmem:[#allocation4 + $0x71] sm:$0xff]  ;;  %v2988_v10 = vld [vmem:[#allocation5 + $0x8] sm:$0xff]  ;;  %v2917_v56 = vpack.c.bf16 %v5042_v13, %v4995_v23  ;;  %v2048_v14 = vcombine.high %v2046_v16, %v2046_v16  ;;  %v2530_v15 = vsel %vm2130_vm14, %v2047_v3, -inf  ;;  %v2537_v6 = vsel %vm2130_vm14, %v2046_v16, -inf  ;;  %v2987_v23 = vld [vmem:[#allocation5] sm:$0xff] }
 0x288   : > { %v2770_v12 = vpack.c.bf16 %v5044_v11, %v4997_v24  ;;  %v2063_v19 = vrot.slane %v2049_v7, %v4685_v51  ;;  %3194 = vmatprep.mubr.bf16.mxu1 %v2988_v10  ;;  %v2525_v60 = vmax.f32 %v2523_v4, %v2524_v8  ;;  %v2531_v20 = vrot.slane %v2530_v15, 4  ;;  %v3925_v24 = vld [vmem:[%s5249_s3 + $0x80] sm:$0xff]  }
 0x289   : > { %v2538_v26 = vrot.slane %v2537_v6, 4  ;;  %v2064_v17 = vcombine.high %v2056_v9, %v2056_v9  ;;  %2927 = vrot.lane.b32.xlu0 %v2917_v56, %s4004_s9  ;;  %2758 = vst.msk [vmem:[#allocation5 + $0x48] sm:$0xff] %vm1729_vm13, %v2917_v56  ;;  %v2544_v18 = vsel %vm2130_vm14, %v2048_v14, -inf  ;;  %v2551_v35 = vsel %vm2130_vm14, %v2056_v9, -inf  ;;  %3195 = vmatmul.mubr.bf16.vlgmr.msra.gmra.mrb[0].mxu1 %v2987_v23  ;;  %v2799_v52 = vld [vmem:[#allocation4 + $0x72] sm:$0xff] }
 0x28a   : > { %2781 = vrot.lane.b32.xlu1 %v2770_v12, %s4003_s8  ;;  %v2065_v27 = vcombine.high %v2063_v19, %v2063_v19  ;;  %v2565_v37 = vsel %vm2130_vm14, %v2063_v19, -inf  ;;  %v2526_v38 = vrot.slane %v2525_v60, 2  ;;  %v2532_v32 = vmax.f32 %v2530_v15, %v2531_v20  ;;  %3836 = vmatprep.subr.bf16.mxu1 %v3925_v24 }
 0x28b   : > { %v2539_v28 = vmax.f32 %v2537_v6, %v2538_v26  ;;  %v2545_v39 = vrot.slane %v2544_v18, 4  ;;  %v2552_v33 = vrot.slane %v2551_v35, 4  ;;  %v2558_v34 = vsel %vm2130_vm14, %v2064_v17, -inf  ;;  %3837 = vmatpush3.bf16.msra.mxu1 %v3925_v24 }
 0x28c   : > { %v2566_v63 = vrot.slane %v2565_v37, 4  ;;  %v2572_v29 = vsel %vm2130_vm14, %v2065_v27, -inf  ;;  %v2527_v30 = vmax.f32 %v2525_v60, %v2526_v38  ;;  %v2533_v25 = vrot.slane %v2532_v32, 2 }
 0x28d   : > { %v2540_v31 = vrot.slane %v2539_v28, 2  ;;  %v2546_v40 = vmax.f32 %v2544_v18, %v2545_v39  ;;  %2959 = vrot.lane.b32.xlu0 %v2770_v12, %s4005_s10  ;;  %v2553_v41 = vmax.f32 %v2551_v35, %v2552_v33  ;;  %v2559_v42 = vrot.slane %v2558_v34, 4  ;;  %v3926_v35 = vld [vmem:[%s5249_s3 + $0x88] sm:$0xff]  }
 0x28e   : > { %v2567_v45 = vmax.f32 %v2565_v37, %v2566_v63  ;;  %v2573_v5 = vrot.slane %v2572_v29, 4  ;;  %v2528_v43 = vrot.slane %v2527_v30, 1  ;;  %v2534_v46 = vmax.f32 %v2532_v32, %v2533_v25  ;;  %v2978_v37 = vld [vmem:[#allocation4 + $0x92] sm:$0xff]  ;;  %3838 = vmatprep.subr.bf16.mxu1 %v3926_v35 }
 0x28f   : > { %v2541_v48 = vmax.f32 %v2539_v28, %v2540_v31  ;;  %v2547_v47 = vrot.slane %v2546_v40, 2  ;;  %v2554_v22 = vrot.slane %v2553_v41, 2  ;;  %v2560_v36 = vmax.f32 %v2558_v34, %v2559_v42  ;;  %3839 = vmatpush3.bf16.msra.mxu1 %v3926_v35  ;;  %v2914_v34 = vld [vmem:[#allocation4 + $0x90] sm:$0xff] }
 0x290   : > { %v2568_v49 = vrot.slane %v2567_v45, 2  ;;  %v2574_v50 = vmax.f32 %v2572_v29, %v2573_v5  ;;  %v2529_v54 = vmax.f32 %v2527_v30, %v2528_v43  ;;  %v2535_v57 = vrot.slane %v2534_v46, 1  ;;  %v2946_v25 = vld [vmem:[#allocation4 + $0x91] sm:$0xff]  ;;  %v5113_v35 = vld [vmem:[%s5250_s4] ss:$0 sm:$0xff] }
 0x291   : > { %v2542_v58 = vrot.slane %v2541_v48, 1  ;;  %v2548_v59 = vmax.f32 %v2546_v40, %v2547_v47  ;;  %v2555_v61 = vmax.f32 %v2553_v41, %v2554_v22  ;;  %v2561_v62 = vrot.slane %v2560_v36, 2 }
 0x292   : > { %v2569_v55 = vmax.f32 %v2567_v45, %v2568_v49  ;;  %v2575_v53 = vrot.slane %v2574_v50, 2  ;;  %v2536_v1 = vmax.f32 %v2534_v46, %v2535_v57  ;;  %v2803_v3 = vpack.c.bf16 %v2799_v52, %v4993_v21 }
 0x293   : > { %v2543_v2 = vmax.f32 %v2541_v48, %v2542_v58  ;;  %v2549_v16 = vrot.slane %v2548_v59, 1  ;;  %v2556_v4 = vrot.slane %v2555_v61, 1  ;;  %v2562_v7 = vmax.f32 %v2560_v36, %v2561_v62  ;;  %v2992_v62 = vld [vmem:[#allocation5 + $0x28] sm:$0xff] }
 0x294   : > { %v2576_v8 = vmax.f32 %v2574_v50, %v2575_v53  ;;  %v2719_v10 = vsel %vm2663_vm15, %v2536_v1, %v2529_v54  ;;  %v2570_v56 = vrot.slane %v2569_v55, 1  ;;  %2814 = vrot.lane.b32.xlu1 %v2803_v3, %s4004_s9  ;;  %2985 = vst.msk [vmem:[#allocation5 + $0x40] sm:$0xff] %vm1729_vm13, %v2803_v3 }
 0x295   : > { %v2550_v9 = vmax.f32 %v2548_v59, %v2549_v16  ;;  %v2720_v12 = vsel %vm2665_vm0, %v2543_v2, %v2719_v10  ;;  %v2557_v14 = vmax.f32 %v2555_v61, %v2556_v4  ;;  %v2563_v15 = vrot.slane %v2562_v7, 1  ;;  %v2989_v61 = vld [vmem:[#allocation5 + $0x10] sm:$0xff] }
 0x296   : > { %v2577_v6 = vrot.slane %v2576_v8, 1  ;;  %v2571_v20 = vmax.f32 %v2569_v55, %v2570_v56 }
 0x297   : > { %v2721_v19 = vsel %vm2667_vm1, %v2550_v9, %v2720_v12  ;;  %v2564_v60 = vmax.f32 %v2562_v7, %v2563_v15 }
 0x298   : > { %v2722_v21 = vsel %vm2669_vm2, %v2557_v14, %v2721_v19  ;;  %v2578_v26 = vmax.f32 %v2576_v8, %v2577_v6 }
 0x299   : > { %v2723_v17 = vsel %vm2671_vm3, %v2564_v60, %v2722_v21 }
 0x29a   : > { %v2724_v23 = vsel %vm2673_vm4, %v2571_v20, %v2723_v17 }
 0x29b   : > { %v2893_v24 = vpop.permute.xlu0 %2892  ;;  %v2725_v27 = vsel %vm2675_vm5, %v2578_v26, %v2724_v23  ;;  %v2995_v55 = vld [vmem:[#allocation5 + $0x40] sm:$0xff] }
 0x29c   : > { %v2844_v18 = vpop.permute.xlu1 %2843  ;;  %2903 = vst.msk [vmem:[#allocation5 + $0x20] sm:$0xff] %vm2787_vm6, %v2893_v24 }
 0x29d   : > { %2855 = vst.msk [vmem:[#allocation5 + $0x18] sm:$0xff] %vm2853_vm8, %v2844_v18 }
 0x29e   : > { %2742 = vst.msk [vmem:[#allocation4 + $0x81] sm:$0xff] %vm1729_vm13, %v2725_v27 }
 0x2a4   : > { %v2990_v45 = vld [vmem:[#allocation5 + $0x18] sm:$0xff] }
 0x2a5   : > { %v2881_v38 = vld [vmem:[#allocation4 + $0x82] sm:$0xff] }
 0x2a6   : > { %v2832_v32 = vld [vmem:[#allocation4 + $0x80] sm:$0xff]  ;;  %v2885_v39 = vpack.c.bf16 %v2881_v38, %v2799_v52  ;;  %v2982_v29 = vpack.c.bf16 %v2978_v37, %v2881_v38 }
 0x2a7   : > { %v2945_v28 = vld [vmem:[#allocation4 + $0x81] sm:$0xff]  ;;  %v2836_v33 = vpack.c.bf16 %v2832_v32, %v5042_v13  ;;  %v2918_v30 = vpack.c.bf16 %v2914_v34, %v2832_v32 }
 0x2a8   : > { %v2869_v63 = vpack.c.bf16 %v2945_v28, %v5044_v11  ;;  %2896 = vrot.lane.b32.xlu0 %v2885_v39, %s4003_s8  ;;  %2986 = vst.msk [vmem:[#allocation5 + $0x58] sm:$0xff] %vm1729_vm13, %v2982_v29  ;;  %v2950_v31 = vpack.c.bf16 %v2946_v25, %v2945_v28 }
 0x2a9   : > { %2847 = vrot.lane.b32.xlu1 %v2836_v33, %s4005_s10 }
 0x2aa   : > { %2873 = vst.msk [vmem:[#allocation5 + $0x50] sm:$0xff] %vm1729_vm13, %v2869_v63 }
 0x2ac   : > { %2929 = vrot.lane.b32.xlu0 %v2918_v30, %s4004_s9 }
 0x2af   : > { %v2998_v53 = vld [vmem:[#allocation5 + $0x58] sm:$0xff] }
 0x2b0   : > { %2961 = vrot.lane.b32.xlu0 %v2950_v31, %s4005_s10 }
 0x2bb   : > { %v2926_v13 = vpop.permute.xlu0 %2925 }
 0x2bc   : > { %v2780_v40 = vpop.permute.xlu1 %2779  ;;  %2936 = vst.msk [vmem:[#allocation5 + $0x20] sm:$0xff] %vm2820_vm7, %v2926_v13 }
 0x2bd   : > { %2790 = vst.msk [vmem:[#allocation5 + $0x30] sm:$0xff] %vm2787_vm6, %v2780_v40 }
 0x2bf   : > { %v2958_v11 = vpop.permute.xlu0 %2957 }
 0x2c0   : > { %v2813_v41 = vpop.permute.xlu1 %2812  ;;  %2968 = vst.msk [vmem:[#allocation5 + $0x20] sm:$0xff] %vm2853_vm8, %v2958_v11 }
 0x2c1   : > { %2823 = vst.msk [vmem:[#allocation5 + $0x30] sm:$0xff] %vm2820_vm7, %v2813_v41 }
 0x2c7   : > { %v2991_v42 = vld [vmem:[#allocation5 + $0x20] sm:$0xff] }
 0x2c8   : > { %3202 = vmatprep.mubr.bf16.mxu1 %v2991_v42 }
 0x2c9   : > { %3203 = vmatmul.mubr.bf16.gmra.mrb[4].mxu1 %v2990_v45 }
 0x2db   : > { %v2895_v5 = vpop.permute.xlu0 %2894 }
 0x2dc   : > { %v2846_v43 = vpop.permute.xlu1 %2845  ;;  %2904 = vst.msk [vmem:[#allocation5 + $0x38] sm:$0xff] %vm2787_vm6, %v2895_v5 }
 0x2dd   : > { %2856 = vst.msk [vmem:[#allocation5 + $0x30] sm:$0xff] %vm2853_vm8, %v2846_v43 }
 0x2e4   : > { %v2993_v49 = vld [vmem:[#allocation5 + $0x30] sm:$0xff] }
 0x2fb   : > { %v2928_v46 = vpop.permute.xlu0 %2927 }
 0x2fc   : > { %v2782_v48 = vpop.permute.xlu1 %2781  ;;  %2937 = vst.msk [vmem:[#allocation5 + $0x38] sm:$0xff] %vm2820_vm7, %v2928_v46 }
 0x2fd   : > { %2791 = vst.msk [vmem:[#allocation5 + $0x48] sm:$0xff] %vm2787_vm6, %v2782_v48 }
 0x2ff   : > { %v2960_v47 = vpop.permute.xlu0 %2959 }
 0x300   : > { %2969 = vst.msk [vmem:[#allocation5 + $0x38] sm:$0xff] %vm2853_vm8, %v2960_v47 }
 0x306   : > { %v2815_v22 = vpop.permute.xlu1 %2814 }
 0x307   : > { %v2994_v36 = vld [vmem:[#allocation5 + $0x38] sm:$0xff]  ;;  %2824 = vst.msk [vmem:[#allocation5 + $0x48] sm:$0xff] %vm2820_vm7, %v2815_v22 }
 0x308   : > { %3210 = vmatprep.mubr.bf16.mxu1 %v2994_v36 }
 0x309   : > { %3211 = vmatmul.mubr.bf16.gmra.mrb[8].mxu1 %v2993_v49 }
 0x31a   : > { %v2897_v50 = vpop.permute.xlu0 %2896 }
 0x31b   : > { %v2848_v52 = vpop.permute.xlu1 %2847  ;;  %2905 = vst.msk [vmem:[#allocation5 + $0x50] sm:$0xff] %vm2787_vm6, %v2897_v50 }
 0x31c   : > { %2857 = vst.msk [vmem:[#allocation5 + $0x48] sm:$0xff] %vm2853_vm8, %v2848_v52 }
 0x31e   : > { %v2930_v54 = vpop.permute.xlu0 %2929 }
 0x31f   : > { %2938 = vst.msk [vmem:[#allocation5 + $0x50] sm:$0xff] %vm2820_vm7, %v2930_v54 }
 0x322   : > { %v2962_v57 = vpop.permute.xlu0 %2961 }
 0x323   : > { %2970 = vst.msk [vmem:[#allocation5 + $0x50] sm:$0xff] %vm2853_vm8, %v2962_v57  ;;  %v2996_v59 = vld [vmem:[#allocation5 + $0x48] sm:$0xff] }
 0x32a   : > { %v2997_v58 = vld [vmem:[#allocation5 + $0x50] sm:$0xff] }
 0x32b   : > { %3218 = vmatprep.mubr.bf16.mxu1 %v2997_v58 }
 0x32c   : > { %3219 = vmatmul.mubr.bf16.gmra.mrb[12].mxu1 %v2996_v59 }
 0x32d   : > { %3840 = vmatprep.mubr.msk.bf16.mxu1 %vm1729_vm13, %v2989_v61 }
 0x334   : > { %3841 = vmatmul.mubr.msk.bf16.vlgmr.msra.gmra.mrb[16].mxu1 %vm1729_vm13, %v2992_v62 }
 0x335   : > { %3844 = vmatprep.mubr.msk.bf16.mxu1 %vm1729_vm13, %v2995_v55 }
 0x33c   : > { %3845 = vmatmul.mubr.msk.bf16.gmra.mrb[20].mxu1 %vm1729_vm13, %v2998_v53 }
 0x35c   : > { %v3770_v1 = vpop.f32.mrb[0].mxu1 }
 0x35d   : > { %v3771_v2 = vpop.f32.mrb[1].mxu1 }
 0x35e   : > { %v3772_v16 = vadd.f32 %v3771_v2, %v3770_v1  ;;  %v3773_v3 = vpop.f32.mrb[2].mxu1 }
 0x35f   : > { %v3774_v4 = vpop.f32.mrb[3].mxu1 }
 0x360   : > { %v3775_v7 = vadd.f32 %v3774_v4, %v3773_v3  ;;  %v3197_v32 = vadd.f32 %v3772_v16, %v5113_v35 }
 0x362   : > { %v3200_v29 = vadd.f32 %v3775_v7, %v5113_v35 }
 0x39c   : > { %v3776_v8 = vpop.f32.mrb[4].mxu1 }
 0x39d   : > { %v3777_v9 = vpop.f32.mrb[5].mxu1 }
 0x39e   : > { %v3778_v10 = vadd.f32 %v3777_v9, %v3776_v8  ;;  %v3779_v56 = vpop.f32.mrb[6].mxu1 }
 0x39f   : > { %v3780_v12 = vpop.f32.mrb[7].mxu1 }
 0x3a0   : > { %v3781_v14 = vadd.f32 %v3780_v12, %v3779_v56  ;;  %v3205_v37 = vadd.f32 %v3778_v10, %v5113_v35 }
 0x3a2   : > { %v3208_v33 = vadd.f32 %v3781_v14, %v5113_v35 }
 0x3dc   : > { %v3782_v15 = vpop.f32.mrb[8].mxu1 }
 0x3dd   : > { %v3783_v6 = vpop.f32.mrb[9].mxu1 }
 0x3de   : > { %v3784_v19 = vadd.f32 %v3783_v6, %v3782_v15  ;;  %v3785_v60 = vpop.f32.mrb[10].mxu1 }
 0x3df   : > { %v3786_v21 = vpop.f32.mrb[11].mxu1 }
 0x3e0   : > { %v5108_v20 = vadd.f32 %v3786_v21, %v3785_v60  ;;  %v3213_v22 = vadd.f32 %v3784_v19, %v5113_v35 }
 0x3ff   : > { %v3788_v26 = vpop.f32.mrb[12].mxu1 }
 0x400   : > { %v3789_v17 = vpop.f32.mrb[13].mxu1 }
 0x401   : > { %v3790_v23 = vadd.f32 %v3789_v17, %v3788_v26  ;;  %v3791_v24 = vpop.f32.mrb[14].mxu1 }
 0x402   : > { %v3792_v18 = vpop.f32.mrb[15].mxu1 }
 0x403   : > { %v3793_v27 = vadd.f32 %v3792_v18, %v3791_v24  ;;  %v3221_v5 = vadd.f32 %v3790_v23, %v5113_v35 }
 0x405   : > { %v3224_v52 = vadd.f32 %v3793_v27, %v5113_v35 }
 0x407   : > { %v3842_v38 = vpop.f32.mrb[16].mxu1 }
 0x408   : > { %v3270_v28 = vadd.f32 %v3842_v38, %v3205_v37  ;;  %v3261_v39 = vpop.f32.mrb[17].mxu1 }
 0x409   : > { %v3262_v34 = vadd.f32 %v3261_v39, %v3197_v32  ;;  %v3843_v63 = vpop.f32.mrb[18].mxu1 }
 0x40a   : > { %v3294_v30 = vmax.f32 %v3270_v28, 0.0  ;;  %v3273_v25 = vadd.f32 %v3843_v63, %v3208_v33  ;;  %v3264_v31 = vpop.f32.mrb[19].mxu1 }
 0x40b   : > { %v3292_v13 = vmax.f32 %v3262_v34, 0.0  ;;  %v3265_v40 = vadd.f32 %v3264_v31, %v3200_v29 }
 0x40c   : > { %v3295_v11 = vmax.f32 %v3273_v25, 0.0  ;;  %v3304_v42 = vsel %vm3300_vm9, %v3294_v30, -inf }
 0x40d   : > { %v3293_v41 = vmax.f32 %v3265_v40, 0.0  ;;  %v3301_v43 = vsel %vm3300_vm9, %v3292_v13, -inf }
 0x40e   : > { %v3305_v45 = vsel %vm3300_vm9, %v3295_v11, -inf }
 0x40f   : > { %v3306_v46 = vmax.f32 %v3304_v42, %v3305_v45  ;;  %v3302_v48 = vsel %vm3300_vm9, %v3293_v41, -inf  ;;  %v3846_v47 = vpop.f32.mrb[20].mxu1 }
 0x410   : > { %v3303_v36 = vmax.f32 %v3301_v43, %v3302_v48  ;;  %v5125_v49 = vadd.f32 %v3846_v47, %v3221_v5  ;;  %v3277_v50 = vpop.f32.mrb[21].mxu1  ;;  %v3216_v48 = vadd.f32 %v5108_v20, %v5113_v35 }
 0x411   : > { %v3334_v54 = vcombine.high %v3306_v46, %v3306_v46  ;;  %v3341_v57 = vrot.slane %v3306_v46, %v4685_v51  ;;  %v5129_v58 = vadd.f32 %v3277_v50, %v3213_v22  ;;  %v3847_v59 = vpop.f32.mrb[22].mxu1 }
 0x412   : > { %v3317_v61 = vcombine.high %v3303_v36, %v3303_v36  ;;  %v3324_v62 = vrot.slane %v3303_v36, %v4685_v51  ;;  %v3289_v55 = vadd.f32 %v3847_v59, %v3224_v52  ;;  %v3280_v53 = vpop.f32.mrb[23].mxu1  ;;  %v3298_v46 = vmax.f32 %v5125_v49, 0.0 }
 0x413   : > { %v3348_v1 = vrot.slane %v3334_v54, %v4685_v51  ;;  %v3349_v2 = vcombine.high %v3341_v57, %v3341_v57  ;;  %v3430_v16 = vsel %vm3401_vm10, %v3341_v57, -inf  ;;  %v3296_v22 = vmax.f32 %v5129_v58, 0.0 }
 0x414   : > { %v3431_v3 = vrot.slane %v3430_v16, 4  ;;  %v3331_v4 = vrot.slane %v3317_v61, %v4685_v51  ;;  %v3332_v7 = vcombine.high %v3324_v62, %v3324_v62  ;;  %v3402_v8 = vsel %vm3401_vm10, %v3324_v62, -inf }
 0x415   : > { %v3350_v9 = vcombine.high %v3348_v1, %v3348_v1  ;;  %v3437_v10 = vsel %vm3401_vm10, %v3349_v2, -inf  ;;  %v3444_v56 = vsel %vm3401_vm10, %v3348_v1, -inf  ;;  %v3403_v12 = vrot.slane %v3402_v8, 4 }
 0x416   : > { %v3432_v14 = vmax.f32 %v3430_v16, %v3431_v3  ;;  %v3438_v15 = vrot.slane %v3437_v10, 4  ;;  %v3445_v6 = vrot.slane %v3444_v56, 4  ;;  %v3333_v19 = vcombine.high %v3331_v4, %v3331_v4 }
 0x417   : > { %v3451_v60 = vsel %vm3401_vm10, %v3350_v9, -inf  ;;  %v3404_v21 = vmax.f32 %v3402_v8, %v3403_v12  ;;  %v3409_v26 = vsel %vm3401_vm10, %v3332_v7, -inf  ;;  %v3416_v17 = vsel %vm3401_vm10, %v3331_v4, -inf }
 0x418   : > { %v3439_v23 = vmax.f32 %v3437_v10, %v3438_v15  ;;  %v3446_v24 = vmax.f32 %v3444_v56, %v3445_v6  ;;  %v3452_v18 = vrot.slane %v3451_v60, 4  ;;  %v3433_v27 = vrot.slane %v3432_v14, 2 }
 0x419   : > { %v3410_v37 = vrot.slane %v3409_v26, 4  ;;  %v3417_v38 = vrot.slane %v3416_v17, 4  ;;  %v3423_v32 = vsel %vm3401_vm10, %v3333_v19, -inf  ;;  %v3405_v34 = vrot.slane %v3404_v21, 2 }
 0x41a   : > { %v3440_v28 = vrot.slane %v3439_v23, 2  ;;  %v3447_v39 = vrot.slane %v3446_v24, 2  ;;  %v3453_v33 = vmax.f32 %v3451_v60, %v3452_v18  ;;  %v3424_v30 = vrot.slane %v3423_v32, 4 }
 0x41b   : > { %v3411_v63 = vmax.f32 %v3409_v26, %v3410_v37  ;;  %v3418_v29 = vmax.f32 %v3416_v17, %v3417_v38  ;;  %v3434_v13 = vmax.f32 %v3432_v14, %v3433_v27  ;;  %v3406_v42 = vmax.f32 %v3404_v21, %v3405_v34 }
 0x41c   : > { %v3441_v25 = vmax.f32 %v3439_v23, %v3440_v28  ;;  %v3454_v31 = vrot.slane %v3453_v33, 2  ;;  %v3448_v40 = vmax.f32 %v3446_v24, %v3447_v39  ;;  %v3425_v5 = vmax.f32 %v3423_v32, %v3424_v30 }
 0x41d   : > { %v3412_v11 = vrot.slane %v3411_v63, 2  ;;  %v3419_v45 = vrot.slane %v3418_v29, 2  ;;  %v3435_v47 = vrot.slane %v3434_v13, 1  ;;  %v3299_v52 = vmax.f32 %v3289_v55, 0.0 }
 0x41e   : > { %v3442_v41 = vrot.slane %v3441_v25, 1  ;;  %v3455_v43 = vmax.f32 %v3453_v33, %v3454_v31  ;;  %v3449_v36 = vrot.slane %v3448_v40, 1  ;;  %v3281_v54 = vadd.f32 %v3280_v53, %v3216_v48 }
 0x41f   : > { %v3413_v50 = vmax.f32 %v3411_v63, %v3412_v11  ;;  %v3407_v59 = vrot.slane %v3406_v42, 1  ;;  %v5146_v61 = vmax.f32 %v3418_v29, %v3419_v45  ;;  %v3426_v62 = vrot.slane %v3425_v5, 2 }
 0x420   : > { %v3443_v57 = vmax.f32 %v3441_v25, %v3442_v41  ;;  %v3456_v1 = vrot.slane %v3455_v43, 1  ;;  %v3310_v2 = vsel %vm3300_vm9, %v3298_v46, -inf  ;;  %v3311_v49 = vsel %vm3300_vm9, %v3299_v52, -inf }
 0x421   : > { %v3297_v16 = vmax.f32 %v3281_v54, 0.0  ;;  %v3436_v3 = vmax.f32 %v3434_v13, %v3435_v47  ;;  %v3312_v20 = vmax.f32 %v3310_v2, %v3311_v49  ;;  %v3450_v35 = vmax.f32 %v3448_v40, %v3449_v36 }
 0x422   : > { %v3414_v4 = vrot.slane %v3413_v50, 1  ;;  %v3307_v58 = vsel %vm3300_vm9, %v3296_v22, -inf  ;;  %v5154_v10 = vmax.f32 %v3455_v43, %v3456_v1  ;;  %v5156_v56 = vmax.f32 %v3406_v42, %v3407_v59 }
 0x423   : > { %v3308_v55 = vsel %vm3300_vm9, %v3297_v16, -inf  ;;  %v3533_v53 = vsel %vm2663_vm15, %v3443_v57, %v3436_v3  ;;  %v3368_v7 = vcombine.high %v3312_v20, %v3312_v20  ;;  %v3375_v8 = vrot.slane %v3312_v20, %v4685_v51 }
 0x424   : > { %v3309_v9 = vmax.f32 %v3307_v58, %v3308_v55  ;;  %v3421_v12 = vrot.slane %v5146_v61, 1  ;;  %v5159_v14 = vmax.f32 %v3425_v5, %v3426_v62  ;;  %v5164_v21 = vsel %vm2665_vm0, %v3450_v35, %v3533_v53 }
 0x425   : > { %v3382_v15 = vrot.slane %v3368_v7, %v4685_v51  ;;  %v3383_v6 = vcombine.high %v3375_v8, %v3375_v8  ;;  %v3486_v19 = vsel %vm3401_vm10, %v3375_v8, -inf  ;;  %v3415_v26 = vmax.f32 %v3413_v50, %v3414_v4 }
 0x426   : > { %v3351_v60 = vcombine.high %v3309_v9, %v3309_v9  ;;  %v3487_v17 = vrot.slane %v3486_v19, 4  ;;  %v3358_v23 = vrot.slane %v3309_v9, %v4685_v51  ;;  %v3428_v49 = vrot.slane %v5159_v14, 1 }
 0x427   : > { %v3384_v24 = vcombine.high %v3382_v15, %v3382_v15  ;;  %v3493_v18 = vsel %vm3401_vm10, %v3383_v6, -inf  ;;  %v3500_v27 = vsel %vm3401_vm10, %v3382_v15, -inf }
 0x428   : > { %v3365_v37 = vrot.slane %v3351_v60, %v4685_v51  ;;  %v3488_v38 = vmax.f32 %v3486_v19, %v3487_v17  ;;  %v3494_v32 = vrot.slane %v3493_v18, 4  ;;  %v3501_v28 = vrot.slane %v3500_v27, 4 }
 0x429   : > { %v3366_v39 = vcombine.high %v3358_v23, %v3358_v23  ;;  %v3507_v33 = vsel %vm3401_vm10, %v3384_v24, -inf  ;;  %v3458_v63 = vsel %vm3401_vm10, %v3358_v23, -inf  ;;  %v3422_v17 = vmax.f32 %v5146_v61, %v3421_v12 }
 0x42a   : > { %v3367_v34 = vcombine.high %v3365_v37, %v3365_v37  ;;  %v3472_v29 = vsel %vm3401_vm10, %v3365_v37, -inf  ;;  %v3489_v30 = vrot.slane %v3488_v38, 2  ;;  %v3495_v25 = vmax.f32 %v3493_v18, %v3494_v32 }
 0x42b   : > { %v3502_v31 = vmax.f32 %v3500_v27, %v3501_v28  ;;  %v3508_v13 = vrot.slane %v3507_v33, 4  ;;  %v3459_v40 = vrot.slane %v3458_v63, 4  ;;  %v3465_v11 = vsel %vm3401_vm10, %v3366_v39, -inf }
 0x42c   : > { %v3473_v41 = vrot.slane %v3472_v29, 4  ;;  %v3479_v42 = vsel %vm3401_vm10, %v3367_v34, -inf  ;;  %v3490_v45 = vmax.f32 %v3488_v38, %v3489_v30  ;;  %v3496_v5 = vrot.slane %v3495_v25, 2 }
 0x42d   : > { %v3503_v43 = vrot.slane %v3502_v31, 2  ;;  %v3509_v46 = vmax.f32 %v3507_v33, %v3508_v13  ;;  %v3460_v48 = vmax.f32 %v3458_v63, %v3459_v40  ;;  %v3466_v47 = vrot.slane %v3465_v11, 4 }
 0x42e   : > { %v3474_v22 = vmax.f32 %v3472_v29, %v3473_v41  ;;  %v3480_v36 = vrot.slane %v3479_v42, 4  ;;  %v3491_v50 = vrot.slane %v3490_v45, 1  ;;  %v3497_v52 = vmax.f32 %v3495_v25, %v3496_v5 }
 0x42f   : > { %v3504_v54 = vmax.f32 %v3502_v31, %v3503_v43  ;;  %v3510_v57 = vrot.slane %v3509_v46, 2  ;;  %v3461_v59 = vrot.slane %v3460_v48, 2  ;;  %v3467_v62 = vmax.f32 %v3465_v11, %v3466_v47 }
 0x430   : > { %v3475_v1 = vrot.slane %v3474_v22, 2  ;;  %v3481_v2 = vmax.f32 %v3479_v42, %v3480_v36  ;;  %v3498_v16 = vrot.slane %v3497_v52, 1  ;;  %v3492_v53 = vmax.f32 %v3490_v45, %v3491_v50 }
 0x431   : > { %v3505_v3 = vrot.slane %v3504_v54, 1  ;;  %v3511_v20 = vmax.f32 %v3509_v46, %v3510_v57  ;;  %v3462_v35 = vmax.f32 %v3460_v48, %v3461_v59  ;;  %v3468_v4 = vrot.slane %v3467_v62, 2 }
 0x432   : > { %v3476_v58 = vmax.f32 %v3474_v22, %v3475_v1  ;;  %v3482_v55 = vrot.slane %v3481_v2, 2  ;;  %v3499_v7 = vmax.f32 %v3497_v52, %v3498_v16  ;;  %v3530_v18 = vsel %vm2663_vm15, %v3415_v26, %v5156_v56 }
 0x433   : > { %v3506_v8 = vmax.f32 %v3504_v54, %v3505_v3  ;;  %v3512_v9 = vrot.slane %v3511_v20, 1  ;;  %v3463_v15 = vrot.slane %v3462_v35, 1  ;;  %v3469_v6 = vmax.f32 %v3467_v62, %v3468_v4 }
 0x434   : > { %v3477_v19 = vrot.slane %v3476_v58, 1  ;;  %v3483_v60 = vmax.f32 %v3481_v2, %v3482_v55  ;;  %v3539_v24 = vsel %vm2663_vm15, %v3499_v7, %v3492_v53  ;;  %v4006_v38 = vmov 1934713408  }
 0x435   : > { %v3513_v23 = vmax.f32 %v3511_v20, %v3512_v9  ;;  %v3540_v27 = vsel %vm2665_vm0, %v3506_v8, %v3539_v24  ;;  %v3470_v37 = vrot.slane %v3469_v6, 1  ;;  %v3565_v32 = vunpack.c.l.s4 %v4006_v38 }
 0x436   : > { %v3478_v28 = vmax.f32 %v3476_v58, %v3477_v19  ;;  %v3484_v39 = vrot.slane %v3483_v60, 1  ;;  %v3535_v33 = vsel %vm2667_vm1, %v5154_v10, %v5164_v21  ;;  %v3429_v61 = vmax.f32 %v5159_v14, %v3428_v49 }
 0x437   : > { %v3541_v34 = vsel %vm2667_vm1, %v3513_v23, %v3540_v27  ;;  %v3464_v12 = vmax.f32 %v3462_v35, %v3463_v15  ;;  %v3471_v63 = vmax.f32 %v3469_v6, %v3470_v37  ;;  %v3531_v56 = vsel %vm2665_vm0, %v3422_v17, %v3530_v18 }
 0x438   : > { %v3554_v29 = vcombine.low %v3535_v33, %v3541_v34  ;;  %v3485_v26 = vmax.f32 %v3483_v60, %v3484_v39  ;;  %v3566_v31 = vunpack.c.0.s8 %v3565_v32  ;;  %v3532_v13 = vsel %vm2667_vm1, %v3429_v61, %v3531_v56 }
 0x439   : > { %v3536_v30 = vsel %vm2663_vm15, %v3471_v63, %v3464_v12 }
 0x43a   : > { %v3537_v25 = vsel %vm2665_vm0, %v3478_v28, %v3536_v30  ;;  %v3561_v40 = vrot.slane %v3554_v29, %v4685_v51  ;;  %v3569_v11 = vsub.s32 %v3566_v31, %v4677_v44 }
 0x43b   : > { %v3538_v10 = vsel %vm2667_vm1, %v3485_v26, %v3537_v25 }
 0x43c   : > { %v3546_v21 = vcombine.low %v3532_v13, %v3538_v10 }
 0x43e   : > { %v3553_v14 = vrot.slane %v3546_v21, %v4685_v51 }
 0x440   : > { %v3562_v41 = vcombine.low %v3553_v14, %v3561_v40  ;;  %v3563_v42 = vcombine.high %v3553_v14, %v3561_v40 }
 0x442   : > { %v3570_v45 = vrot.slane %v3562_v41, %v3569_v11  ;;  %v3577_v5 = vrot.slane %v3563_v42, %v3569_v11 }
 0x444   : > { %v3578_v43 = vcombine.high %v3570_v45, %v3992_v0  ;;  %v3579_v46 = vcombine.high %v3577_v5, %v3992_v0 }
 0x446   : > { %v3902_v48 = vpack.i.bf16 %v3579_v46, %v3578_v43 }
 0x448   : > { %3903 = vrot.lane.b32.xlu0 %v3902_v48, %s4004_s9  ;;  %s3605_s9 = scalar_lea.sflag [#allocation7], %s215_s7 }
 0x4ba   : > { %v3904_v47 = vpop.permute.xlu0 %3903 }
 0x4bb   : > { %v3906_v22 = vunpack.i.h.bf16 %v3904_v47  ;;  %v3905_v36 = vunpack.i.l.bf16 %v3904_v47 }
 0x4bd   : > { %v3589_v44 = vsel %vm3300_vm9, %v3577_v5, %v3906_v22  ;;  %v3588_v51 = vsel %vm3300_vm9, %v3570_v45, %v3905_v36 }
 0x4be   : > { %v3727_v50 = vpack.c.bf16 %v3589_v44, %v3588_v51 }
 0x4c0   : > { %3728 = vst.sshfl [vmem:[%s217_s13] sm:$0x33 pattern:$0x76325410] %v3727_v50 }
 0x4c1   : > { %3941 = shalt.err (!%p3938_p3)
}
 0x4c2   : > { %s3942_s30 = scalar_lea.hbm %s5204_s17, 64  ;;  %s3946_s10 = scalar_lea.hbm %s5251_s5, 128 }
 0x4c3   : > { %p3943_p4 = scmp.ne.s32.totalorder %s5204_s17, %s3942_s30  ;;  %p3947_p9 = scmp.lt.u32.totalorder %s5204_s17, %s5251_s5 }
 0x4c4   : > { %p3948_p10 = scmp.lt.u32.totalorder %s3946_s10, %s3942_s30  ;;  %p3950_p12 = scmp.lt.u32.totalorder %s3942_s30, %s5204_s17 }
 0x4c5   : > { %p3944_p7 = pnand %p3943_p4, %p4076_p5 }
 0x4c6   : > { %p3949_p11 = por %p3948_p10, %p3947_p9 }
 0x4c7   : > { %p3945_p8 = pneg %p3944_p7 }
 0x4c8   : > { %p3951_p13 = por %p3950_p12, %p3949_p11 }
 0x4ca   : > { %p3952_p0 = pnand %p3951_p13, %p3945_p8 }
 0x4cc   : > { %3955 = shalt.err (!%p3952_p0)
}
 0x4cd   : > { %3848 = dma.vmem_to_hbm [thread:$0]  (%p4076_p5), %s5206_s14, 64, %s5204_s17, %s3605_s9  }
 0x4ce PF: > { %p3854_p1 = scmp.ge.s32.totalorder %s3990_s21, 2  ;;  %s3631_s12 = sand.u32 1, %s3978_s18  }
 0x4cf   : > { %s3632_s13 = scalar_lea.sflag [#allocation7], %s3631_s12 }
 0x4d0   : > { %p3851_p2 = pnand %p3854_p1, %p4080_p6 }
 0x4d2   : > { %3973 = dma.done.wait (!%p3851_p2), %s3632_s13, 64  }
 0x4d3   : > { %3975 = vsyncadd (!%p3851_p2), %s3632_s13, 4294967232  ;;  %p15_p3 = scmp.ge.s32.totalorder %s4063_s24, 4   ;;  %s5254_s18 = smov %s3982_s19 }
 0x4d4   : > { %s5255_s19 = smov %s3986_s20  ;;  %s5256_s20 = smov %s4074_s27 }
 0x4d5   : > { %s5257_s21 = smov %s4063_s24  ;;  %17 = sbr.rel (!%p15_p3) target bundleno = 3 (0x3), region = 79 }
 0x4dc   :  { %3637 = vsyncpa [#allocation7], 1 }
 0x4dd   :  { %3639 = vsyncpa [#allocation7 + $0x1], 1 }

</bundles_post_ra>
